<compile_context>
chip_gen: v7x
topology: tpu7x:2x2x1
jax: 0.10.0
libtpu: 0.0.40
codegen_flags: <defaults>
</compile_context>

<pallas_src>
import math

import jax
import jax.numpy as jnp
from jax.experimental import pallas as pl
from jax.experimental.pallas import tpu as pltpu


# ----------------------------------------------------------------------------
# Pallas kernel: one lane-dense tile of TP points (all MLPs + attention fused)
# ----------------------------------------------------------------------------
def _make_kernel(TP, K, C, A):
    inv_sqrt_a = 1.0 / math.sqrt(float(A))

    def kernel(pdiff_ref, vpts_ref, W1_ref, Wcc_ref, bC_ref, Wab_ref, bab_ref,
               W8_ref, b8_ref, out_ref):
        def leaky(x):                       # LeakyReLU(0.05) (slope from module)
            return jnp.maximum(x, 0.05 * x)

        def Wc(i):                          # i-th packed [C, C] weight slice
            return Wcc_ref[i * C:(i + 1) * C, :]

        def bc(i):                          # i-th packed [C, 1] bias slice
            return bC_ref[i * C:(i + 1) * C, :]

        def mm(W, x):                       # MXU matmul, f32 accumulation;
            return jnp.dot(W, x.astype(W.dtype),   # operands follow W's dtype
                           preferred_element_type=jnp.float32)

        def lin(W, b, x):                   # folded 1x1 conv (+BN) == matmul
            return mm(W, x) + b

        pdiff = pdiff_ref[0]                # [3, K*TP], K-major columns
        vpts = vpts_ref[0]                  # [C, TP]

        # pdiff_mlp + knn_mlp on all K lane groups at once (fknn is needed
        # below for the attention aggregation, so materialize it exactly once).
        h = leaky(lin(W1_ref[...], bc(0), pdiff))
        h = leaky(lin(Wc(0), bc(1), h))
        h = leaky(lin(Wc(1), bc(2), h))
        fknn = leaky(lin(Wc(2), bc(3), h))                   # [C, K*TP]

        # point_mlp
        g = leaky(lin(Wc(3), bc(4), vpts))
        fpt = leaky(lin(Wc(4), bc(5), g))                    # [C, TP]

        # MutualAttentionV2 (conv_pdiff of the torch module is unused)
        Wa = Wab_ref[0:A, :]
        ba = bab_ref[0:A, :]
        Wb = Wab_ref[A:2 * A, :]
        bb = bab_ref[A:2 * A, :]
        ap = leaky(lin(Wb, bb, fpt))                         # [A, TP]

        red = jnp.full((1, A), inv_sqrt_a, jnp.float32)

        # Per-k attention scores: ak_k is a [A, TP] transient (no [A, K*TP]
        # materialization, no ap replication); one elementwise product and a
        # single ones-row MXU reduction over A per group.
        qk = []
        for k in range(K):
            fknn_k = fknn[:, k * TP:(k + 1) * TP]            # lane-aligned
            ak_k = leaky(lin(Wa, ba, fknn_k))                # [A, TP]
            qk.append(jnp.dot(red, ak_k * ap,
                              preferred_element_type=jnp.float32))  # [1, TP]

        # Softmax over K fused with the attention-weighted aggregation:
        # running max, then one exp + one multiply-accumulate per group.
        m = qk[0]
        for k in range(1, K):
            m = jnp.maximum(m, qk[k])
        e0 = jnp.exp(qk[0] - m)
        s = e0
        agg = fknn[:, 0:TP] * e0
        for k in range(1, K):
            e_k = jnp.exp(qk[k] - m)
            s = s + e_k
            agg = agg + fknn[:, k * TP:(k + 1) * TP] * e_k
        r = pl.reciprocal(s, approx=True)                    # [1, TP] (EUP)
        agg = agg * r                                        # [C, TP]

        # block_net; the [2C, TP] concatenate is replaced by a split matmul.
        z1 = leaky(mm(Wc(5), agg) + mm(Wc(6), fpt) + bc(6))
        out = mm(W8_ref[...], z1) + b8_ref[...]
        out_ref[0] = out                                     # [1, TP]

    return kernel


# ----------------------------------------------------------------------------
# Wrapper: fold batch into the lane axis, pack weights, call the kernel
# ----------------------------------------------------------------------------
def run_decoder(pdiff, vfeat_pts, params, tile_p=128, mxu_dtype=jnp.float32):
    """pdiff: [B, N, K, 3], vfeat_pts: [B, C, N] -> [B, 1, N].

    tile_p: lane-tile size; sweep {256, 512, 1024} for production point counts
            (keep T = ceil(B*N / tile_p) even and >= 2 so both v7x cores get
            work and the pipeline has something to overlap).
    mxu_dtype: jnp.bfloat16 halves MXU-operand traffic on v6e/v7x; keep
            jnp.float32 on v5e (no bf16 VPU) and for tight verification.
    """
    B, N, K, _ = pdiff.shape
    _, C, _ = vfeat_pts.shape
    A = params["Wa"].shape[0]

    P_total = B * N
    TP = tile_p
    T = -(-P_total // TP)
    P_pad = T * TP
    pad = P_pad - P_total

    pdiff_flat = pdiff.reshape(P_total, K, 3).astype(jnp.float32)
    vpts_flat = (jnp.transpose(vfeat_pts, (0, 2, 1))
                 .reshape(P_total, C).astype(jnp.float32))
    if pad:
        pdiff_flat = jnp.concatenate(
            [pdiff_flat, jnp.zeros((pad, K, 3), jnp.float32)], axis=0)
        vpts_flat = jnp.concatenate(
            [vpts_flat, jnp.zeros((pad, C), jnp.float32)], axis=0)

    # Lane-dense tiles: [T, 3, K*TP] (K-major columns) and [T, C, TP].
    pdiff_tiled = (pdiff_flat.reshape(T, TP, K, 3)
                   .transpose(0, 3, 2, 1).reshape(T, 3, K * TP))
    vpts_tiled = vpts_flat.reshape(T, TP, C).transpose(0, 2, 1)

    # Pack the 22 weight/bias tensors (BN already folded) into 7 slabs.
    # Weights carry mxu_dtype (MXU operands); biases stay f32 (post-accum add).
    W7a = params["W7"][:, :C]
    W7b = params["W7"][:, C:]
    Wcc = jnp.concatenate([params["W2"], params["W3"], params["W4"],
                           params["W5"], params["W6"], W7a, W7b],
                          axis=0).astype(mxu_dtype)
    bC = jnp.concatenate([params["b1"], params["b2"], params["b3"],
                          params["b4"], params["b5"], params["b6"],
                          params["b7"]], axis=0).astype(jnp.float32)
    Wab = jnp.concatenate([params["Wa"], params["Wb"]], axis=0).astype(mxu_dtype)
    bab = jnp.concatenate([params["ba"], params["bb"]], axis=0).astype(jnp.float32)
    W1 = params["W1"].astype(mxu_dtype)
    W8 = params["W8"].astype(mxu_dtype)
    b8 = params["b8"].astype(jnp.float32)

    in_specs = [
        pl.BlockSpec((1, 3, K * TP), lambda t: (t, 0, 0)),
        pl.BlockSpec((1, C, TP), lambda t: (t, 0, 0)),
        pl.BlockSpec(W1.shape, lambda t: (0, 0)),
        pl.BlockSpec(Wcc.shape, lambda t: (0, 0)),
        pl.BlockSpec(bC.shape, lambda t: (0, 0)),
        pl.BlockSpec(Wab.shape, lambda t: (0, 0)),
        pl.BlockSpec(bab.shape, lambda t: (0, 0)),
        pl.BlockSpec(W8.shape, lambda t: (0, 0)),
        pl.BlockSpec(b8.shape, lambda t: (0, 0)),
    ]

    out = pl.pallas_call(
        _make_kernel(TP, K, C, A),
        out_shape=jax.ShapeDtypeStruct((T, 1, TP), jnp.float32),
        grid_spec=pltpu.PrefetchScalarGridSpec(
            num_scalar_prefetch=0,
            grid=(T,),
            in_specs=in_specs,
            out_specs=pl.BlockSpec((1, 1, TP), lambda t: (t, 0, 0)),
        ),
        compiler_params=pltpu.CompilerParams(
            dimension_semantics=("parallel",)),
    )(pdiff_tiled, vpts_tiled, W1, Wcc, bC, Wab, bab, W8, b8)

    return out.reshape(T * TP)[:P_total].reshape(B, 1, N)


# ----------------------------------------------------------------------------
# Deterministic parameter construction (conv + eval-mode BN folded together)
# ----------------------------------------------------------------------------
def conv_bn_params(key, cin, cout, eps=1e-5):
    k1, k2, k3, k4, k5 = jax.random.split(key, 5)
    W = jax.random.normal(k1, (cout, cin), jnp.float32) / jnp.sqrt(cin)
    gamma = 1.0 + 0.1 * jax.random.normal(k2, (cout,), jnp.float32)
    beta = 0.1 * jax.random.normal(k3, (cout,), jnp.float32)
    mean = 0.1 * jax.random.normal(k4, (cout,), jnp.float32)
    var = jnp.abs(1.0 + 0.1 * jax.random.normal(k5, (cout,), jnp.float32))
    scale = gamma / jnp.sqrt(var + eps)
    W_eff = W * scale[:, None]
    b_eff = beta - scale * mean
    return W_eff, b_eff[:, None]


def conv_bias_params(key, cin, cout):
    k1, k2 = jax.random.split(key)
    W = jax.random.normal(k1, (cout, cin), jnp.float32) / jnp.sqrt(cin)
    b = 0.1 * jax.random.normal(k2, (cout,), jnp.float32)
    return W, b[:, None]


# ----------------------------------------------------------------------------
# Pure-JAX reference (mirrors the PyTorch NCHW math, for verification)
# ----------------------------------------------------------------------------
def torch_like_reference(pdiff_nchw, vpts, P):
    leaky = lambda x: jnp.where(x >= 0, x, 0.05 * x)
    conv2d = lambda W, b, x: jnp.einsum("oc,bcnk->bonk", W, x) + b[None, :, :, None]
    conv1d = lambda W, b, x: jnp.einsum("oc,bcn->bon", W, x) + b[None]

    h = leaky(conv2d(P["W1"], P["b1"], pdiff_nchw))
    h = leaky(conv2d(P["W2"], P["b2"], h))               # [B,C,N,K]
    B, C, N, K = h.shape
    h1 = h.reshape(B, C, N * K)
    h1 = leaky(conv1d(P["W3"], P["b3"], h1))
    fknn = leaky(conv1d(P["W4"], P["b4"], h1))           # [B,C,N*K]
    g = leaky(conv1d(P["W5"], P["b5"], vpts))
    fpt = leaky(conv1d(P["W6"], P["b6"], g))             # [B,C,N]

    fknn4 = fknn.reshape(B, C, N, K)
    ak = leaky(conv2d(P["Wa"], P["ba"], fknn4))          # [B,A,N,K]
    ap = leaky(conv2d(P["Wb"], P["bb"], fpt[..., None])) # [B,A,N,1]
    qk = jnp.sum(ak * ap, axis=1, keepdims=True) / jnp.sqrt(jnp.float32(ak.shape[1]))
    w = jax.nn.softmax(qk, axis=-1)                      # [B,1,N,K]
    agg = jnp.sum(w * fknn4, axis=-1)                    # [B,C,N]
    cat = jnp.concatenate([agg, fpt], axis=1)
    z1 = leaky(conv1d(P["W7"], P["b7"], cat))
    return conv1d(P["W8"], P["b8"], z1)                  # [B,1,N]


# ----------------------------------------------------------------------------
if __name__ == "__main__":
    # c_dim=32, attention dim=128 (hard-coded in MutualAttentionV2), K=8.
    # N=256 so the flattened point axis (B*N=512) fills four 128-lane tiles:
    # T=4 gives each v7x TensorCore two tiles to pipeline.
    B, N, M, K, C, A = 2, 256, 64, 8, 32, 128

    key = jax.random.PRNGKey(0)
    keys = jax.random.split(key, 8)
    p = jax.random.uniform(keys[0], (B, N, 3), jnp.float32, -1.0, 1.0)       # query points
    inputs = jax.random.uniform(keys[1], (B, M, 3), jnp.float32, -1.0, 1.0)  # input cloud
    feat = 0.5 * jax.random.normal(keys[2], (B, M, C), jnp.float32)          # feat_list[0] [B,M,C]
    feat_g = jax.random.normal(keys[3], (B, C), jnp.float32)                 # unused (like torch fwd)
    z = jax.random.normal(keys[4], (B, 128), jnp.float32)                    # unused (like torch fwd)
    feat_pt = jnp.transpose(feat, (0, 2, 1))                                 # [B,C,M]

    pk = jax.random.split(keys[5], 10)
    P = {}
    P["W1"], P["b1"] = conv_bn_params(pk[0], 3, C)
    P["W2"], P["b2"] = conv_bn_params(pk[1], C, C)
    P["W3"], P["b3"] = conv_bn_params(pk[2], C, C)
    P["W4"], P["b4"] = conv_bn_params(pk[3], C, C)
    P["W5"], P["b5"] = conv_bn_params(pk[4], C, C)
    P["W6"], P["b6"] = conv_bn_params(pk[5], C, C)
    P["Wa"], P["ba"] = conv_bn_params(pk[6], C, A)
    P["Wb"], P["bb"] = conv_bn_params(pk[7], C, A)
    P["W7"], P["b7"] = conv_bn_params(pk[8], 2 * C, C)
    P["W8"], P["b8"] = conv_bias_params(pk[9], C, 1)

    # --- torch.no_grad() neighbour search + gathers (plain-JAX glue) ---
    d2 = jnp.sum((p[:, :, None, :] - inputs[:, None, :, :]) ** 2, axis=-1)   # [B,N,M]
    dist = jnp.sqrt(d2)
    # three_nn (Euclidean distance convention, as in pointnet2_ops wrapper)
    neg3, idx3 = jax.lax.top_k(-dist, 3)                                     # [B,N,3]
    dist3 = -neg3
    dist_recip = 1.0 / (dist3 + 1e-8)
    weight3 = dist_recip / jnp.sum(dist_recip, axis=2, keepdims=True)
    g3 = jax.vmap(lambda f, i: f[:, i])(feat_pt, idx3)                       # [B,C,N,3]
    vfeat_pts = jnp.sum(g3 * weight3[:, None, :, :], axis=-1)                # [B,C,N]
    # KNN_query (radius=100 -> plain KNN) + grouping_operation + pdiff
    _, idxK = jax.lax.top_k(-d2, K)                                          # [B,N,K]
    points_knn = jax.vmap(lambda xyz, i: xyz[i])(inputs, idxK)               # [B,N,K,3]
    pdiff = p[:, :, None, :] - points_knn                                    # [B,N,K,3]
    pdiff_nchw = jnp.transpose(pdiff, (0, 3, 1, 2))                          # [B,3,N,K] torch layout

    # --- fused Pallas kernel (f32 default; mxu_dtype=jnp.bfloat16 is the
    #     optional v6e/v7x MXU-operand knob, not applied on v5e) ---
    out = run_decoder(pdiff, vfeat_pts, P, tile_p=128)
    out = jax.block_until_ready(out)
    assert out.shape == (B, 1, N), out.shape

    ref = jax.block_until_ready(torch_like_reference(pdiff_nchw, vfeat_pts, P))
    if not jnp.allclose(out, ref, atol=2e-2, rtol=2e-2):
        raise AssertionError(
            f"mismatch, max abs diff = {float(jnp.max(jnp.abs(out - ref)))}")
    print("KERNEL_OK")
</pallas_src>

<mosaic_0001>
module attributes {stable_mosaic.version = 11 : i64} {
  func.func @kernel(%arg0: i32, %arg1: memref<1x3x1024xf32, #tpu.memory_space<vmem>>, %arg2: memref<1x32x128xf32, #tpu.memory_space<vmem>>, %arg3: memref<32x3xf32, #tpu.memory_space<vmem>>, %arg4: memref<224x32xf32, #tpu.memory_space<vmem>>, %arg5: memref<224x1xf32, #tpu.memory_space<vmem>>, %arg6: memref<256x32xf32, #tpu.memory_space<vmem>>, %arg7: memref<256x1xf32, #tpu.memory_space<vmem>>, %arg8: memref<1x32xf32, #tpu.memory_space<vmem>>, %arg9: memref<1x1xf32, #tpu.memory_space<vmem>>, %arg10: memref<1x1x128xf32, #tpu.memory_space<vmem>>) attributes {dimension_semantics = [#tpu.dimension_semantics<parallel>], iteration_bounds = array<i64: 4>, scalar_prefetch = 0 : i64, scratch_operands = 0 : i64, tpu.core_type = #tpu.core_type<tc>, window_params = [{transform_indices = @transform_0, window_bounds = array<i64: 1, 3, 1024>}, {transform_indices = @transform_1, window_bounds = array<i64: 1, 32, 128>}, {pipeline_mode = #tpu.pipeline_mode<synchronous>, transform_indices = @transform_2, window_bounds = array<i64: 32, 3>}, {pipeline_mode = #tpu.pipeline_mode<synchronous>, transform_indices = @transform_3, window_bounds = array<i64: 224, 32>}, {pipeline_mode = #tpu.pipeline_mode<synchronous>, transform_indices = @transform_4, window_bounds = array<i64: 224, 1>}, {pipeline_mode = #tpu.pipeline_mode<synchronous>, transform_indices = @transform_5, window_bounds = array<i64: 256, 32>}, {pipeline_mode = #tpu.pipeline_mode<synchronous>, transform_indices = @transform_6, window_bounds = array<i64: 256, 1>}, {pipeline_mode = #tpu.pipeline_mode<synchronous>, transform_indices = @transform_7, window_bounds = array<i64: 1, 32>}, {pipeline_mode = #tpu.pipeline_mode<synchronous>, transform_indices = @transform_8, window_bounds = array<i64: 1, 1>}, {transform_indices = @transform_9, window_bounds = array<i64: 1, 1, 128>}]} {
    %c0 = arith.constant 0 : index
    %c0_0 = arith.constant 0 : index
    %c0_1 = arith.constant 0 : index
    %0 = vector.load %arg1[%c0, %c0_0, %c0_1] : memref<1x3x1024xf32, #tpu.memory_space<vmem>>, vector<1x3x1024xf32>
    %1 = vector.shape_cast %0 : vector<1x3x1024xf32> to vector<3x1024xf32>
    %c0_2 = arith.constant 0 : index
    %c0_3 = arith.constant 0 : index
    %c0_4 = arith.constant 0 : index
    %2 = vector.load %arg2[%c0_2, %c0_3, %c0_4] : memref<1x32x128xf32, #tpu.memory_space<vmem>>, vector<1x32x128xf32>
    %3 = vector.shape_cast %2 : vector<1x32x128xf32> to vector<32x128xf32>
    %c0_5 = arith.constant 0 : index
    %c0_6 = arith.constant 0 : index
    %4 = vector.load %arg3[%c0_5, %c0_6] : memref<32x3xf32, #tpu.memory_space<vmem>>, vector<32x3xf32>
    %c0_7 = arith.constant 0 : index
    %c0_8 = arith.constant 0 : index
    %5 = vector.load %arg5[%c0_7, %c0_8] : memref<224x1xf32, #tpu.memory_space<vmem>>, vector<32x1xf32>
    %cst = arith.constant dense<0.000000e+00> : vector<32x1024xf32>
    %6 = tpu.matmul %4, %1, %cst {dimension_numbers = #tpu.dot_dimension_numbers<[1], [0], [0], [1], [0, 0, 1, 1], [], []>} : vector<32x3xf32>, vector<3x1024xf32>, vector<32x1024xf32> -> vector<32x1024xf32>
    %7 = vector.broadcast %5 : vector<32x1xf32> to vector<32x1024xf32>
    %8 = arith.addf %6, %7 : vector<32x1024xf32>
    %cst_9 = arith.constant 5.000000e-02 : f32
    %9 = vector.broadcast %cst_9 : f32 to vector<32x1024xf32>
    %10 = arith.mulf %9, %8 : vector<32x1024xf32>
    %11 = arith.maximumf %8, %10 : vector<32x1024xf32>
    %c0_10 = arith.constant 0 : index
    %c0_11 = arith.constant 0 : index
    %12 = vector.load %arg4[%c0_10, %c0_11] : memref<224x32xf32, #tpu.memory_space<vmem>>, vector<32x32xf32>
    %c32 = arith.constant 32 : index
    %c0_12 = arith.constant 0 : index
    %13 = vector.load %arg5[%c32, %c0_12] : memref<224x1xf32, #tpu.memory_space<vmem>>, vector<32x1xf32>
    %cst_13 = arith.constant dense<0.000000e+00> : vector<32x1024xf32>
    %14 = tpu.matmul %12, %11, %cst_13 {dimension_numbers = #tpu.dot_dimension_numbers<[1], [0], [0], [1], [0, 0, 1, 1], [], []>} : vector<32x32xf32>, vector<32x1024xf32>, vector<32x1024xf32> -> vector<32x1024xf32>
    %15 = vector.broadcast %13 : vector<32x1xf32> to vector<32x1024xf32>
    %16 = arith.addf %14, %15 : vector<32x1024xf32>
    %cst_14 = arith.constant 5.000000e-02 : f32
    %17 = vector.broadcast %cst_14 : f32 to vector<32x1024xf32>
    %18 = arith.mulf %17, %16 : vector<32x1024xf32>
    %19 = arith.maximumf %16, %18 : vector<32x1024xf32>
    %c32_15 = arith.constant 32 : index
    %c0_16 = arith.constant 0 : index
    %20 = vector.load %arg4[%c32_15, %c0_16] : memref<224x32xf32, #tpu.memory_space<vmem>>, vector<32x32xf32>
    %c64 = arith.constant 64 : index
    %c0_17 = arith.constant 0 : index
    %21 = vector.load %arg5[%c64, %c0_17] : memref<224x1xf32, #tpu.memory_space<vmem>>, vector<32x1xf32>
    %cst_18 = arith.constant dense<0.000000e+00> : vector<32x1024xf32>
    %22 = tpu.matmul %20, %19, %cst_18 {dimension_numbers = #tpu.dot_dimension_numbers<[1], [0], [0], [1], [0, 0, 1, 1], [], []>} : vector<32x32xf32>, vector<32x1024xf32>, vector<32x1024xf32> -> vector<32x1024xf32>
    %23 = vector.broadcast %21 : vector<32x1xf32> to vector<32x1024xf32>
    %24 = arith.addf %22, %23 : vector<32x1024xf32>
    %cst_19 = arith.constant 5.000000e-02 : f32
    %25 = vector.broadcast %cst_19 : f32 to vector<32x1024xf32>
    %26 = arith.mulf %25, %24 : vector<32x1024xf32>
    %27 = arith.maximumf %24, %26 : vector<32x1024xf32>
    %c64_20 = arith.constant 64 : index
    %c0_21 = arith.constant 0 : index
    %28 = vector.load %arg4[%c64_20, %c0_21] : memref<224x32xf32, #tpu.memory_space<vmem>>, vector<32x32xf32>
    %c96 = arith.constant 96 : index
    %c0_22 = arith.constant 0 : index
    %29 = vector.load %arg5[%c96, %c0_22] : memref<224x1xf32, #tpu.memory_space<vmem>>, vector<32x1xf32>
    %cst_23 = arith.constant dense<0.000000e+00> : vector<32x1024xf32>
    %30 = tpu.matmul %28, %27, %cst_23 {dimension_numbers = #tpu.dot_dimension_numbers<[1], [0], [0], [1], [0, 0, 1, 1], [], []>} : vector<32x32xf32>, vector<32x1024xf32>, vector<32x1024xf32> -> vector<32x1024xf32>
    %31 = vector.broadcast %29 : vector<32x1xf32> to vector<32x1024xf32>
    %32 = arith.addf %30, %31 : vector<32x1024xf32>
    %cst_24 = arith.constant 5.000000e-02 : f32
    %33 = vector.broadcast %cst_24 : f32 to vector<32x1024xf32>
    %34 = arith.mulf %33, %32 : vector<32x1024xf32>
    %35 = arith.maximumf %32, %34 : vector<32x1024xf32>
    %c96_25 = arith.constant 96 : index
    %c0_26 = arith.constant 0 : index
    %36 = vector.load %arg4[%c96_25, %c0_26] : memref<224x32xf32, #tpu.memory_space<vmem>>, vector<32x32xf32>
    %c128 = arith.constant 128 : index
    %c0_27 = arith.constant 0 : index
    %37 = vector.load %arg5[%c128, %c0_27] : memref<224x1xf32, #tpu.memory_space<vmem>>, vector<32x1xf32>
    %cst_28 = arith.constant dense<0.000000e+00> : vector<32x128xf32>
    %38 = tpu.matmul %36, %3, %cst_28 {dimension_numbers = #tpu.dot_dimension_numbers<[1], [0], [0], [1], [0, 0, 1, 1], [], []>} : vector<32x32xf32>, vector<32x128xf32>, vector<32x128xf32> -> vector<32x128xf32>
    %39 = vector.broadcast %37 : vector<32x1xf32> to vector<32x128xf32>
    %40 = arith.addf %38, %39 : vector<32x128xf32>
    %cst_29 = arith.constant 5.000000e-02 : f32
    %41 = vector.broadcast %cst_29 : f32 to vector<32x128xf32>
    %42 = arith.mulf %41, %40 : vector<32x128xf32>
    %43 = arith.maximumf %40, %42 : vector<32x128xf32>
    %c128_30 = arith.constant 128 : index
    %c0_31 = arith.constant 0 : index
    %44 = vector.load %arg4[%c128_30, %c0_31] : memref<224x32xf32, #tpu.memory_space<vmem>>, vector<32x32xf32>
    %c160 = arith.constant 160 : index
    %c0_32 = arith.constant 0 : index
    %45 = vector.load %arg5[%c160, %c0_32] : memref<224x1xf32, #tpu.memory_space<vmem>>, vector<32x1xf32>
    %cst_33 = arith.constant dense<0.000000e+00> : vector<32x128xf32>
    %46 = tpu.matmul %44, %43, %cst_33 {dimension_numbers = #tpu.dot_dimension_numbers<[1], [0], [0], [1], [0, 0, 1, 1], [], []>} : vector<32x32xf32>, vector<32x128xf32>, vector<32x128xf32> -> vector<32x128xf32>
    %47 = vector.broadcast %45 : vector<32x1xf32> to vector<32x128xf32>
    %48 = arith.addf %46, %47 : vector<32x128xf32>
    %cst_34 = arith.constant 5.000000e-02 : f32
    %49 = vector.broadcast %cst_34 : f32 to vector<32x128xf32>
    %50 = arith.mulf %49, %48 : vector<32x128xf32>
    %51 = arith.maximumf %48, %50 : vector<32x128xf32>
    %c0_35 = arith.constant 0 : index
    %c0_36 = arith.constant 0 : index
    %52 = vector.load %arg6[%c0_35, %c0_36] : memref<256x32xf32, #tpu.memory_space<vmem>>, vector<128x32xf32>
    %c0_37 = arith.constant 0 : index
    %c0_38 = arith.constant 0 : index
    %53 = vector.load %arg7[%c0_37, %c0_38] : memref<256x1xf32, #tpu.memory_space<vmem>>, vector<128x1xf32>
    %c128_39 = arith.constant 128 : index
    %c0_40 = arith.constant 0 : index
    %54 = vector.load %arg6[%c128_39, %c0_40] : memref<256x32xf32, #tpu.memory_space<vmem>>, vector<128x32xf32>
    %c128_41 = arith.constant 128 : index
    %c0_42 = arith.constant 0 : index
    %55 = vector.load %arg7[%c128_41, %c0_42] : memref<256x1xf32, #tpu.memory_space<vmem>>, vector<128x1xf32>
    %cst_43 = arith.constant dense<0.000000e+00> : vector<128x128xf32>
    %56 = tpu.matmul %54, %51, %cst_43 {dimension_numbers = #tpu.dot_dimension_numbers<[1], [0], [0], [1], [0, 0, 1, 1], [], []>} : vector<128x32xf32>, vector<32x128xf32>, vector<128x128xf32> -> vector<128x128xf32>
    %57 = vector.broadcast %55 : vector<128x1xf32> to vector<128x128xf32>
    %58 = arith.addf %56, %57 : vector<128x128xf32>
    %cst_44 = arith.constant 5.000000e-02 : f32
    %59 = vector.broadcast %cst_44 : f32 to vector<128x128xf32>
    %60 = arith.mulf %59, %58 : vector<128x128xf32>
    %61 = arith.maximumf %58, %60 : vector<128x128xf32>
    %cst_45 = arith.constant 0.0883883461 : f32
    %62 = vector.broadcast %cst_45 : f32 to vector<1x128xf32>
    %63 = vector.extract_strided_slice %35 {offsets = [0, 0], sizes = [32, 128], strides = [1, 1]} : vector<32x1024xf32> to vector<32x128xf32>
    %cst_46 = arith.constant dense<0.000000e+00> : vector<128x128xf32>
    %64 = tpu.matmul %52, %63, %cst_46 {dimension_numbers = #tpu.dot_dimension_numbers<[1], [0], [0], [1], [0, 0, 1, 1], [], []>} : vector<128x32xf32>, vector<32x128xf32>, vector<128x128xf32> -> vector<128x128xf32>
    %65 = vector.broadcast %53 : vector<128x1xf32> to vector<128x128xf32>
    %66 = arith.addf %64, %65 : vector<128x128xf32>
    %cst_47 = arith.constant 5.000000e-02 : f32
    %67 = vector.broadcast %cst_47 : f32 to vector<128x128xf32>
    %68 = arith.mulf %67, %66 : vector<128x128xf32>
    %69 = arith.maximumf %66, %68 : vector<128x128xf32>
    %70 = arith.mulf %69, %61 : vector<128x128xf32>
    %cst_48 = arith.constant dense<0.000000e+00> : vector<1x128xf32>
    %71 = tpu.matmul %62, %70, %cst_48 {dimension_numbers = #tpu.dot_dimension_numbers<[1], [0], [0], [1], [0, 0, 1, 1], [], []>} : vector<1x128xf32>, vector<128x128xf32>, vector<1x128xf32> -> vector<1x128xf32>
    %72 = vector.extract_strided_slice %35 {offsets = [0, 128], sizes = [32, 128], strides = [1, 1]} : vector<32x1024xf32> to vector<32x128xf32>
    %cst_49 = arith.constant dense<0.000000e+00> : vector<128x128xf32>
    %73 = tpu.matmul %52, %72, %cst_49 {dimension_numbers = #tpu.dot_dimension_numbers<[1], [0], [0], [1], [0, 0, 1, 1], [], []>} : vector<128x32xf32>, vector<32x128xf32>, vector<128x128xf32> -> vector<128x128xf32>
    %74 = vector.broadcast %53 : vector<128x1xf32> to vector<128x128xf32>
    %75 = arith.addf %73, %74 : vector<128x128xf32>
    %cst_50 = arith.constant 5.000000e-02 : f32
    %76 = vector.broadcast %cst_50 : f32 to vector<128x128xf32>
    %77 = arith.mulf %76, %75 : vector<128x128xf32>
    %78 = arith.maximumf %75, %77 : vector<128x128xf32>
    %79 = arith.mulf %78, %61 : vector<128x128xf32>
    %cst_51 = arith.constant dense<0.000000e+00> : vector<1x128xf32>
    %80 = tpu.matmul %62, %79, %cst_51 {dimension_numbers = #tpu.dot_dimension_numbers<[1], [0], [0], [1], [0, 0, 1, 1], [], []>} : vector<1x128xf32>, vector<128x128xf32>, vector<1x128xf32> -> vector<1x128xf32>
    %81 = vector.extract_strided_slice %35 {offsets = [0, 256], sizes = [32, 128], strides = [1, 1]} : vector<32x1024xf32> to vector<32x128xf32>
    %cst_52 = arith.constant dense<0.000000e+00> : vector<128x128xf32>
    %82 = tpu.matmul %52, %81, %cst_52 {dimension_numbers = #tpu.dot_dimension_numbers<[1], [0], [0], [1], [0, 0, 1, 1], [], []>} : vector<128x32xf32>, vector<32x128xf32>, vector<128x128xf32> -> vector<128x128xf32>
    %83 = vector.broadcast %53 : vector<128x1xf32> to vector<128x128xf32>
    %84 = arith.addf %82, %83 : vector<128x128xf32>
    %cst_53 = arith.constant 5.000000e-02 : f32
    %85 = vector.broadcast %cst_53 : f32 to vector<128x128xf32>
    %86 = arith.mulf %85, %84 : vector<128x128xf32>
    %87 = arith.maximumf %84, %86 : vector<128x128xf32>
    %88 = arith.mulf %87, %61 : vector<128x128xf32>
    %cst_54 = arith.constant dense<0.000000e+00> : vector<1x128xf32>
    %89 = tpu.matmul %62, %88, %cst_54 {dimension_numbers = #tpu.dot_dimension_numbers<[1], [0], [0], [1], [0, 0, 1, 1], [], []>} : vector<1x128xf32>, vector<128x128xf32>, vector<1x128xf32> -> vector<1x128xf32>
    %90 = vector.extract_strided_slice %35 {offsets = [0, 384], sizes = [32, 128], strides = [1, 1]} : vector<32x1024xf32> to vector<32x128xf32>
    %cst_55 = arith.constant dense<0.000000e+00> : vector<128x128xf32>
    %91 = tpu.matmul %52, %90, %cst_55 {dimension_numbers = #tpu.dot_dimension_numbers<[1], [0], [0], [1], [0, 0, 1, 1], [], []>} : vector<128x32xf32>, vector<32x128xf32>, vector<128x128xf32> -> vector<128x128xf32>
    %92 = vector.broadcast %53 : vector<128x1xf32> to vector<128x128xf32>
    %93 = arith.addf %91, %92 : vector<128x128xf32>
    %cst_56 = arith.constant 5.000000e-02 : f32
    %94 = vector.broadcast %cst_56 : f32 to vector<128x128xf32>
    %95 = arith.mulf %94, %93 : vector<128x128xf32>
    %96 = arith.maximumf %93, %95 : vector<128x128xf32>
    %97 = arith.mulf %96, %61 : vector<128x128xf32>
    %cst_57 = arith.constant dense<0.000000e+00> : vector<1x128xf32>
    %98 = tpu.matmul %62, %97, %cst_57 {dimension_numbers = #tpu.dot_dimension_numbers<[1], [0], [0], [1], [0, 0, 1, 1], [], []>} : vector<1x128xf32>, vector<128x128xf32>, vector<1x128xf32> -> vector<1x128xf32>
    %99 = vector.extract_strided_slice %35 {offsets = [0, 512], sizes = [32, 128], strides = [1, 1]} : vector<32x1024xf32> to vector<32x128xf32>
    %cst_58 = arith.constant dense<0.000000e+00> : vector<128x128xf32>
    %100 = tpu.matmul %52, %99, %cst_58 {dimension_numbers = #tpu.dot_dimension_numbers<[1], [0], [0], [1], [0, 0, 1, 1], [], []>} : vector<128x32xf32>, vector<32x128xf32>, vector<128x128xf32> -> vector<128x128xf32>
    %101 = vector.broadcast %53 : vector<128x1xf32> to vector<128x128xf32>
    %102 = arith.addf %100, %101 : vector<128x128xf32>
    %cst_59 = arith.constant 5.000000e-02 : f32
    %103 = vector.broadcast %cst_59 : f32 to vector<128x128xf32>
    %104 = arith.mulf %103, %102 : vector<128x128xf32>
    %105 = arith.maximumf %102, %104 : vector<128x128xf32>
    %106 = arith.mulf %105, %61 : vector<128x128xf32>
    %cst_60 = arith.constant dense<0.000000e+00> : vector<1x128xf32>
    %107 = tpu.matmul %62, %106, %cst_60 {dimension_numbers = #tpu.dot_dimension_numbers<[1], [0], [0], [1], [0, 0, 1, 1], [], []>} : vector<1x128xf32>, vector<128x128xf32>, vector<1x128xf32> -> vector<1x128xf32>
    %108 = vector.extract_strided_slice %35 {offsets = [0, 640], sizes = [32, 128], strides = [1, 1]} : vector<32x1024xf32> to vector<32x128xf32>
    %cst_61 = arith.constant dense<0.000000e+00> : vector<128x128xf32>
    %109 = tpu.matmul %52, %108, %cst_61 {dimension_numbers = #tpu.dot_dimension_numbers<[1], [0], [0], [1], [0, 0, 1, 1], [], []>} : vector<128x32xf32>, vector<32x128xf32>, vector<128x128xf32> -> vector<128x128xf32>
    %110 = vector.broadcast %53 : vector<128x1xf32> to vector<128x128xf32>
    %111 = arith.addf %109, %110 : vector<128x128xf32>
    %cst_62 = arith.constant 5.000000e-02 : f32
    %112 = vector.broadcast %cst_62 : f32 to vector<128x128xf32>
    %113 = arith.mulf %112, %111 : vector<128x128xf32>
    %114 = arith.maximumf %111, %113 : vector<128x128xf32>
    %115 = arith.mulf %114, %61 : vector<128x128xf32>
    %cst_63 = arith.constant dense<0.000000e+00> : vector<1x128xf32>
    %116 = tpu.matmul %62, %115, %cst_63 {dimension_numbers = #tpu.dot_dimension_numbers<[1], [0], [0], [1], [0, 0, 1, 1], [], []>} : vector<1x128xf32>, vector<128x128xf32>, vector<1x128xf32> -> vector<1x128xf32>
    %117 = vector.extract_strided_slice %35 {offsets = [0, 768], sizes = [32, 128], strides = [1, 1]} : vector<32x1024xf32> to vector<32x128xf32>
    %cst_64 = arith.constant dense<0.000000e+00> : vector<128x128xf32>
    %118 = tpu.matmul %52, %117, %cst_64 {dimension_numbers = #tpu.dot_dimension_numbers<[1], [0], [0], [1], [0, 0, 1, 1], [], []>} : vector<128x32xf32>, vector<32x128xf32>, vector<128x128xf32> -> vector<128x128xf32>
    %119 = vector.broadcast %53 : vector<128x1xf32> to vector<128x128xf32>
    %120 = arith.addf %118, %119 : vector<128x128xf32>
    %cst_65 = arith.constant 5.000000e-02 : f32
    %121 = vector.broadcast %cst_65 : f32 to vector<128x128xf32>
    %122 = arith.mulf %121, %120 : vector<128x128xf32>
    %123 = arith.maximumf %120, %122 : vector<128x128xf32>
    %124 = arith.mulf %123, %61 : vector<128x128xf32>
    %cst_66 = arith.constant dense<0.000000e+00> : vector<1x128xf32>
    %125 = tpu.matmul %62, %124, %cst_66 {dimension_numbers = #tpu.dot_dimension_numbers<[1], [0], [0], [1], [0, 0, 1, 1], [], []>} : vector<1x128xf32>, vector<128x128xf32>, vector<1x128xf32> -> vector<1x128xf32>
    %126 = vector.extract_strided_slice %35 {offsets = [0, 896], sizes = [32, 128], strides = [1, 1]} : vector<32x1024xf32> to vector<32x128xf32>
    %cst_67 = arith.constant dense<0.000000e+00> : vector<128x128xf32>
    %127 = tpu.matmul %52, %126, %cst_67 {dimension_numbers = #tpu.dot_dimension_numbers<[1], [0], [0], [1], [0, 0, 1, 1], [], []>} : vector<128x32xf32>, vector<32x128xf32>, vector<128x128xf32> -> vector<128x128xf32>
    %128 = vector.broadcast %53 : vector<128x1xf32> to vector<128x128xf32>
    %129 = arith.addf %127, %128 : vector<128x128xf32>
    %cst_68 = arith.constant 5.000000e-02 : f32
    %130 = vector.broadcast %cst_68 : f32 to vector<128x128xf32>
    %131 = arith.mulf %130, %129 : vector<128x128xf32>
    %132 = arith.maximumf %129, %131 : vector<128x128xf32>
    %133 = arith.mulf %132, %61 : vector<128x128xf32>
    %cst_69 = arith.constant dense<0.000000e+00> : vector<1x128xf32>
    %134 = tpu.matmul %62, %133, %cst_69 {dimension_numbers = #tpu.dot_dimension_numbers<[1], [0], [0], [1], [0, 0, 1, 1], [], []>} : vector<1x128xf32>, vector<128x128xf32>, vector<1x128xf32> -> vector<1x128xf32>
    %135 = arith.maximumf %71, %80 : vector<1x128xf32>
    %136 = arith.maximumf %135, %89 : vector<1x128xf32>
    %137 = arith.maximumf %136, %98 : vector<1x128xf32>
    %138 = arith.maximumf %137, %107 : vector<1x128xf32>
    %139 = arith.maximumf %138, %116 : vector<1x128xf32>
    %140 = arith.maximumf %139, %125 : vector<1x128xf32>
    %141 = arith.maximumf %140, %134 : vector<1x128xf32>
    %142 = arith.subf %71, %141 : vector<1x128xf32>
    %143 = math.exp %142 : vector<1x128xf32>
    %144 = vector.extract_strided_slice %35 {offsets = [0, 0], sizes = [32, 128], strides = [1, 1]} : vector<32x1024xf32> to vector<32x128xf32>
    %145 = vector.broadcast %143 : vector<1x128xf32> to vector<32x128xf32>
    %146 = arith.mulf %144, %145 : vector<32x128xf32>
    %147 = arith.subf %80, %141 : vector<1x128xf32>
    %148 = math.exp %147 : vector<1x128xf32>
    %149 = arith.addf %143, %148 : vector<1x128xf32>
    %150 = vector.extract_strided_slice %35 {offsets = [0, 128], sizes = [32, 128], strides = [1, 1]} : vector<32x1024xf32> to vector<32x128xf32>
    %151 = vector.broadcast %148 : vector<1x128xf32> to vector<32x128xf32>
    %152 = arith.mulf %150, %151 : vector<32x128xf32>
    %153 = arith.addf %146, %152 : vector<32x128xf32>
    %154 = arith.subf %89, %141 : vector<1x128xf32>
    %155 = math.exp %154 : vector<1x128xf32>
    %156 = arith.addf %149, %155 : vector<1x128xf32>
    %157 = vector.extract_strided_slice %35 {offsets = [0, 256], sizes = [32, 128], strides = [1, 1]} : vector<32x1024xf32> to vector<32x128xf32>
    %158 = vector.broadcast %155 : vector<1x128xf32> to vector<32x128xf32>
    %159 = arith.mulf %157, %158 : vector<32x128xf32>
    %160 = arith.addf %153, %159 : vector<32x128xf32>
    %161 = arith.subf %98, %141 : vector<1x128xf32>
    %162 = math.exp %161 : vector<1x128xf32>
    %163 = arith.addf %156, %162 : vector<1x128xf32>
    %164 = vector.extract_strided_slice %35 {offsets = [0, 384], sizes = [32, 128], strides = [1, 1]} : vector<32x1024xf32> to vector<32x128xf32>
    %165 = vector.broadcast %162 : vector<1x128xf32> to vector<32x128xf32>
    %166 = arith.mulf %164, %165 : vector<32x128xf32>
    %167 = arith.addf %160, %166 : vector<32x128xf32>
    %168 = arith.subf %107, %141 : vector<1x128xf32>
    %169 = math.exp %168 : vector<1x128xf32>
    %170 = arith.addf %163, %169 : vector<1x128xf32>
    %171 = vector.extract_strided_slice %35 {offsets = [0, 512], sizes = [32, 128], strides = [1, 1]} : vector<32x1024xf32> to vector<32x128xf32>
    %172 = vector.broadcast %169 : vector<1x128xf32> to vector<32x128xf32>
    %173 = arith.mulf %171, %172 : vector<32x128xf32>
    %174 = arith.addf %167, %173 : vector<32x128xf32>
    %175 = arith.subf %116, %141 : vector<1x128xf32>
    %176 = math.exp %175 : vector<1x128xf32>
    %177 = arith.addf %170, %176 : vector<1x128xf32>
    %178 = vector.extract_strided_slice %35 {offsets = [0, 640], sizes = [32, 128], strides = [1, 1]} : vector<32x1024xf32> to vector<32x128xf32>
    %179 = vector.broadcast %176 : vector<1x128xf32> to vector<32x128xf32>
    %180 = arith.mulf %178, %179 : vector<32x128xf32>
    %181 = arith.addf %174, %180 : vector<32x128xf32>
    %182 = arith.subf %125, %141 : vector<1x128xf32>
    %183 = math.exp %182 : vector<1x128xf32>
    %184 = arith.addf %177, %183 : vector<1x128xf32>
    %185 = vector.extract_strided_slice %35 {offsets = [0, 768], sizes = [32, 128], strides = [1, 1]} : vector<32x1024xf32> to vector<32x128xf32>
    %186 = vector.broadcast %183 : vector<1x128xf32> to vector<32x128xf32>
    %187 = arith.mulf %185, %186 : vector<32x128xf32>
    %188 = arith.addf %181, %187 : vector<32x128xf32>
    %189 = arith.subf %134, %141 : vector<1x128xf32>
    %190 = math.exp %189 : vector<1x128xf32>
    %191 = arith.addf %184, %190 : vector<1x128xf32>
    %192 = vector.extract_strided_slice %35 {offsets = [0, 896], sizes = [32, 128], strides = [1, 1]} : vector<32x1024xf32> to vector<32x128xf32>
    %193 = vector.broadcast %190 : vector<1x128xf32> to vector<32x128xf32>
    %194 = arith.mulf %192, %193 : vector<32x128xf32>
    %195 = arith.addf %188, %194 : vector<32x128xf32>
    %196 = tpu.reciprocal %191 {approx = true} : vector<1x128xf32> -> vector<1x128xf32>
    %197 = vector.broadcast %196 : vector<1x128xf32> to vector<32x128xf32>
    %198 = arith.mulf %195, %197 : vector<32x128xf32>
    %c160_70 = arith.constant 160 : index
    %c0_71 = arith.constant 0 : index
    %199 = vector.load %arg4[%c160_70, %c0_71] : memref<224x32xf32, #tpu.memory_space<vmem>>, vector<32x32xf32>
    %cst_72 = arith.constant dense<0.000000e+00> : vector<32x128xf32>
    %200 = tpu.matmul %199, %198, %cst_72 {dimension_numbers = #tpu.dot_dimension_numbers<[1], [0], [0], [1], [0, 0, 1, 1], [], []>} : vector<32x32xf32>, vector<32x128xf32>, vector<32x128xf32> -> vector<32x128xf32>
    %c192 = arith.constant 192 : index
    %c0_73 = arith.constant 0 : index
    %201 = vector.load %arg4[%c192, %c0_73] : memref<224x32xf32, #tpu.memory_space<vmem>>, vector<32x32xf32>
    %cst_74 = arith.constant dense<0.000000e+00> : vector<32x128xf32>
    %202 = tpu.matmul %201, %51, %cst_74 {dimension_numbers = #tpu.dot_dimension_numbers<[1], [0], [0], [1], [0, 0, 1, 1], [], []>} : vector<32x32xf32>, vector<32x128xf32>, vector<32x128xf32> -> vector<32x128xf32>
    %203 = arith.addf %200, %202 : vector<32x128xf32>
    %c192_75 = arith.constant 192 : index
    %c0_76 = arith.constant 0 : index
    %204 = vector.load %arg5[%c192_75, %c0_76] : memref<224x1xf32, #tpu.memory_space<vmem>>, vector<32x1xf32>
    %205 = vector.broadcast %204 : vector<32x1xf32> to vector<32x128xf32>
    %206 = arith.addf %203, %205 : vector<32x128xf32>
    %cst_77 = arith.constant 5.000000e-02 : f32
    %207 = vector.broadcast %cst_77 : f32 to vector<32x128xf32>
    %208 = arith.mulf %207, %206 : vector<32x128xf32>
    %209 = arith.maximumf %206, %208 : vector<32x128xf32>
    %c0_78 = arith.constant 0 : index
    %c0_79 = arith.constant 0 : index
    %210 = vector.load %arg8[%c0_78, %c0_79] : memref<1x32xf32, #tpu.memory_space<vmem>>, vector<1x32xf32>
    %cst_80 = arith.constant dense<0.000000e+00> : vector<1x128xf32>
    %211 = tpu.matmul %210, %209, %cst_80 {dimension_numbers = #tpu.dot_dimension_numbers<[1], [0], [0], [1], [0, 0, 1, 1], [], []>} : vector<1x32xf32>, vector<32x128xf32>, vector<1x128xf32> -> vector<1x128xf32>
    %c0_81 = arith.constant 0 : index
    %c0_82 = arith.constant 0 : index
    %212 = vector.load %arg9[%c0_81, %c0_82] : memref<1x1xf32, #tpu.memory_space<vmem>>, vector<1x1xf32>
    %213 = vector.broadcast %212 : vector<1x1xf32> to vector<1x128xf32>
    %214 = arith.addf %211, %213 : vector<1x128xf32>
    %c0_83 = arith.constant 0 : index
    %c0_84 = arith.constant 0 : index
    %c0_85 = arith.constant 0 : index
    %215 = vector.load %arg10[%c0_83, %c0_84, %c0_85] : memref<1x1x128xf32, #tpu.memory_space<vmem>>, vector<1x1x128xf32>
    %216 = vector.shape_cast %215 : vector<1x1x128xf32> to vector<1x128xf32>
    %217 = vector.shape_cast %214 : vector<1x128xf32> to vector<1x1x128xf32>
    tpu.vector_store %arg10[%c0_83, %c0_84, %c0_85], %217 {strides = array<i32>} : memref<1x1x128xf32, #tpu.memory_space<vmem>>, vector<1x1x128xf32>,
    return
  }
  func.func @transform_0(%arg0: i32) -> (i32, i32, i32) {
    %c0_i32 = arith.constant 0 : i32
    %c0_i32_0 = arith.constant 0 : i32
    %c0_i32_1 = arith.constant 0 : i32
    return %arg0, %c0_i32, %c0_i32_0 : i32, i32, i32
  }
  func.func @transform_1(%arg0: i32) -> (i32, i32, i32) {
    %c0_i32 = arith.constant 0 : i32
    %c0_i32_0 = arith.constant 0 : i32
    %c0_i32_1 = arith.constant 0 : i32
    return %arg0, %c0_i32, %c0_i32_0 : i32, i32, i32
  }
  func.func @transform_2(%arg0: i32) -> (i32, i32) {
    %c0_i32 = arith.constant 0 : i32
    %c0_i32_0 = arith.constant 0 : i32
    %c0_i32_1 = arith.constant 0 : i32
    return %c0_i32, %c0_i32_0 : i32, i32
  }
  func.func @transform_3(%arg0: i32) -> (i32, i32) {
    %c0_i32 = arith.constant 0 : i32
    %c0_i32_0 = arith.constant 0 : i32
    %c0_i32_1 = arith.constant 0 : i32
    return %c0_i32, %c0_i32_0 : i32, i32
  }
  func.func @transform_4(%arg0: i32) -> (i32, i32) {
    %c0_i32 = arith.constant 0 : i32
    %c0_i32_0 = arith.constant 0 : i32
    %c0_i32_1 = arith.constant 0 : i32
    return %c0_i32, %c0_i32_0 : i32, i32
  }
  func.func @transform_5(%arg0: i32) -> (i32, i32) {
    %c0_i32 = arith.constant 0 : i32
    %c0_i32_0 = arith.constant 0 : i32
    %c0_i32_1 = arith.constant 0 : i32
    return %c0_i32, %c0_i32_0 : i32, i32
  }
  func.func @transform_6(%arg0: i32) -> (i32, i32) {
    %c0_i32 = arith.constant 0 : i32
    %c0_i32_0 = arith.constant 0 : i32
    %c0_i32_1 = arith.constant 0 : i32
    return %c0_i32, %c0_i32_0 : i32, i32
  }
  func.func @transform_7(%arg0: i32) -> (i32, i32) {
    %c0_i32 = arith.constant 0 : i32
    %c0_i32_0 = arith.constant 0 : i32
    %c0_i32_1 = arith.constant 0 : i32
    return %c0_i32, %c0_i32_0 : i32, i32
  }
  func.func @transform_8(%arg0: i32) -> (i32, i32) {
    %c0_i32 = arith.constant 0 : i32
    %c0_i32_0 = arith.constant 0 : i32
    %c0_i32_1 = arith.constant 0 : i32
    return %c0_i32, %c0_i32_0 : i32, i32
  }
  func.func @transform_9(%arg0: i32) -> (i32, i32, i32) {
    %c0_i32 = arith.constant 0 : i32
    %c0_i32_0 = arith.constant 0 : i32
    %c0_i32_1 = arith.constant 0 : i32
    return %arg0, %c0_i32, %c0_i32_0 : i32, i32, i32
  }
}

</mosaic_0001>

<bundles_post_ra>
// kernel: tpu_custom_call.1
= control target key start
LH: loop header
LB: loop body
LE: loop exit
PB: predicated region body
PF: predicated region fallthrough
CT: control target
= control target key end

     0   :  { %s11201_s0 = inlined_call_operand.vmem [shape: f32[4,3,1024], index: 0, kind: input, shape index: {}]   ;;  %s11202_s1 = inlined_call_operand.vmem [shape: f32[4,32,128], index: 1, kind: input, shape index: {}]   ;;  %s11203_s2 = inlined_call_operand.vmem [shape: f32[32,3], index: 2, kind: input, shape index: {}]   ;;  %s11204_s3 = inlined_call_operand.vmem [shape: f32[224,32], index: 3, kind: input, shape index: {}]   ;;  %s11205_s4 = inlined_call_operand.vmem [shape: f32[224,1], index: 4, kind: input, shape index: {}]   ;;  %s11206_s5 = inlined_call_operand.vmem [shape: f32[256,32], index: 5, kind: input, shape index: {}]   ;;  %s11207_s6 = inlined_call_operand.vmem [shape: f32[256,1], index: 6, kind: input, shape index: {}]   ;;  %s11208_s7 = inlined_call_operand.vmem [shape: f32[1,32], index: 7, kind: input, shape index: {}]   ;;  %s11209_s8 = inlined_call_operand.<no memory space> [shape: f32[1,1], index: 8, kind: input, shape index: {}]   ;;  %s11210_s9 = inlined_call_operand.hbm [shape: f32[4,1,128], index: 9, kind: output, shape index: {}]  }
   0x1   :  { %v14_v0 = vstv %s11209_s8 }
   0x2   :  { %15 = vst [vmem:[#allocation2] sm:$0x1] %v14_v0 }
   0x3   :  { %16 = vsyncpa [#allocation4], 0 }
   0x4   :  { %18 = vsyncpa [#allocation4 + $0x1], 0  ;;  %s7463_s11 = smov 0   ;;  %s7465_s12 = smov 0  }
   0x5   :  { %s7467_s13 = smov 0   ;;  %s7469_s14 = smov 0  }
   0x6 LB: > { %s7484_s8 = sadd.s32 4294967295, %s7402_s14   ;;  %s5636_s15 = sadd.s32 4294967294, %s7402_s14   ;;  %s7402_s14 = sphi %s7469_s14, %s12374_s14   ;;  %s7398_s13 = sphi %s7467_s13, %s12373_s13   ;;  %s7394_s12 = sphi %s7465_s12, %s12372_s12   ;;  %s7390_s11 = sphi %s7463_s11, %s12371_s11  }
   0x7   : > { %s7488_s16 = sadd.s32 1, %s7402_s14   ;;  %s230_s17 = sadd.s32 1, %s7398_s13 }
   0x8   : > { %s227_s18 = ssub.s32 %s7402_s14, %s7488_s16  ;;  %p240_p0 = scmp.ne.s32.totalorder %s7398_s13, %s7394_s12 }
   0x9   : > { %p228_p1 = scmp.eq.s32.totalorder %s227_s18, 0  ;;  %p241_p2 = scmp.eq.s32.totalorder %s7484_s8, 3 }
   0xa   : > { %p246_p3 = scmp.ne.s32.totalorder %s7394_s12, %s7390_s11  ;;  %p247_p4 = scmp.eq.s32.totalorder %s5636_s15, 3 }
   0xb   : > { %s7499_s19 = scalar_select %p228_p1, %s7398_s13, %s230_s17  }
   0xc   : > { %p7501_p5 = por %p241_p2, %p240_p0  ;;  %p7505_p6 = por %p247_p4, %p246_p3 }
   0xd   : > { %p5639_p7 = scmp.ge.s32.totalorder %s7402_s14, 1  ;;  %p302_p8 = scmp.lt.s32.totalorder %s7402_s14, 5 }
   0xf   : > { %p303_p9 = pnand %p5639_p7, %p302_p8 }
  0x11   : > { %306 = sbr.rel (%p303_p9) target bundleno = 2497 (0x9c1), region = 56 }
  0x18   : > { %v366_v1 = vld [vmem:[%s11205_s4 + $0x10] sm:$0xff]  ;;  %v364_v2 = vld [vmem:[%s11205_s4] sm:$0xff]  ;;  %p342_p10 = scmp.lt.s32.totalorder %s7484_s8, 3  ;;  %v7404_v3 = vmov 0   ;;  %v367_v4 = vld [vmem:[%s11205_s4 + $0x18] sm:$0xff]  ;;  %v11211_v6 = vmov 0.0  }
  0x19   : > { %7317 = vset.pattern.permute.xlu1 %v7404_v3  ;;  %7316 = vset.pattern.permute.xlu0 %v7404_v3  ;;  %v365_v5 = vld [vmem:[%s11205_s4 + $0x8] sm:$0xff]  ;;  %vm409_vm0 = vcmask 1042432   ;;  %v850_v12 = vld [vmem:[%s11205_s4 + $0x20] sm:$0xff]  ;;  %vm396_vm1 = vcmask 23552   ;;  %v853_v16 = vld [vmem:[%s11205_s4 + $0x38] sm:$0xff]  ;;  %vm874_vm2 = vcmask 261120  }
  0x1a   : > { %380 = vperm.xlu1 %7317, %v366_v1   ;;  %370 = vperm.xlu0 %7316, %v364_v2   ;;  %s7519_s26 = scalar_select %p342_p10, %s7484_s8, 3  ;;  %v851_v11 = vld [vmem:[%s11205_s4 + $0x28] sm:$0xff]  ;;  %v360_v15 = vld [vmem:[%s11203_s2] sm:$0xff]  ;;  %v852_v17 = vld [vmem:[%s11205_s4 + $0x30] sm:$0xff]  ;;  %vm7407_vm3 = vmmov 0  }
  0x1b   : > { %490 = vmatprep.mubr.f32.mxu0 %v11211_v6  ;;  %579 = vmatprep.mubr.f32.mxu1 %v11211_v6  ;;  %v361_v20 = vld [vmem:[%s11203_s2 + $0x8] sm:$0xff]  ;;  %v1311_v22 = vld [vmem:[%s11205_s4 + $0x40] sm:$0xff]  ;;  %v362_v23 = vld [vmem:[%s11203_s2 + $0x10] sm:$0xff]  ;;  %s340_s17 = sand.u32 1, %s7394_s12   ;;  %s7409_s27 = smov [#allocation3]  }
  0x1c   : > { %s5880_s10 = sshll.u32 %s7519_s26, 5  ;;  %v1312_v21 = vld [vmem:[%s11205_s4 + $0x48] sm:$0xff]  ;;  %v1314_v24 = vld [vmem:[%s11205_s4 + $0x58] sm:$0xff]  ;;  %v1313_v25 = vld [vmem:[%s11205_s4 + $0x50] sm:$0xff]  ;;  %s341_s22 = scalar_lea.vmem [#allocation3], %s340_s17 }
  0x1d   : > { %s346_s18 = scalar_lea.vmem %s11201_s0, %s5880_s10  ;;  %v363_v26 = vld [vmem:[%s11203_s2 + $0x18] sm:$0xff]  ;;  %v2232_v27 = vld [vmem:[%s11205_s4 + $0x88] sm:$0xff]  ;;  %v2231_v28 = vld [vmem:[%s11205_s4 + $0x80] sm:$0xff]  ;;  %s8007_s23 = scalar_lea.vmem %s11202_s1, %s5880_s10 }
  0x1e   : > { %385 = vperm.xlu1 %7317, %v367_v4   ;;  %375 = vperm.xlu0 %7316, %v365_v5   ;;  %v352_v7 = vld [vmem:[%s346_s18] sm:$0x77]  ;;  %v353_v8 = vld [vmem:[%s346_s18 + $0x8] sm:$0x77]  ;;  %v354_v13 = vld [vmem:[%s346_s18 + $0x10] sm:$0x77] }
  0x1f   : > { %v392_v9 = vcombine.high %v352_v7, %v352_v7  ;;  %v393_v10 = vcombine.high %v353_v8, %v353_v8  ;;  %v355_v14 = vld [vmem:[%s346_s18 + $0x18] sm:$0x77]  ;;  %v394_v18 = vcombine.high %v354_v13, %v354_v13  ;;  %v2233_v30 = vld [vmem:[%s11205_s4 + $0x90] sm:$0xff]  ;;  %v1772_v31 = vld [vmem:[%s11205_s4 + $0x68] sm:$0xff]  ;;  %s5877_s18 = sshll.u32 %s7484_s8, 4  ;;  %s5557_s25 = scalar_lea.sflag [#allocation4], %s340_s17 }
  0x20   : > { %v395_v19 = vcombine.high %v355_v14, %v355_v14  ;;  %v2234_v29 = vld [vmem:[%s11205_s4 + $0x98] sm:$0xff]  ;;  %v1771_v32 = vld [vmem:[%s11205_s4 + $0x60] sm:$0xff]  ;;  %v2365_v33 = vld [vmem:[%s11205_s4 + $0xa8] sm:$0xff]  ;;  %s11159_s24 = scalar_lea.hbm %s11210_s9, %s5877_s18  ;;  %s7344_s28 = sshll.u32 %s7409_s27, 4  ;;  %s7345_s28 = int_to_ptr.vmem [resolvable:$false] %s7344_s28 }
  0x21   : > { %5644 = vmatprep.subr.msk.mxu0 %vm409_vm0, %v392_v9  ;;  %5650 = vmatprep.subr.msk.mxu1 %vm409_vm0, %v393_v10  ;;  %v2364_v34 = vld [vmem:[%s11205_s4 + $0xa0] sm:$0xff]  ;;  %v1774_v35 = vld [vmem:[%s11205_s4 + $0x78] sm:$0xff]  ;;  %v1773_v36 = vld [vmem:[%s11205_s4 + $0x70] sm:$0xff]  ;;  %s7346_s29 = scalar_lea.vmem %s7345_s28, 32 }
  0x22   : > { %861 = vperm.xlu1 %7317, %v851_v11   ;;  %856 = vperm.xlu0 %7316, %v850_v12   ;;  %v2367_v37 = vld [vmem:[%s11205_s4 + $0xb8] sm:$0xff]  ;;  %v2366_v38 = vld [vmem:[%s11205_s4 + $0xb0] sm:$0xff]  ;;  %v2542_v39 = vld [vmem:[%s11207_s6 + $0x88] sm:$0xff] }
  0x23   : > { %5645 = vmatpush1.msk.msra.mxu0 %vm409_vm0, %v352_v7  ;;  %5651 = vmatpush1.msk.msra.mxu1 %vm409_vm0, %v353_v8  ;;  %v2541_v40 = vld [vmem:[%s11207_s6 + $0x80] sm:$0xff]  ;;  %v2510_v41 = vld [vmem:[%s11207_s6 + $0x8] sm:$0xff]  ;;  %v2544_v43 = vld [vmem:[%s11207_s6 + $0x98] sm:$0xff] }
  0x24   : > { %5646 = vmatmul.mubr.msk.f32.vlgmr.msra.gmra.mrb[0].mxu0 %vm396_vm1, %v360_v15  ;;  %5652 = vmatmul.mubr.msk.f32.vlgmr.msra.gmra.mrb[0].mxu1 %vm396_vm1, %v360_v15  ;;  %v2509_v42 = vld [vmem:[%s11207_s6] sm:$0xff]  ;;  %v2543_v44 = vld [vmem:[%s11207_s6 + $0x90] sm:$0xff]  ;;  %v2512_v45 = vld [vmem:[%s11207_s6 + $0x18] sm:$0xff] }
  0x25   : > { %496 = vmatprep.mubr.f32.mxu0 %v11211_v6  ;;  %585 = vmatprep.mubr.f32.mxu1 %v11211_v6  ;;  %v2511_v46 = vld [vmem:[%s11207_s6 + $0x10] sm:$0xff]  ;;  %v2546_v47 = vld [vmem:[%s11207_s6 + $0xa8] sm:$0xff]  ;;  %v2545_v48 = vld [vmem:[%s11207_s6 + $0xa0] sm:$0xff] }
  0x26   : > { %871 = vperm.xlu1 %7317, %v853_v16   ;;  %866 = vperm.xlu0 %7316, %v852_v17   ;;  %v2514_v49 = vld [vmem:[%s11207_s6 + $0x28] sm:$0xff]  ;;  %v2513_v50 = vld [vmem:[%s11207_s6 + $0x20] sm:$0xff]  ;;  %v2548_v51 = vld [vmem:[%s11207_s6 + $0xb8] sm:$0xff] }
  0x27   : > { %5656 = vmatprep.subr.msk.mxu0 %vm409_vm0, %v394_v18  ;;  %5662 = vmatprep.subr.msk.mxu1 %vm409_vm0, %v395_v19  ;;  %v2547_v52 = vld [vmem:[%s11207_s6 + $0xb0] sm:$0xff]  ;;  %v2516_v53 = vld [vmem:[%s11207_s6 + $0x38] sm:$0xff]  ;;  %v2550_v55 = vld [vmem:[%s11207_s6 + $0xc8] sm:$0xff] }
  0x28   : > { %5647 = vmatmul.mubr.msk.f32.gmra.mrb[2].mxu0 %vm396_vm1, %v361_v20  ;;  %5653 = vmatmul.mubr.msk.f32.gmra.mrb[2].mxu1 %vm396_vm1, %v361_v20  ;;  %v2515_v54 = vld [vmem:[%s11207_s6 + $0x30] sm:$0xff]  ;;  %v2549_v56 = vld [vmem:[%s11207_s6 + $0xc0] sm:$0xff]  ;;  %v2518_v57 = vld [vmem:[%s11207_s6 + $0x48] sm:$0xff] }
  0x29   : > { %502 = vmatprep.mubr.f32.mxu0 %v11211_v6  ;;  %591 = vmatprep.mubr.f32.mxu1 %v11211_v6  ;;  %v2517_v58 = vld [vmem:[%s11207_s6 + $0x40] sm:$0xff]  ;;  %v2552_v59 = vld [vmem:[%s11207_s6 + $0xd8] sm:$0xff]  ;;  %v2551_v60 = vld [vmem:[%s11207_s6 + $0xd0] sm:$0xff] }
  0x2a   : > { %1322 = vperm.xlu1 %7317, %v1312_v21   ;;  %1317 = vperm.xlu0 %7316, %v1311_v22   ;;  %v2520_v61 = vld [vmem:[%s11207_s6 + $0x58] sm:$0xff]  ;;  %v2519_v62 = vld [vmem:[%s11207_s6 + $0x50] sm:$0xff]  ;;  %v2554_v63 = vld [vmem:[%s11207_s6 + $0xe8] sm:$0xff] }
  0x2b   : > { %5657 = vmatpush1.msk.msra.mxu0 %vm409_vm0, %v354_v13  ;;  %5663 = vmatpush1.msk.msra.mxu1 %vm409_vm0, %v355_v14  ;;  %v2553_v0 = vld [vmem:[%s11207_s6 + $0xe0] sm:$0xff]  ;;  %v2522_v1 = vld [vmem:[%s11207_s6 + $0x68] sm:$0xff]  ;;  %v2556_v3 = vld [vmem:[%s11207_s6 + $0xf8] sm:$0xff] }
  0x2c   : > { %5648 = vmatmul.mubr.msk.f32.gmra.mrb[4].mxu0 %vm396_vm1, %v362_v23  ;;  %5654 = vmatmul.mubr.msk.f32.gmra.mrb[4].mxu1 %vm396_vm1, %v362_v23  ;;  %v2521_v2 = vld [vmem:[%s11207_s6 + $0x60] sm:$0xff]  ;;  %v2555_v4 = vld [vmem:[%s11207_s6 + $0xf0] sm:$0xff]  ;;  %v2524_v5 = vld [vmem:[%s11207_s6 + $0x78] sm:$0xff] }
  0x2d   : > { %508 = vmatprep.mubr.f32.mxu0 %v11211_v6  ;;  %597 = vmatprep.mubr.f32.mxu1 %v11211_v6  ;;  %v2523_v7 = vld [vmem:[%s11207_s6 + $0x70] sm:$0xff]  ;;  %v5436_v8 = vld [vmem:[%s11205_s4 + $0xc8] sm:$0xff]  ;;  %v5435_v9 = vld [vmem:[%s11205_s4 + $0xc0] sm:$0xff] }
  0x2e   : > { %1332 = vperm.xlu1 %7317, %v1314_v24   ;;  %1327 = vperm.xlu0 %7316, %v1313_v25   ;;  %v5438_v10 = vld [vmem:[%s11205_s4 + $0xd8] sm:$0xff]  ;;  %v5437_v11 = vld [vmem:[%s11205_s4 + $0xd0] sm:$0xff]  ;;  %v5472_v12 = vld [vmem:[#allocation2] sm:$0x1] }
  0x30   : > { %5649 = vmatmul.mubr.msk.f32.gmra.mrb[6].mxu0 %vm396_vm1, %v363_v26  ;;  %5655 = vmatmul.mubr.msk.f32.gmra.mrb[6].mxu1 %vm396_vm1, %v363_v26 }
  0x31   : > { %668 = vmatprep.mubr.f32.mxu0 %v11211_v6  ;;  %757 = vmatprep.mubr.f32.mxu1 %v11211_v6 }
  0x32   : > { %2242 = vperm.xlu1 %7317, %v2232_v27   ;;  %2237 = vperm.xlu0 %7316, %v2231_v28  }
  0x34   : > { %5658 = vmatmul.mubr.msk.f32.vlgmr.msra.gmra.mrb[8].mxu0 %vm396_vm1, %v360_v15  ;;  %5664 = vmatmul.mubr.msk.f32.vlgmr.msra.gmra.mrb[8].mxu1 %vm396_vm1, %v360_v15 }
  0x35   : > { %674 = vmatprep.mubr.f32.mxu0 %v11211_v6  ;;  %763 = vmatprep.mubr.f32.mxu1 %v11211_v6 }
  0x36   : > { %2252 = vperm.xlu1 %7317, %v2234_v29   ;;  %2247 = vperm.xlu0 %7316, %v2233_v30  }
  0x38   : > { %5659 = vmatmul.mubr.msk.f32.gmra.mrb[10].mxu0 %vm396_vm1, %v361_v20  ;;  %5665 = vmatmul.mubr.msk.f32.gmra.mrb[10].mxu1 %vm396_vm1, %v361_v20 }
  0x39   : > { %680 = vmatprep.mubr.f32.mxu0 %v11211_v6  ;;  %769 = vmatprep.mubr.f32.mxu1 %v11211_v6 }
  0x3a   : > { %1782 = vperm.xlu1 %7317, %v1772_v31   ;;  %1777 = vperm.xlu0 %7316, %v1771_v32  }
  0x3c   : > { %5660 = vmatmul.mubr.msk.f32.gmra.mrb[12].mxu0 %vm396_vm1, %v362_v23  ;;  %5666 = vmatmul.mubr.msk.f32.gmra.mrb[12].mxu1 %vm396_vm1, %v362_v23 }
  0x3d   : > { %686 = vmatprep.mubr.f32.mxu0 %v11211_v6  ;;  %775 = vmatprep.mubr.f32.mxu1 %v11211_v6 }
  0x3e   : > { %2375 = vperm.xlu1 %7317, %v2365_v33   ;;  %2370 = vperm.xlu0 %7316, %v2364_v34  }
  0x40   : > { %5661 = vmatmul.mubr.msk.f32.gmra.mrb[14].mxu0 %vm396_vm1, %v363_v26  ;;  %5667 = vmatmul.mubr.msk.f32.gmra.mrb[14].mxu1 %vm396_vm1, %v363_v26 }
  0x41   : > { %951 = vmatprep.mubr.f32.mxu0 %v11211_v6  ;;  %1040 = vmatprep.mubr.f32.mxu1 %v11211_v6 }
  0x42   : > { %1792 = vperm.xlu1 %7317, %v1774_v35   ;;  %1787 = vperm.xlu0 %7316, %v1773_v36  }
  0x46   : > { %2385 = vperm.xlu1 %7317, %v2367_v37   ;;  %2380 = vperm.xlu0 %7316, %v2366_v38  }
  0x4a   : > { %2564 = vperm.xlu1 %7317, %v2542_v39   ;;  %2559 = vperm.xlu0 %7316, %v2541_v40  }
  0x4e   : > { %2869 = vperm.xlu1 %7317, %v2510_v41   ;;  %2864 = vperm.xlu0 %7316, %v2509_v42  }
  0x52   : > { %2574 = vperm.xlu1 %7317, %v2544_v43   ;;  %2569 = vperm.xlu0 %7316, %v2543_v44  }
  0x56   : > { %2879 = vperm.xlu1 %7317, %v2512_v45   ;;  %2874 = vperm.xlu0 %7316, %v2511_v46  }
  0x5a   : > { %2584 = vperm.xlu1 %7317, %v2546_v47   ;;  %2579 = vperm.xlu0 %7316, %v2545_v48  }
  0x5e   : > { %2889 = vperm.xlu1 %7317, %v2514_v49   ;;  %2884 = vperm.xlu0 %7316, %v2513_v50  }
  0x62   : > { %2594 = vperm.xlu1 %7317, %v2548_v51   ;;  %2589 = vperm.xlu0 %7316, %v2547_v52  }
  0x66   : > { %2899 = vperm.xlu1 %7317, %v2516_v53   ;;  %2894 = vperm.xlu0 %7316, %v2515_v54  }
  0x6a   : > { %2604 = vperm.xlu1 %7317, %v2550_v55   ;;  %2599 = vperm.xlu0 %7316, %v2549_v56  }
  0x6e   : > { %2909 = vperm.xlu1 %7317, %v2518_v57   ;;  %2904 = vperm.xlu0 %7316, %v2517_v58  }
  0x72   : > { %2614 = vperm.xlu1 %7317, %v2552_v59   ;;  %2609 = vperm.xlu0 %7316, %v2551_v60  }
  0x76   : > { %2919 = vperm.xlu1 %7317, %v2520_v61   ;;  %2914 = vperm.xlu0 %7316, %v2519_v62  }
  0x7a   : > { %2624 = vperm.xlu1 %7317, %v2554_v63   ;;  %2619 = vperm.xlu0 %7316, %v2553_v0  }
  0x7e   : > { %2929 = vperm.xlu1 %7317, %v2522_v1   ;;  %2924 = vperm.xlu0 %7316, %v2521_v2  }
  0x82   : > { %2634 = vperm.xlu1 %7317, %v2556_v3   ;;  %2629 = vperm.xlu0 %7316, %v2555_v4  }
  0x86   : > { %2939 = vperm.xlu1 %7317, %v2524_v5   ;;  %2934 = vperm.xlu0 %7316, %v2523_v7  }
  0x8a   : > { %5446 = vperm.xlu1 %7317, %v5436_v8   ;;  %5441 = vperm.xlu0 %7316, %v5435_v9  }
  0x8e   : > { %5456 = vperm.xlu1 %7317, %v5438_v10   ;;  %5451 = vperm.xlu0 %7316, %v5437_v11  }
  0x92   : > { %5475 = vperm.xlu0 %7316, %v5472_v12  }
  0x99   : > { %v7755_v13 = vpop.permute.xlu0 %370  ;;  %v7761_v22 = vpop.permute.xlu1 %380 }
  0x9d   : > { %v7763_v23 = vpop.permute.xlu0 %375  ;;  %v7773_v56 = vpop.permute.xlu1 %385 }
  0xf7   : > { %v492_v14 = vpop.f32.mrb[0].mxu0  ;;  %v581_v15 = vpop.f32.mrb[0].mxu1 }
  0xf8   : > { %v493_v16 = vadd.f32 %v492_v14, %v7755_v13  ;;  %v494_v17 = vpop.f32.mrb[1].mxu0  ;;  %v582_v18 = vadd.f32 %v581_v15, %v7755_v13  ;;  %v583_v19 = vpop.f32.mrb[1].mxu1 }
  0xf9   : > { %v495_v20 = vadd.f32 %v494_v17, %v7755_v13  ;;  %v584_v21 = vadd.f32 %v583_v19, %v7755_v13 }
  0xfa   : > { %v782_v24 = vmul.f32 0.05, %v493_v16  ;;  %v784_v25 = vmul.f32 0.05, %v582_v18 }
  0xfb   : > { %v783_v26 = vmul.f32 0.05, %v495_v20  ;;  %v785_v27 = vmul.f32 0.05, %v584_v21  ;;  %v498_v28 = vpop.f32.mrb[2].mxu0  ;;  %v587_v29 = vpop.f32.mrb[2].mxu1 }
  0xfc   : > { %v499_v30 = vadd.f32 %v498_v28, %v7763_v23  ;;  %v588_v31 = vadd.f32 %v587_v29, %v7763_v23  ;;  %v500_v32 = vpop.f32.mrb[3].mxu0  ;;  %v589_v33 = vpop.f32.mrb[3].mxu1  ;;  %v814_v36 = vmax.f32 %v493_v16, %v782_v24  ;;  %v816_v37 = vmax.f32 %v582_v18, %v784_v25 }
  0xfd   : > { %v501_v34 = vadd.f32 %v500_v32, %v7763_v23  ;;  %v590_v35 = vadd.f32 %v589_v33, %v7763_v23  ;;  %v815_v40 = vmax.f32 %v495_v20, %v783_v26  ;;  %v817_v41 = vmax.f32 %v584_v21, %v785_v27 }
  0xfe   : > { %v790_v38 = vmul.f32 0.05, %v499_v30  ;;  %v792_v39 = vmul.f32 0.05, %v588_v31 }
  0xff   : > { %v791_v42 = vmul.f32 0.05, %v501_v34  ;;  %v793_v43 = vmul.f32 0.05, %v590_v35  ;;  %v504_v44 = vpop.f32.mrb[4].mxu0  ;;  %v593_v45 = vpop.f32.mrb[4].mxu1 }
 0x100   : > { %v822_v46 = vmax.f32 %v499_v30, %v790_v38  ;;  %v824_v47 = vmax.f32 %v588_v31, %v792_v39  ;;  %v505_v48 = vadd.f32 %v504_v44, %v7761_v22  ;;  %v594_v49 = vadd.f32 %v593_v45, %v7761_v22  ;;  %v506_v50 = vpop.f32.mrb[5].mxu0  ;;  %v595_v51 = vpop.f32.mrb[5].mxu1 }
 0x101   : > { %v823_v52 = vmax.f32 %v501_v34, %v791_v42  ;;  %v825_v53 = vmax.f32 %v590_v35, %v793_v43  ;;  %v507_v54 = vadd.f32 %v506_v50, %v7761_v22  ;;  %v596_v55 = vadd.f32 %v595_v51, %v7761_v22 }
 0x102   : > { %v6872_v57 = vpack.c.bf16 %v822_v46, %v814_v36  ;;  %v6880_v58 = vpack.c.bf16 %v824_v47, %v816_v37  ;;  %v798_v59 = vmul.f32 0.05, %v505_v48  ;;  %v800_v60 = vmul.f32 0.05, %v594_v49 }
 0x103   : > { %v799_v61 = vmul.f32 0.05, %v507_v54  ;;  %v510_v62 = vpop.f32.mrb[6].mxu0  ;;  %v599_v63 = vpop.f32.mrb[6].mxu1  ;;  %v6870_v0 = vpack.c.bf16 %v823_v52, %v815_v40  ;;  %v6878_v1 = vpack.c.bf16 %v825_v53, %v817_v41  ;;  %v801_v7 = vmul.f32 0.05, %v596_v55 }
 0x104   : > { %v511_v2 = vadd.f32 %v510_v62, %v7773_v56  ;;  %v600_v3 = vadd.f32 %v599_v63, %v7773_v56  ;;  %v512_v4 = vpop.f32.mrb[7].mxu0  ;;  %v601_v5 = vpop.f32.mrb[7].mxu1  ;;  %v830_v10 = vmax.f32 %v505_v48, %v798_v59  ;;  %v832_v14 = vmax.f32 %v594_v49, %v800_v60 }
 0x105   : > { %v513_v8 = vadd.f32 %v512_v4, %v7773_v56  ;;  %v602_v9 = vadd.f32 %v601_v5, %v7773_v56  ;;  %6871 = vmatprep.subr.bf16.mxu0 %v6870_v0  ;;  %6879 = vmatprep.subr.bf16.mxu1 %v6878_v1  ;;  %v831_v15 = vmax.f32 %v507_v54, %v799_v61 }
 0x106   : > { %v806_v11 = vmul.f32 0.05, %v511_v2  ;;  %v808_v12 = vmul.f32 0.05, %v600_v3  ;;  %6873 = vmatpush1.bf16.msra.mxu0 %v6872_v57  ;;  %6881 = vmatpush1.bf16.msra.mxu1 %v6880_v58  ;;  %v833_v28 = vmax.f32 %v596_v55, %v801_v7  ;;  %v847_v7 = vld [vmem:[%s11204_s3 + $0x8] sm:$0xff] }
 0x107   : > { %v807_v16 = vmul.f32 0.05, %v513_v8  ;;  %v809_v17 = vmul.f32 0.05, %v602_v9  ;;  %v670_v18 = vpop.f32.mrb[8].mxu0  ;;  %v759_v19 = vpop.f32.mrb[8].mxu1 }
 0x108   : > { %v838_v20 = vmax.f32 %v511_v2, %v806_v11  ;;  %v840_v21 = vmax.f32 %v600_v3, %v808_v12  ;;  %v671_v24 = vadd.f32 %v670_v18, %v7755_v13  ;;  %v760_v25 = vadd.f32 %v759_v19, %v7755_v13  ;;  %v672_v26 = vpop.f32.mrb[9].mxu0  ;;  %v761_v27 = vpop.f32.mrb[9].mxu1 }
 0x109   : > { %v839_v29 = vmax.f32 %v513_v8, %v807_v16  ;;  %v841_v30 = vmax.f32 %v602_v9, %v809_v17  ;;  %v673_v31 = vadd.f32 %v672_v26, %v7755_v13  ;;  %v7783_v34 = vadd.f32 %v761_v27, %v7755_v13  ;;  %v7792_v13 = vld [vmem:[%s11204_s3] sm:$0xff]  ;;  %v848_v27 = vld [vmem:[%s11204_s3 + $0x10] sm:$0xff] }
 0x10a   : > { %v6876_v32 = vpack.c.bf16 %v838_v20, %v830_v10  ;;  %v6884_v33 = vpack.c.bf16 %v840_v21, %v832_v14  ;;  %v786_v35 = vmul.f32 0.05, %v671_v24  ;;  %v788_v36 = vmul.f32 0.05, %v760_v25 }
 0x10b   : > { %v676_v37 = vpop.f32.mrb[10].mxu0  ;;  %v765_v38 = vpop.f32.mrb[10].mxu1  ;;  %v6874_v39 = vpack.c.bf16 %v839_v29, %v831_v15  ;;  %v6882_v40 = vpack.c.bf16 %v841_v30, %v833_v28  ;;  %v787_v45 = vmul.f32 0.05, %v673_v31  ;;  %v789_v48 = vmul.f32 0.05, %v7783_v34 }
 0x10c   : > { %v677_v41 = vadd.f32 %v676_v37, %v7763_v23  ;;  %v766_v42 = vadd.f32 %v765_v38, %v7763_v23  ;;  %v678_v43 = vpop.f32.mrb[11].mxu0  ;;  %v767_v44 = vpop.f32.mrb[11].mxu1  ;;  %v818_v51 = vmax.f32 %v671_v24, %v786_v35  ;;  %v820_v52 = vmax.f32 %v760_v25, %v788_v36 }
 0x10d   : > { %v679_v46 = vadd.f32 %v678_v43, %v7763_v23  ;;  %v768_v47 = vadd.f32 %v767_v44, %v7763_v23  ;;  %6875 = vmatprep.subr.bf16.mxu0 %v6874_v39  ;;  %6883 = vmatprep.subr.bf16.mxu1 %v6882_v40  ;;  %v819_v63 = vmax.f32 %v673_v31, %v787_v45  ;;  %v849_v39 = vld [vmem:[%s11204_s3 + $0x18] sm:$0xff] }
 0x10e   : > { %v794_v49 = vmul.f32 0.05, %v677_v41  ;;  %v796_v50 = vmul.f32 0.05, %v766_v42  ;;  %6877 = vmatpush1.bf16.msra.mxu0 %v6876_v32  ;;  %6885 = vmatpush1.bf16.msra.mxu1 %v6884_v33  ;;  %v821_v12 = vmax.f32 %v7783_v34, %v789_v48 }
 0x10f   : > { %v795_v53 = vmul.f32 0.05, %v679_v46  ;;  %v797_v54 = vmul.f32 0.05, %v768_v47  ;;  %v682_v55 = vpop.f32.mrb[12].mxu0  ;;  %v771_v23 = vpop.f32.mrb[12].mxu1 }
 0x110   : > { %v826_v57 = vmax.f32 %v677_v41, %v794_v49  ;;  %v828_v58 = vmax.f32 %v766_v42, %v796_v50  ;;  %v683_v59 = vadd.f32 %v682_v55, %v7761_v22  ;;  %v772_v60 = vadd.f32 %v771_v23, %v7761_v22  ;;  %v684_v61 = vpop.f32.mrb[13].mxu0  ;;  %v773_v62 = vpop.f32.mrb[13].mxu1 }
 0x111   : > { %v827_v0 = vmax.f32 %v679_v46, %v795_v53  ;;  %v685_v1 = vadd.f32 %v684_v61, %v7761_v22  ;;  %v774_v2 = vadd.f32 %v773_v62, %v7761_v22  ;;  %5668 = vmatmul.mubr.msk.f32.vlgmr.msra.gmra.mrb[16].mxu0 %vm874_vm2, %v7792_v13  ;;  %v829_v5 = vmax.f32 %v768_v47, %v797_v54  ;;  %v7849_v42 = vpop.permute.xlu0 %856  ;;  %v7855_v50 = vpop.permute.xlu1 %861 }
 0x112   : > { %v6888_v3 = vpack.c.bf16 %v826_v57, %v818_v51  ;;  %v6896_v4 = vpack.c.bf16 %v828_v58, %v820_v52  ;;  %5672 = vmatmul.mubr.msk.f32.vlgmr.msra.gmra.mrb[16].mxu1 %vm874_vm2, %v7792_v13  ;;  %957 = vmatprep.mubr.f32.mxu0 %v11211_v6  ;;  %v802_v8 = vmul.f32 0.05, %v683_v59  ;;  %v804_v9 = vmul.f32 0.05, %v772_v60 }
 0x113   : > { %v688_v10 = vpop.f32.mrb[14].mxu0  ;;  %v777_v11 = vpop.f32.mrb[14].mxu1  ;;  %1046 = vmatprep.mubr.f32.mxu1 %v11211_v6  ;;  %v6886_v22 = vpack.c.bf16 %v827_v0, %v819_v63  ;;  %v803_v14 = vmul.f32 0.05, %v685_v1  ;;  %v805_v19 = vmul.f32 0.05, %v774_v2  ;;  %v6894_v26 = vpack.c.bf16 %v829_v5, %v821_v12 }
 0x114   : > { %v689_v15 = vadd.f32 %v688_v10, %v7773_v56  ;;  %v778_v16 = vadd.f32 %v777_v11, %v7773_v56  ;;  %v690_v17 = vpop.f32.mrb[15].mxu0  ;;  %v779_v18 = vpop.f32.mrb[15].mxu1  ;;  %v834_v28 = vmax.f32 %v683_v59, %v802_v8  ;;  %v836_v29 = vmax.f32 %v772_v60, %v804_v9 }
 0x115   : > { %v691_v20 = vadd.f32 %v690_v17, %v7773_v56  ;;  %v780_v21 = vadd.f32 %v779_v18, %v7773_v56  ;;  %5669 = vmatmul.mubr.msk.f32.gmra.mrb[18].mxu0 %vm874_vm2, %v847_v7  ;;  %6887 = vmatprep.subr.bf16.mxu0 %v6886_v22  ;;  %v835_v56 = vmax.f32 %v685_v1, %v803_v14  ;;  %v7861_v0 = vpop.permute.xlu0 %866 }
 0x116   : > { %v810_v24 = vmul.f32 0.05, %v689_v15  ;;  %v812_v25 = vmul.f32 0.05, %v778_v16  ;;  %5673 = vmatmul.mubr.msk.f32.gmra.mrb[18].mxu1 %vm874_vm2, %v847_v7  ;;  %6889 = vmatpush1.bf16.msra.mxu0 %v6888_v3  ;;  %v837_v34 = vmax.f32 %v774_v2, %v805_v19 }
 0x117   : > { %v811_v30 = vmul.f32 0.05, %v691_v20  ;;  %v813_v31 = vmul.f32 0.05, %v780_v21  ;;  %963 = vmatprep.mubr.f32.mxu0 %v11211_v6  ;;  %6895 = vmatprep.subr.bf16.mxu1 %v6894_v26 }
 0x118   : > { %v842_v32 = vmax.f32 %v689_v15, %v810_v24  ;;  %v844_v33 = vmax.f32 %v778_v16, %v812_v25  ;;  %1052 = vmatprep.mubr.f32.mxu1 %v11211_v6  ;;  %6897 = vmatpush1.bf16.msra.mxu1 %v6896_v4  ;;  %v7867_v24 = vpop.permute.xlu1 %871 }
 0x119   : > { %v843_v35 = vmax.f32 %v691_v20, %v811_v30  ;;  %v845_v36 = vmax.f32 %v780_v21, %v813_v31  ;;  %5670 = vmatmul.mubr.msk.f32.gmra.mrb[20].mxu0 %vm874_vm2, %v848_v27 }
 0x11a   : > { %v6892_v37 = vpack.c.bf16 %v842_v32, %v834_v28  ;;  %v6900_v38 = vpack.c.bf16 %v844_v33, %v836_v29  ;;  %5674 = vmatmul.mubr.msk.f32.gmra.mrb[20].mxu1 %vm874_vm2, %v848_v27  ;;  %969 = vmatprep.mubr.f32.mxu0 %v11211_v6 }
 0x11b   : > { %1058 = vmatprep.mubr.f32.mxu1 %v11211_v6  ;;  %v6890_v40 = vpack.c.bf16 %v843_v35, %v835_v56  ;;  %v6898_v41 = vpack.c.bf16 %v845_v36, %v837_v34 }
 0x11d   : > { %5671 = vmatmul.mubr.msk.f32.gmra.mrb[22].mxu0 %vm874_vm2, %v849_v39  ;;  %6891 = vmatprep.subr.bf16.mxu0 %v6890_v40 }
 0x11e   : > { %5675 = vmatmul.mubr.msk.f32.gmra.mrb[22].mxu1 %vm874_vm2, %v849_v39  ;;  %6899 = vmatprep.subr.bf16.mxu1 %v6898_v41 }
 0x11f   : > { %6893 = vmatpush1.bf16.msra.mxu0 %v6892_v37  ;;  %6901 = vmatpush1.bf16.msra.mxu1 %v6900_v38 }
 0x120   : > { %1129 = vmatprep.mubr.f32.mxu0 %v11211_v6  ;;  %1218 = vmatprep.mubr.f32.mxu1 %v11211_v6 }
 0x122   : > { %5676 = vmatmul.mubr.msk.f32.vlgmr.msra.gmra.mrb[24].mxu0 %vm874_vm2, %v7792_v13  ;;  %5680 = vmatmul.mubr.msk.f32.vlgmr.msra.gmra.mrb[24].mxu1 %vm874_vm2, %v7792_v13 }
 0x123   : > { %1135 = vmatprep.mubr.f32.mxu0 %v11211_v6  ;;  %1224 = vmatprep.mubr.f32.mxu1 %v11211_v6 }
 0x126   : > { %5677 = vmatmul.mubr.msk.f32.gmra.mrb[26].mxu0 %vm874_vm2, %v847_v7  ;;  %5681 = vmatmul.mubr.msk.f32.gmra.mrb[26].mxu1 %vm874_vm2, %v847_v7 }
 0x127   : > { %1141 = vmatprep.mubr.f32.mxu0 %v11211_v6  ;;  %1230 = vmatprep.mubr.f32.mxu1 %v11211_v6 }
 0x12a   : > { %5678 = vmatmul.mubr.msk.f32.gmra.mrb[28].mxu0 %vm874_vm2, %v848_v27  ;;  %5682 = vmatmul.mubr.msk.f32.gmra.mrb[28].mxu1 %vm874_vm2, %v848_v27 }
 0x12b   : > { %1147 = vmatprep.mubr.f32.mxu0 %v11211_v6  ;;  %1236 = vmatprep.mubr.f32.mxu1 %v11211_v6 }
 0x12e   : > { %5679 = vmatmul.mubr.msk.f32.gmra.mrb[30].mxu0 %vm874_vm2, %v849_v39  ;;  %5683 = vmatmul.mubr.msk.f32.gmra.mrb[30].mxu1 %vm874_vm2, %v849_v39 }
 0x12f   : > { %1411 = vmatprep.mubr.f32.mxu0 %v11211_v6  ;;  %1500 = vmatprep.mubr.f32.mxu1 %v11211_v6 }
 0x1e4   : > { %v953_v43 = vpop.f32.mrb[16].mxu0 }
 0x1e5   : > { %v954_v44 = vadd.f32 %v953_v43, %v7849_v42  ;;  %v1042_v45 = vpop.f32.mrb[16].mxu1  ;;  %v955_v46 = vpop.f32.mrb[17].mxu0 }
 0x1e6   : > { %v1043_v47 = vadd.f32 %v1042_v45, %v7849_v42  ;;  %v956_v13 = vadd.f32 %v955_v46, %v7849_v42  ;;  %v1044_v48 = vpop.f32.mrb[17].mxu1 }
 0x1e7   : > { %v1045_v49 = vadd.f32 %v1044_v48, %v7849_v42  ;;  %v1243_v51 = vmul.f32 0.05, %v954_v44 }
 0x1e8   : > { %v1245_v52 = vmul.f32 0.05, %v1043_v47  ;;  %v959_v53 = vpop.f32.mrb[18].mxu0  ;;  %v1244_v54 = vmul.f32 0.05, %v956_v13 }
 0x1e9   : > { %v960_v55 = vadd.f32 %v959_v53, %v7855_v50  ;;  %v1048_v23 = vpop.f32.mrb[18].mxu1  ;;  %v961_v57 = vpop.f32.mrb[19].mxu0  ;;  %v1246_v61 = vmul.f32 0.05, %v1045_v49  ;;  %v1275_v1 = vmax.f32 %v954_v44, %v1243_v51 }
 0x1ea   : > { %v1049_v58 = vadd.f32 %v1048_v23, %v7855_v50  ;;  %v962_v59 = vadd.f32 %v961_v57, %v7855_v50  ;;  %v1050_v60 = vpop.f32.mrb[19].mxu1  ;;  %v1277_v2 = vmax.f32 %v1043_v47, %v1245_v52  ;;  %v1276_v7 = vmax.f32 %v956_v13, %v1244_v54 }
 0x1eb   : > { %v1251_v62 = vmul.f32 0.05, %v960_v55  ;;  %v1051_v63 = vadd.f32 %v1050_v60, %v7855_v50  ;;  %v1278_v18 = vmax.f32 %v1045_v49, %v1246_v61 }
 0x1ec   : > { %v1253_v3 = vmul.f32 0.05, %v1049_v58  ;;  %v1252_v4 = vmul.f32 0.05, %v962_v59  ;;  %v965_v5 = vpop.f32.mrb[20].mxu0 }
 0x1ed   : > { %v1283_v8 = vmax.f32 %v960_v55, %v1251_v62  ;;  %v1254_v9 = vmul.f32 0.05, %v1051_v63  ;;  %v966_v10 = vadd.f32 %v965_v5, %v7861_v0  ;;  %v1054_v11 = vpop.f32.mrb[20].mxu1  ;;  %v967_v22 = vpop.f32.mrb[21].mxu0 }
 0x1ee   : > { %v1285_v12 = vmax.f32 %v1049_v58, %v1253_v3  ;;  %v1284_v14 = vmax.f32 %v962_v59, %v1252_v4  ;;  %v1055_v15 = vadd.f32 %v1054_v11, %v7861_v0  ;;  %v968_v16 = vadd.f32 %v967_v22, %v7861_v0  ;;  %v1056_v17 = vpop.f32.mrb[21].mxu1 }
 0x1ef   : > { %v6904_v19 = vpack.c.bf16 %v1283_v8, %v1275_v1  ;;  %v1286_v20 = vmax.f32 %v1051_v63, %v1254_v9  ;;  %v1057_v21 = vadd.f32 %v1056_v17, %v7861_v0  ;;  %v1259_v26 = vmul.f32 0.05, %v966_v10  ;;  %v7884_v17 = vld [vmem:[%s11204_s3 + $0x20] sm:$0xff] }
 0x1f0   : > { %v6912_v25 = vpack.c.bf16 %v1285_v12, %v1277_v2  ;;  %v1261_v27 = vmul.f32 0.05, %v1055_v15  ;;  %v971_v28 = vpop.f32.mrb[22].mxu0  ;;  %v6902_v29 = vpack.c.bf16 %v1284_v14, %v1276_v7  ;;  %v1260_v30 = vmul.f32 0.05, %v968_v16 }
 0x1f1   : > { %v1262_v31 = vmul.f32 0.05, %v1057_v21  ;;  %v972_v56 = vadd.f32 %v971_v28, %v7867_v24  ;;  %v1060_v32 = vpop.f32.mrb[22].mxu1  ;;  %v973_v33 = vpop.f32.mrb[23].mxu0  ;;  %v6910_v34 = vpack.c.bf16 %v1286_v20, %v1278_v18  ;;  %v1291_v40 = vmax.f32 %v966_v10, %v1259_v26 }
 0x1f2   : > { %v1061_v35 = vadd.f32 %v1060_v32, %v7867_v24  ;;  %v974_v36 = vadd.f32 %v973_v33, %v7867_v24  ;;  %v1062_v37 = vpop.f32.mrb[23].mxu1  ;;  %6903 = vmatprep.subr.bf16.mxu0 %v6902_v29  ;;  %v1293_v41 = vmax.f32 %v1055_v15, %v1261_v27  ;;  %v1292_v45 = vmax.f32 %v968_v16, %v1260_v30 }
 0x1f3   : > { %v1267_v38 = vmul.f32 0.05, %v972_v56  ;;  %v1063_v39 = vadd.f32 %v1062_v37, %v7867_v24  ;;  %6911 = vmatprep.subr.bf16.mxu1 %v6910_v34  ;;  %6905 = vmatpush1.bf16.msra.mxu0 %v6904_v19  ;;  %v1294_v46 = vmax.f32 %v1057_v21, %v1262_v31  ;;  %v1308_v37 = vld [vmem:[%s11204_s3 + $0x28] sm:$0xff] }
 0x1f4   : > { %v1269_v43 = vmul.f32 0.05, %v1061_v35  ;;  %v1268_v44 = vmul.f32 0.05, %v974_v36  ;;  %6913 = vmatpush1.bf16.msra.mxu1 %v6912_v25 }
 0x1f5   : > { %v1299_v47 = vmax.f32 %v972_v56, %v1267_v38  ;;  %v1270_v13 = vmul.f32 0.05, %v1063_v39  ;;  %v1131_v48 = vpop.f32.mrb[24].mxu0  ;;  %v1220_v49 = vpop.f32.mrb[24].mxu1 }
 0x1f6   : > { %v1301_v51 = vmax.f32 %v1061_v35, %v1269_v43  ;;  %v1300_v52 = vmax.f32 %v974_v36, %v1268_v44  ;;  %v1132_v53 = vadd.f32 %v1131_v48, %v7849_v42  ;;  %v1221_v54 = vadd.f32 %v1220_v49, %v7849_v42  ;;  %v1133_v55 = vpop.f32.mrb[25].mxu0  ;;  %v1222_v23 = vpop.f32.mrb[25].mxu1 }
 0x1f7   : > { %v6908_v57 = vpack.c.bf16 %v1299_v47, %v1291_v40  ;;  %v1302_v58 = vmax.f32 %v1063_v39, %v1270_v13  ;;  %v1134_v59 = vadd.f32 %v1133_v55, %v7849_v42  ;;  %v1223_v60 = vadd.f32 %v1222_v23, %v7849_v42 }
 0x1f8   : > { %v6916_v61 = vpack.c.bf16 %v1301_v51, %v1293_v41  ;;  %v1247_v62 = vmul.f32 0.05, %v1132_v53  ;;  %v1249_v63 = vmul.f32 0.05, %v1221_v54  ;;  %v6906_v1 = vpack.c.bf16 %v1300_v52, %v1292_v45 }
 0x1f9   : > { %v1248_v2 = vmul.f32 0.05, %v1134_v59  ;;  %v1250_v3 = vmul.f32 0.05, %v1223_v60  ;;  %v1137_v4 = vpop.f32.mrb[26].mxu0  ;;  %v1226_v5 = vpop.f32.mrb[26].mxu1  ;;  %v6914_v7 = vpack.c.bf16 %v1302_v58, %v1294_v46 }
 0x1fa   : > { %v1138_v8 = vadd.f32 %v1137_v4, %v7855_v50  ;;  %v1227_v9 = vadd.f32 %v1226_v5, %v7855_v50  ;;  %v1139_v10 = vpop.f32.mrb[27].mxu0  ;;  %v1228_v11 = vpop.f32.mrb[27].mxu1  ;;  %6907 = vmatprep.subr.bf16.mxu0 %v6906_v1  ;;  %v1279_v12 = vmax.f32 %v1132_v53, %v1247_v62  ;;  %v1281_v14 = vmax.f32 %v1221_v54, %v1249_v63  ;;  %v1309_v54 = vld [vmem:[%s11204_s3 + $0x30] sm:$0xff] }
 0x1fb   : > { %v1140_v22 = vadd.f32 %v1139_v10, %v7855_v50  ;;  %v1229_v42 = vadd.f32 %v1228_v11, %v7855_v50  ;;  %6915 = vmatprep.subr.bf16.mxu1 %v6914_v7  ;;  %6909 = vmatpush1.bf16.msra.mxu0 %v6908_v57  ;;  %v1280_v18 = vmax.f32 %v1134_v59, %v1248_v2  ;;  %v7939_v7 = vpop.permute.xlu0 %1317 }
 0x1fc   : > { %v1255_v15 = vmul.f32 0.05, %v1138_v8  ;;  %v1257_v16 = vmul.f32 0.05, %v1227_v9  ;;  %6917 = vmatpush1.bf16.msra.mxu1 %v6916_v61  ;;  %v1282_v19 = vmax.f32 %v1223_v60, %v1250_v3  ;;  %v1310_v3 = vld [vmem:[%s11204_s3 + $0x38] sm:$0xff] }
 0x1fd   : > { %v1256_v20 = vmul.f32 0.05, %v1140_v22  ;;  %v1258_v21 = vmul.f32 0.05, %v1229_v42  ;;  %v1143_v25 = vpop.f32.mrb[28].mxu0  ;;  %v1232_v26 = vpop.f32.mrb[28].mxu1 }
 0x1fe   : > { %v1287_v27 = vmax.f32 %v1138_v8, %v1255_v15  ;;  %v1289_v50 = vmax.f32 %v1227_v9, %v1257_v16  ;;  %v1144_v28 = vadd.f32 %v1143_v25, %v7861_v0  ;;  %v1233_v29 = vadd.f32 %v1232_v26, %v7861_v0  ;;  %v1145_v30 = vpop.f32.mrb[29].mxu0  ;;  %v1234_v31 = vpop.f32.mrb[29].mxu1  ;;  %5684 = vmatmul.mubr.msk.f32.vlgmr.msra.gmra.mrb[32].mxu0 %vm874_vm2, %v7884_v17 }
 0x1ff   : > { %v1288_v56 = vmax.f32 %v1140_v22, %v1256_v20  ;;  %v1290_v32 = vmax.f32 %v1229_v42, %v1258_v21  ;;  %v1146_v33 = vadd.f32 %v1145_v30, %v7861_v0  ;;  %v1235_v34 = vadd.f32 %v1234_v31, %v7861_v0  ;;  %5688 = vmatmul.mubr.msk.f32.vlgmr.msra.gmra.mrb[32].mxu1 %vm874_vm2, %v7884_v17  ;;  %v7945_v15 = vpop.permute.xlu1 %1322  ;;  %v7951_v31 = vpop.permute.xlu0 %1327 }
 0x200   : > { %v6920_v35 = vpack.c.bf16 %v1287_v27, %v1279_v12  ;;  %v6928_v36 = vpack.c.bf16 %v1289_v50, %v1281_v14  ;;  %1417 = vmatprep.mubr.f32.mxu0 %v11211_v6  ;;  %v1263_v38 = vmul.f32 0.05, %v1144_v28  ;;  %v1265_v39 = vmul.f32 0.05, %v1233_v29  ;;  %1506 = vmatprep.mubr.f32.mxu1 %v11211_v6 }
 0x201   : > { %v1149_v40 = vpop.f32.mrb[30].mxu0  ;;  %v1238_v41 = vpop.f32.mrb[30].mxu1  ;;  %v6918_v0 = vpack.c.bf16 %v1288_v56, %v1280_v18  ;;  %v6926_v43 = vpack.c.bf16 %v1290_v32, %v1282_v19  ;;  %v1264_v44 = vmul.f32 0.05, %v1146_v33  ;;  %v1266_v48 = vmul.f32 0.05, %v1235_v34 }
 0x202   : > { %v1150_v45 = vadd.f32 %v1149_v40, %v7867_v24  ;;  %v1239_v46 = vadd.f32 %v1238_v41, %v7867_v24  ;;  %v1151_v47 = vpop.f32.mrb[31].mxu0  ;;  %v1240_v13 = vpop.f32.mrb[31].mxu1  ;;  %5685 = vmatmul.mubr.msk.f32.gmra.mrb[34].mxu0 %vm874_vm2, %v1308_v37  ;;  %v1295_v55 = vmax.f32 %v1144_v28, %v1263_v38  ;;  %v1297_v23 = vmax.f32 %v1233_v29, %v1265_v39 }
 0x203   : > { %v1152_v49 = vadd.f32 %v1151_v47, %v7867_v24  ;;  %v1241_v51 = vadd.f32 %v1240_v13, %v7867_v24  ;;  %5689 = vmatmul.mubr.msk.f32.gmra.mrb[34].mxu1 %vm874_vm2, %v1308_v37  ;;  %6919 = vmatprep.subr.bf16.mxu0 %v6918_v0  ;;  %v1296_v59 = vmax.f32 %v1146_v33, %v1264_v44 }
 0x204   : > { %v1271_v52 = vmul.f32 0.05, %v1150_v45  ;;  %v1273_v53 = vmul.f32 0.05, %v1239_v46  ;;  %6927 = vmatprep.subr.bf16.mxu1 %v6926_v43  ;;  %6921 = vmatpush1.bf16.msra.mxu0 %v6920_v35  ;;  %v1298_v61 = vmax.f32 %v1235_v34, %v1266_v48 }
 0x205   : > { %v1272_v57 = vmul.f32 0.05, %v1152_v49  ;;  %v1274_v58 = vmul.f32 0.05, %v1241_v51  ;;  %6929 = vmatpush1.bf16.msra.mxu1 %v6928_v36  ;;  %1423 = vmatprep.mubr.f32.mxu0 %v11211_v6 }
 0x206   : > { %v1303_v60 = vmax.f32 %v1150_v45, %v1271_v52  ;;  %v1305_v24 = vmax.f32 %v1239_v46, %v1273_v53  ;;  %1512 = vmatprep.mubr.f32.mxu1 %v11211_v6  ;;  %5686 = vmatmul.mubr.msk.f32.gmra.mrb[36].mxu0 %vm874_vm2, %v1309_v54 }
 0x207   : > { %v1304_v62 = vmax.f32 %v1152_v49, %v1272_v57  ;;  %v1306_v63 = vmax.f32 %v1241_v51, %v1274_v58  ;;  %5690 = vmatmul.mubr.msk.f32.gmra.mrb[36].mxu1 %vm874_vm2, %v1309_v54  ;;  %1429 = vmatprep.mubr.f32.mxu0 %v11211_v6  ;;  %v7957_v51 = vpop.permute.xlu1 %1332 }
 0x208   : > { %v6924_v1 = vpack.c.bf16 %v1303_v60, %v1295_v55  ;;  %v6932_v2 = vpack.c.bf16 %v1305_v24, %v1297_v23  ;;  %1518 = vmatprep.mubr.f32.mxu1 %v11211_v6 }
 0x209   : > { %v6922_v4 = vpack.c.bf16 %v1304_v62, %v1296_v59  ;;  %v6930_v5 = vpack.c.bf16 %v1306_v63, %v1298_v61 }
 0x20a   : > { %5687 = vmatmul.mubr.msk.f32.gmra.mrb[38].mxu0 %vm874_vm2, %v1310_v3 }
 0x20b   : > { %6923 = vmatprep.subr.bf16.mxu0 %v6922_v4  ;;  %5691 = vmatmul.mubr.msk.f32.gmra.mrb[38].mxu1 %vm874_vm2, %v1310_v3 }
 0x20c   : > { %6931 = vmatprep.subr.bf16.mxu1 %v6930_v5  ;;  %6925 = vmatpush1.bf16.msra.mxu0 %v6924_v1 }
 0x20d   : > { %6933 = vmatpush1.bf16.msra.mxu1 %v6932_v2  ;;  %1589 = vmatprep.mubr.f32.mxu0 %v11211_v6 }
 0x20e   : > { %1678 = vmatprep.mubr.f32.mxu1 %v11211_v6 }
 0x20f   : > { %5692 = vmatmul.mubr.msk.f32.vlgmr.msra.gmra.mrb[40].mxu0 %vm874_vm2, %v7884_v17 }
 0x210   : > { %5696 = vmatmul.mubr.msk.f32.vlgmr.msra.gmra.mrb[40].mxu1 %vm874_vm2, %v7884_v17  ;;  %1595 = vmatprep.mubr.f32.mxu0 %v11211_v6 }
 0x211   : > { %1684 = vmatprep.mubr.f32.mxu1 %v11211_v6 }
 0x213   : > { %5693 = vmatmul.mubr.msk.f32.gmra.mrb[42].mxu0 %vm874_vm2, %v1308_v37 }
 0x214   : > { %5697 = vmatmul.mubr.msk.f32.gmra.mrb[42].mxu1 %vm874_vm2, %v1308_v37  ;;  %1601 = vmatprep.mubr.f32.mxu0 %v11211_v6 }
 0x215   : > { %1690 = vmatprep.mubr.f32.mxu1 %v11211_v6 }
 0x217   : > { %5694 = vmatmul.mubr.msk.f32.gmra.mrb[44].mxu0 %vm874_vm2, %v1309_v54 }
 0x218   : > { %5698 = vmatmul.mubr.msk.f32.gmra.mrb[44].mxu1 %vm874_vm2, %v1309_v54  ;;  %1607 = vmatprep.mubr.f32.mxu0 %v11211_v6 }
 0x219   : > { %1696 = vmatprep.mubr.f32.mxu1 %v11211_v6 }
 0x21b   : > { %5695 = vmatmul.mubr.msk.f32.gmra.mrb[46].mxu0 %vm874_vm2, %v1310_v3 }
 0x21c   : > { %5699 = vmatmul.mubr.msk.f32.gmra.mrb[46].mxu1 %vm874_vm2, %v1310_v3  ;;  %1871 = vmatprep.mubr.f32.mxu0 %v11211_v6 }
 0x21d   : > { %1960 = vmatprep.mubr.f32.mxu1 %v11211_v6 }
 0x2d1   : > { %v1413_v8 = vpop.f32.mrb[32].mxu0 }
 0x2d2   : > { %v1414_v9 = vadd.f32 %v1413_v8, %v7939_v7  ;;  %v1502_v10 = vpop.f32.mrb[32].mxu1  ;;  %v1415_v11 = vpop.f32.mrb[33].mxu0 }
 0x2d3   : > { %v1503_v22 = vadd.f32 %v1502_v10, %v7939_v7  ;;  %v1416_v42 = vadd.f32 %v1415_v11, %v7939_v7  ;;  %v1504_v12 = vpop.f32.mrb[33].mxu1 }
 0x2d4   : > { %v1505_v14 = vadd.f32 %v1504_v12, %v7939_v7  ;;  %v1703_v16 = vmul.f32 0.05, %v1414_v9 }
 0x2d5   : > { %v1705_v17 = vmul.f32 0.05, %v1503_v22  ;;  %v1419_v18 = vpop.f32.mrb[34].mxu0  ;;  %v1704_v19 = vmul.f32 0.05, %v1416_v42 }
 0x2d6   : > { %v1420_v20 = vadd.f32 %v1419_v18, %v7945_v15  ;;  %v1508_v21 = vpop.f32.mrb[34].mxu1  ;;  %v1421_v25 = vpop.f32.mrb[35].mxu0  ;;  %v1706_v28 = vmul.f32 0.05, %v1505_v14  ;;  %v1735_v56 = vmax.f32 %v1414_v9, %v1703_v16 }
 0x2d7   : > { %v1509_v26 = vadd.f32 %v1508_v21, %v7945_v15  ;;  %v1422_v27 = vadd.f32 %v1421_v25, %v7945_v15  ;;  %v1510_v50 = vpop.f32.mrb[35].mxu1  ;;  %v1737_v32 = vmax.f32 %v1503_v22, %v1705_v17  ;;  %v1736_v36 = vmax.f32 %v1416_v42, %v1704_v19 }
 0x2d8   : > { %v1711_v29 = vmul.f32 0.05, %v1420_v20  ;;  %v1511_v30 = vadd.f32 %v1510_v50, %v7945_v15  ;;  %v1738_v47 = vmax.f32 %v1505_v14, %v1706_v28 }
 0x2d9   : > { %v1713_v33 = vmul.f32 0.05, %v1509_v26  ;;  %v1712_v34 = vmul.f32 0.05, %v1422_v27  ;;  %v1425_v35 = vpop.f32.mrb[36].mxu0 }
 0x2da   : > { %v1743_v37 = vmax.f32 %v1420_v20, %v1711_v29  ;;  %v1714_v38 = vmul.f32 0.05, %v1511_v30  ;;  %v1426_v39 = vadd.f32 %v1425_v35, %v7951_v31  ;;  %v1514_v40 = vpop.f32.mrb[36].mxu1  ;;  %v1427_v41 = vpop.f32.mrb[37].mxu0 }
 0x2db   : > { %v1745_v0 = vmax.f32 %v1509_v26, %v1713_v33  ;;  %v1744_v43 = vmax.f32 %v1422_v27, %v1712_v34  ;;  %v1515_v44 = vadd.f32 %v1514_v40, %v7951_v31  ;;  %v1428_v45 = vadd.f32 %v1427_v41, %v7951_v31  ;;  %v1516_v46 = vpop.f32.mrb[37].mxu1 }
 0x2dc   : > { %v6936_v13 = vpack.c.bf16 %v1743_v37, %v1735_v56  ;;  %v1746_v48 = vmax.f32 %v1511_v30, %v1714_v38  ;;  %v1517_v49 = vadd.f32 %v1516_v46, %v7951_v31  ;;  %v1719_v53 = vmul.f32 0.05, %v1426_v39  ;;  %v7974_v46 = vld [vmem:[%s11204_s3 + $0x40] sm:$0xff] }
 0x2dd   : > { %v6944_v52 = vpack.c.bf16 %v1745_v0, %v1737_v32  ;;  %v1721_v54 = vmul.f32 0.05, %v1515_v44  ;;  %v1431_v55 = vpop.f32.mrb[38].mxu0  ;;  %v6934_v23 = vpack.c.bf16 %v1744_v43, %v1736_v36  ;;  %v1720_v57 = vmul.f32 0.05, %v1428_v45 }
 0x2de   : > { %v1722_v58 = vmul.f32 0.05, %v1517_v49  ;;  %v1432_v59 = vadd.f32 %v1431_v55, %v7957_v51  ;;  %v1520_v60 = vpop.f32.mrb[38].mxu1  ;;  %v1433_v24 = vpop.f32.mrb[39].mxu0  ;;  %v6942_v61 = vpack.c.bf16 %v1746_v48, %v1738_v47  ;;  %v1751_v4 = vmax.f32 %v1426_v39, %v1719_v53 }
 0x2df   : > { %v1521_v62 = vadd.f32 %v1520_v60, %v7957_v51  ;;  %v1434_v63 = vadd.f32 %v1433_v24, %v7957_v51  ;;  %v1522_v1 = vpop.f32.mrb[39].mxu1  ;;  %6935 = vmatprep.subr.bf16.mxu0 %v6934_v23  ;;  %v1753_v5 = vmax.f32 %v1515_v44, %v1721_v54  ;;  %v1752_v10 = vmax.f32 %v1428_v45, %v1720_v57 }
 0x2e0   : > { %v1727_v2 = vmul.f32 0.05, %v1432_v59  ;;  %v1523_v3 = vadd.f32 %v1522_v1, %v7957_v51  ;;  %6943 = vmatprep.subr.bf16.mxu1 %v6942_v61  ;;  %6937 = vmatpush1.bf16.msra.mxu0 %v6936_v13  ;;  %v1754_v11 = vmax.f32 %v1517_v49, %v1722_v58  ;;  %v7988_v1 = vld [vmem:[%s11204_s3 + $0x48] sm:$0xff] }
 0x2e1   : > { %v1729_v8 = vmul.f32 0.05, %v1521_v62  ;;  %v1728_v9 = vmul.f32 0.05, %v1434_v63  ;;  %6945 = vmatpush1.bf16.msra.mxu1 %v6944_v52 }
 0x2e2   : > { %v1759_v22 = vmax.f32 %v1432_v59, %v1727_v2  ;;  %v1730_v42 = vmul.f32 0.05, %v1523_v3  ;;  %v1591_v12 = vpop.f32.mrb[40].mxu0 }
 0x2e3   : > { %v1680_v14 = vpop.f32.mrb[40].mxu1  ;;  %v1761_v16 = vmax.f32 %v1521_v62, %v1729_v8  ;;  %v1760_v17 = vmax.f32 %v1434_v63, %v1728_v9  ;;  %v1592_v18 = vadd.f32 %v1591_v12, %v7939_v7  ;;  %v1593_v20 = vpop.f32.mrb[41].mxu0 }
 0x2e4   : > { %v1681_v19 = vadd.f32 %v1680_v14, %v7939_v7  ;;  %v1682_v21 = vpop.f32.mrb[41].mxu1  ;;  %v6940_v25 = vpack.c.bf16 %v1759_v22, %v1751_v4  ;;  %v1762_v26 = vmax.f32 %v1523_v3, %v1730_v42  ;;  %v1594_v27 = vadd.f32 %v1593_v20, %v7939_v7 }
 0x2e5   : > { %v1683_v50 = vadd.f32 %v1682_v21, %v7939_v7  ;;  %v6948_v28 = vpack.c.bf16 %v1761_v16, %v1753_v5  ;;  %v1707_v29 = vmul.f32 0.05, %v1592_v18  ;;  %v6938_v56 = vpack.c.bf16 %v1760_v17, %v1752_v10 }
 0x2e6   : > { %v1709_v30 = vmul.f32 0.05, %v1681_v19  ;;  %v1708_v32 = vmul.f32 0.05, %v1594_v27  ;;  %v1597_v34 = vpop.f32.mrb[42].mxu0  ;;  %v6946_v36 = vpack.c.bf16 %v1762_v26, %v1754_v11 }
 0x2e7   : > { %v1710_v33 = vmul.f32 0.05, %v1683_v50  ;;  %v1686_v35 = vpop.f32.mrb[42].mxu1  ;;  %v1598_v37 = vadd.f32 %v1597_v34, %v7945_v15  ;;  %v1599_v39 = vpop.f32.mrb[43].mxu0  ;;  %6939 = vmatprep.subr.bf16.mxu0 %v6938_v56  ;;  %v1739_v0 = vmax.f32 %v1592_v18, %v1707_v29  ;;  %v356_v34 = vld [vmem:[%s8007_s23] sm:$0xff] }
 0x2e8   : > { %v1687_v38 = vadd.f32 %v1686_v35, %v7945_v15  ;;  %v1688_v40 = vpop.f32.mrb[43].mxu1  ;;  %v1600_v41 = vadd.f32 %v1599_v39, %v7945_v15  ;;  %6947 = vmatprep.subr.bf16.mxu1 %v6946_v36  ;;  %v1741_v43 = vmax.f32 %v1681_v19, %v1709_v30  ;;  %6941 = vmatpush1.bf16.msra.mxu0 %v6940_v25  ;;  %v1769_v19 = vld [vmem:[%s11204_s3 + $0x50] sm:$0xff]  ;;  %v357_v35 = vld [vmem:[%s8007_s23 + $0x8] sm:$0xff] }
 0x2e9   : > { %v1689_v7 = vadd.f32 %v1688_v40, %v7945_v15  ;;  %v1715_v44 = vmul.f32 0.05, %v1598_v37  ;;  %6949 = vmatpush1.bf16.msra.mxu1 %v6948_v28  ;;  %v1740_v47 = vmax.f32 %v1594_v27, %v1708_v32  ;;  %v1742_v13 = vmax.f32 %v1683_v50, %v1710_v33  ;;  %v1770_v33 = vld [vmem:[%s11204_s3 + $0x58] sm:$0xff]  ;;  %v358_v39 = vld [vmem:[%s8007_s23 + $0x10] sm:$0xff] }
 0x2ea   : > { %v1717_v45 = vmul.f32 0.05, %v1687_v38  ;;  %v1716_v48 = vmul.f32 0.05, %v1600_v41  ;;  %v1603_v52 = vpop.f32.mrb[44].mxu0  ;;  %v359_v40 = vld [vmem:[%s8007_s23 + $0x18] sm:$0xff] }
 0x2eb   : > { %v1718_v49 = vmul.f32 0.05, %v1689_v7  ;;  %v1692_v53 = vpop.f32.mrb[44].mxu1  ;;  %v1747_v54 = vmax.f32 %v1598_v37, %v1715_v44  ;;  %v1604_v55 = vadd.f32 %v1603_v52, %v7951_v31  ;;  %v1605_v57 = vpop.f32.mrb[45].mxu0  ;;  %5700 = vmatmul.mubr.msk.f32.vlgmr.msra.gmra.mrb[48].mxu0 %vm874_vm2, %v7974_v46  ;;  %v2230_v44 = vld [vmem:[%s11204_s3 + $0x78] sm:$0xff]  ;;  %s5569_s23 = sshll.u32 %s341_s22, 4  ;;  %s11161_s23 = int_to_ptr.vmem [resolvable:$true] %s5569_s23 }
 0x2ec   : > { %v1749_v15 = vmax.f32 %v1687_v38, %v1717_v45  ;;  %v1693_v23 = vadd.f32 %v1692_v53, %v7951_v31  ;;  %v1694_v58 = vpop.f32.mrb[45].mxu1  ;;  %v1748_v59 = vmax.f32 %v1600_v41, %v1716_v48  ;;  %v1606_v24 = vadd.f32 %v1605_v57, %v7951_v31  ;;  %5704 = vmatmul.mubr.msk.f32.vlgmr.msra.gmra.mrb[48].mxu1 %vm874_vm2, %v7974_v46  ;;  %v2360_v45 = vld [vmem:[%s11204_s3 + $0x80] sm:$0xff]  ;;  %v2243_v57 = vpop.permute.xlu1 %2242  ;;  %s7340_s8 = scalar_lea.vmem %s11161_s23, 16  ;;  %p7347_p0 = scmp.lt.s32.totalorder %s11161_s23, %s7345_s28 }
 0x2ed   : > { %v1750_v60 = vmax.f32 %v1689_v7, %v1718_v49  ;;  %v1695_v61 = vadd.f32 %v1694_v58, %v7951_v31  ;;  %v6952_v62 = vpack.c.bf16 %v1747_v54, %v1739_v0  ;;  %1877 = vmatprep.mubr.f32.mxu0 %v11211_v6  ;;  %v1723_v2 = vmul.f32 0.05, %v1604_v55  ;;  %1966 = vmatprep.mubr.f32.mxu1 %v11211_v6  ;;  %v2227_v7 = vld [vmem:[%s11204_s3 + $0x60] sm:$0xff]  ;;  %v2228_v0 = vld [vmem:[%s11204_s3 + $0x68] sm:$0xff]  ;;  %p7341_p11 = scmp.ne.s32.totalorder %s11161_s23, %s7340_s8  ;;  %p7348_p1 = scmp.lt.s32.totalorder %s7346_s29, %s7340_s8 }
 0x2ee   : > { %v6960_v63 = vpack.c.bf16 %v1749_v15, %v1741_v43  ;;  %v1725_v3 = vmul.f32 0.05, %v1693_v23  ;;  %v1609_v4 = vpop.f32.mrb[46].mxu0  ;;  %v6950_v31 = vpack.c.bf16 %v1748_v59, %v1740_v47  ;;  %v1724_v9 = vmul.f32 0.05, %v1606_v24  ;;  %v2229_v43 = vld [vmem:[%s11204_s3 + $0x70] sm:$0xff] }
 0x2ef   : > { %v1698_v5 = vpop.f32.mrb[46].mxu1  ;;  %v6958_v8 = vpack.c.bf16 %v1750_v60, %v1742_v13  ;;  %v1610_v10 = vadd.f32 %v1609_v4, %v7957_v51  ;;  %v1611_v22 = vpop.f32.mrb[47].mxu0  ;;  %v1726_v12 = vmul.f32 0.05, %v1695_v61  ;;  %5701 = vmatmul.mubr.msk.f32.gmra.mrb[50].mxu0 %vm874_vm2, %v7988_v1  ;;  %v6966_v38 = vpack.c.bf16 %v357_v35, %v356_v34  ;;  %p7342_p12 = pnand %p7341_p11, %p7501_p5  ;;  %p7349_p2 = por %p7348_p1, %p7347_p0 }
 0x2f0   : > { %v1699_v11 = vadd.f32 %v1698_v5, %v7957_v51  ;;  %v1700_v42 = vpop.f32.mrb[47].mxu1  ;;  %v1612_v14 = vadd.f32 %v1611_v22, %v7957_v51  ;;  %5705 = vmatmul.mubr.msk.f32.gmra.mrb[50].mxu1 %vm874_vm2, %v7988_v1  ;;  %6951 = vmatprep.subr.bf16.mxu0 %v6950_v31  ;;  %v1757_v20 = vmax.f32 %v1693_v23, %v1725_v3 }
 0x2f1   : > { %v1701_v16 = vadd.f32 %v1700_v42, %v7957_v51  ;;  %v1731_v17 = vmul.f32 0.05, %v1610_v10  ;;  %v1755_v51 = vmax.f32 %v1604_v55, %v1723_v2  ;;  %6959 = vmatprep.subr.bf16.mxu1 %v6958_v8  ;;  %6953 = vmatpush1.bf16.msra.mxu0 %v6952_v62  ;;  %v1756_v26 = vmax.f32 %v1606_v24, %v1724_v9  ;;  %p7343_p13 = pneg %p7342_p12 }
 0x2f2   : > { %v1733_v18 = vmul.f32 0.05, %v1699_v11  ;;  %v1732_v21 = vmul.f32 0.05, %v1612_v14  ;;  %6961 = vmatpush1.bf16.msra.mxu1 %v6960_v63  ;;  %1883 = vmatprep.mubr.f32.mxu0 %v11211_v6  ;;  %v1758_v28 = vmax.f32 %v1695_v61, %v1726_v12  ;;  %v6970_v41 = vpack.c.bf16 %v359_v40, %v358_v39  ;;  %v2238_v61 = vpop.permute.xlu0 %2237  ;;  %v2253_v63 = vpop.permute.xlu1 %2252 }
 0x2f3   : > { %v1734_v25 = vmul.f32 0.05, %v1701_v16  ;;  %v1763_v27 = vmax.f32 %v1610_v10, %v1731_v17  ;;  %1972 = vmatprep.mubr.f32.mxu1 %v11211_v6  ;;  %5702 = vmatmul.mubr.msk.f32.gmra.mrb[52].mxu0 %vm874_vm2, %v1769_v19  ;;  %p7350_p3 = pnand %p7349_p2, %p7343_p13 }
 0x2f4   : > { %v1765_v50 = vmax.f32 %v1699_v11, %v1733_v18  ;;  %v1764_v29 = vmax.f32 %v1612_v14, %v1732_v21  ;;  %5706 = vmatmul.mubr.msk.f32.gmra.mrb[52].mxu1 %vm874_vm2, %v1769_v19  ;;  %1889 = vmatprep.mubr.f32.mxu0 %v11211_v6 }
 0x2f5   : > { %v1766_v30 = vmax.f32 %v1701_v16, %v1734_v25  ;;  %v6956_v56 = vpack.c.bf16 %v1763_v27, %v1755_v51  ;;  %1978 = vmatprep.mubr.f32.mxu1 %v11211_v6 }
 0x2f6   : > { %v6964_v32 = vpack.c.bf16 %v1765_v50, %v1757_v20  ;;  %v6954_v36 = vpack.c.bf16 %v1764_v29, %v1756_v26  ;;  %v2248_v5 = vpop.permute.xlu0 %2247  ;;  %v8100_v11 = vpop.permute.xlu1 %1782 }
 0x2f7   : > { %v6962_v37 = vpack.c.bf16 %v1766_v30, %v1758_v28  ;;  %5703 = vmatmul.mubr.msk.f32.gmra.mrb[54].mxu0 %vm874_vm2, %v1770_v33 }
 0x2f8   : > { %6955 = vmatprep.subr.bf16.mxu0 %v6954_v36  ;;  %5707 = vmatmul.mubr.msk.f32.gmra.mrb[54].mxu1 %vm874_vm2, %v1770_v33 }
 0x2f9   : > { %6963 = vmatprep.subr.bf16.mxu1 %v6962_v37  ;;  %6957 = vmatpush1.bf16.msra.mxu0 %v6956_v56 }
 0x2fa   : > { %6965 = vmatpush1.bf16.msra.mxu1 %v6964_v32  ;;  %2049 = vmatprep.mubr.f32.mxu0 %v11211_v6  ;;  %v8110_v16 = vpop.permute.xlu0 %1777  ;;  %v8120_v20 = vpop.permute.xlu1 %2375 }
 0x2fb   : > { %2138 = vmatprep.mubr.f32.mxu1 %v11211_v6  ;;  %6967 = vmatprep.subr.bf16.mxu0 %v6966_v38 }
 0x2fc   : > { %5708 = vmatmul.mubr.msk.f32.vlgmr.msra.gmra.mrb[56].mxu0 %vm874_vm2, %v7974_v46 }
 0x2fd   : > { %5712 = vmatmul.mubr.msk.f32.vlgmr.msra.gmra.mrb[56].mxu1 %vm874_vm2, %v7974_v46  ;;  %2055 = vmatprep.mubr.f32.mxu0 %v11211_v6 }
 0x2fe   : > { %2144 = vmatprep.mubr.f32.mxu1 %v11211_v6  ;;  %6969 = vmatpush3.bf16.msra.mxu0 %v6966_v38  ;;  %v8122_v25 = vpop.permute.xlu0 %2370 }
 0x2ff   : > { %6971 = vmatprep.subr.bf16.mxu0 %v6970_v41 }
 0x300   : > { %5709 = vmatmul.mubr.msk.f32.gmra.mrb[58].mxu0 %vm874_vm2, %v7988_v1 }
 0x301   : > { %5713 = vmatmul.mubr.msk.f32.gmra.mrb[58].mxu1 %vm874_vm2, %v7988_v1  ;;  %2061 = vmatprep.mubr.f32.mxu0 %v11211_v6 }
 0x302   : > { %2150 = vmatprep.mubr.f32.mxu1 %v11211_v6  ;;  %6973 = vmatpush3.bf16.msra.mxu0 %v6970_v41  ;;  %v8129_v41 = vpop.permute.xlu0 %1787 }
 0x304   : > { %5710 = vmatmul.mubr.msk.f32.gmra.mrb[60].mxu0 %vm874_vm2, %v1769_v19 }
 0x305   : > { %5714 = vmatmul.mubr.msk.f32.gmra.mrb[60].mxu1 %vm874_vm2, %v1769_v19  ;;  %2067 = vmatprep.mubr.f32.mxu0 %v11211_v6 }
 0x306   : > { %2156 = vmatprep.mubr.f32.mxu1 %v11211_v6 }
 0x308   : > { %5711 = vmatmul.mubr.msk.f32.gmra.mrb[62].mxu0 %vm874_vm2, %v1770_v33 }
 0x309   : > { %5715 = vmatmul.mubr.msk.f32.gmra.mrb[62].mxu1 %vm874_vm2, %v1770_v33  ;;  %6243 = vmatprep.mubr.msk.f32.mxu0 %vm874_vm2, %v2227_v7  ;;  %v8126_v33 = vpop.permute.xlu1 %1792 }
 0x30a   : > { %6257 = vmatprep.mubr.msk.f32.mxu1 %vm874_vm2, %v2360_v45 }
 0x30c   : > { %6244 = vmatmul.mubr.msk.f32.vlgmr.msra.gmra.mrb[64].mxu0 %vm874_vm2, %v2228_v0 }
 0x30d   : > { %6246 = vmatprep.mubr.msk.f32.mxu0 %vm874_vm2, %v2229_v43 }
 0x310   : > { %6247 = vmatmul.mubr.msk.f32.gmra.mrb[66].mxu0 %vm874_vm2, %v2230_v44 }
 0x3be   : > { %v1873_v46 = vpop.f32.mrb[48].mxu0 }
 0x3bf   : > { %v8064_v47 = vpop.f32.mrb[48].mxu1  ;;  %v8066_v13 = vpop.f32.mrb[49].mxu0  ;;  %v1874_v30 = vadd.f32 %v1873_v46, %v8110_v16 }
 0x3c0   : > { %v8068_v48 = vpop.f32.mrb[49].mxu1 }
 0x3c1   : > { %v2163_v0 = vmul.f32 0.05, %v1874_v30 }
 0x3c2   : > { %v1879_v49 = vpop.f32.mrb[50].mxu0 }
 0x3c3   : > { %v8070_v52 = vpop.f32.mrb[50].mxu1  ;;  %v1881_v53 = vpop.f32.mrb[51].mxu0  ;;  %v1880_v50 = vadd.f32 %v1879_v49, %v8100_v11 }
 0x3c4   : > { %v8072_v54 = vpop.f32.mrb[51].mxu1 }
 0x3c5   : > { %v2171_v37 = vmul.f32 0.05, %v1880_v50 }
 0x3c6   : > { %v1885_v15 = vpop.f32.mrb[52].mxu0 }
 0x3c7   : > { %v8074_v55 = vpop.f32.mrb[52].mxu1  ;;  %v8076_v23 = vpop.f32.mrb[53].mxu0  ;;  %v1886_v43 = vadd.f32 %v1885_v15, %v8129_v41  ;;  %v8132_v49 = vmax.f32 %v1880_v50, %v2171_v37  ;;  %v2361_v50 = vld [vmem:[%s11204_s3 + $0x88] sm:$0xff] }
 0x3c8   : > { %v8078_v58 = vpop.f32.mrb[53].mxu1 }
 0x3c9   : > { %11512 = vst [vmem:[#allocation6_spill] sm:$0xff] %v8132_v49 }
 0x3ca   : > { %v1891_v59 = vpop.f32.mrb[54].mxu0 }
 0x3cb   : > { %v8080_v60 = vpop.f32.mrb[54].mxu1  ;;  %v1893_v24 = vpop.f32.mrb[55].mxu0  ;;  %v1892_v38 = vadd.f32 %v1891_v59, %v8126_v33  ;;  %v8135_v59 = vmax.f32 %v1874_v30, %v2163_v0 }
 0x3cc   : > { %v8082_v62 = vpop.f32.mrb[55].mxu1 }
 0x3cd   : > { %11513 = vst [vmem:[#allocation7_spill] sm:$0xff] %v8135_v59 }
 0x3cf   : > { %v8084_v1 = vpop.f32.mrb[56].mxu0 }
 0x3d0   : > { %v8086_v2 = vpop.f32.mrb[56].mxu1  ;;  %v8088_v3 = vpop.f32.mrb[57].mxu0 }
 0x3d1   : > { %v8090_v4 = vpop.f32.mrb[57].mxu1 }
 0x3d3   : > { %v8092_v31 = vpop.f32.mrb[58].mxu0 }
 0x3d4   : > { %v8094_v8 = vpop.f32.mrb[58].mxu1  ;;  %v8096_v9 = vpop.f32.mrb[59].mxu0 }
 0x3d5   : > { %v8098_v10 = vpop.f32.mrb[59].mxu1 }
 0x3d7   : > { %v8102_v22 = vpop.f32.mrb[60].mxu0 }
 0x3d8   : > { %v8104_v42 = vpop.f32.mrb[60].mxu1  ;;  %v8106_v12 = vpop.f32.mrb[61].mxu0 }
 0x3d9   : > { %v8108_v14 = vpop.f32.mrb[61].mxu1 }
 0x3db   : > { %v8112_v17 = vpop.f32.mrb[62].mxu0 }
 0x3dc   : > { %v8114_v18 = vpop.f32.mrb[62].mxu1  ;;  %v8116_v19 = vpop.f32.mrb[63].mxu0 }
 0x3dd   : > { %v8118_v51 = vpop.f32.mrb[63].mxu1 }
 0x3df   : > { %v6245_v21 = vpop.f32.mrb[64].mxu0 }
 0x3e0   : > { %v2339_v26 = vadd.f32 %v6245_v21, %v2243_v57  ;;  %v2333_v27 = vpop.f32.mrb[65].mxu0  ;;  %v1882_v57 = vadd.f32 %v1881_v53, %v8100_v11  ;;  %v2179_v21 = vmul.f32 0.05, %v1886_v43  ;;  %v6990_v53 = vpack.c.bf16 %v8132_v49, %v8135_v59 }
 0x3e1   : > { %v2334_v28 = vadd.f32 %v2333_v27, %v2238_v61  ;;  %v2187_v61 = vmul.f32 0.05, %v1892_v38 }
 0x3e2   : > { %v2353_v29 = vmul.f32 0.05, %v2339_v26  ;;  %v2172_v27 = vmul.f32 0.05, %v1882_v57  ;;  %v8147_v30 = vmax.f32 %v1886_v43, %v2179_v21  ;;  %v8222_v21 = vld [vmem:[%s11206_s5 + $0x28] sm:$0xff] }
 0x3e3   : > { %v2352_v56 = vmul.f32 0.05, %v2334_v28  ;;  %v6248_v32 = vpop.f32.mrb[66].mxu0  ;;  %v8139_v15 = vmax.f32 %v1892_v38, %v2187_v61  ;;  %v8172_v38 = vld [vmem:[%s11206_s5] sm:$0xff] }
 0x3e4   : > { %v2357_v34 = vmax.f32 %v2339_v26, %v2353_v29  ;;  %v2349_v35 = vadd.f32 %v6248_v32, %v2253_v63  ;;  %v2343_v36 = vpop.f32.mrb[67].mxu0  ;;  %11515 = vst [vmem:[#allocation9_spill] sm:$0xff] %v8147_v30  ;;  %v8156_v32 = vmax.f32 %v1882_v57, %v2172_v27  ;;  %v8204_v57 = vld [vmem:[%s11206_s5 + $0x18] sm:$0xff] }
 0x3e5   : > { %v2356_v39 = vmax.f32 %v2334_v28, %v2352_v56  ;;  %v2344_v40 = vadd.f32 %v2343_v36, %v2248_v5  ;;  %v1876_v5 = vadd.f32 %v8066_v13, %v8110_v16  ;;  %11514 = vst [vmem:[#allocation8_spill] sm:$0xff] %v8139_v15  ;;  %v1894_v28 = vadd.f32 %v1893_v24, %v8126_v33  ;;  %v2362_v24 = vld [vmem:[%s11204_s3 + $0x90] sm:$0xff]  ;;  %v8236_v27 = vld [vmem:[%s11206_s5 + $0x38] sm:$0xff] }
 0x3e6   : > { %v2355_v7 = vmul.f32 0.05, %v2349_v35  ;;  %v1888_v13 = vadd.f32 %v8076_v23, %v8129_v41  ;;  %v1969_v56 = vadd.f32 %v8070_v52, %v8100_v11  ;;  %11516 = vst [vmem:[#allocation10_spill] sm:$0xff] %v8156_v32  ;;  %v2363_v23 = vld [vmem:[%s11204_s3 + $0x98] sm:$0xff]  ;;  %v1963_v36 = vadd.f32 %v8064_v47, %v8110_v16  ;;  %v8184_v47 = vld [vmem:[%s11206_s5 + $0x8] sm:$0xff] }
 0x3e7   : > { %v2354_v44 = vmul.f32 0.05, %v2344_v40  ;;  %v6974_v45 = vpack.c.bf16 %v2357_v34, %v2356_v39  ;;  %v2164_v29 = vmul.f32 0.05, %v1876_v5  ;;  %v2188_v34 = vmul.f32 0.05, %v1894_v28 }
 0x3e8   : > { %v2359_v46 = vmax.f32 %v2349_v35, %v2355_v7  ;;  %v6994_v35 = vpack.c.bf16 %v8139_v15, %v8147_v30  ;;  %v2180_v52 = vmul.f32 0.05, %v1888_v13  ;;  %v2173_v39 = vmul.f32 0.05, %v1969_v56 }
 0x3e9   : > { %v2358_v63 = vmax.f32 %v2344_v40, %v2354_v44  ;;  %6975 = vmatprep.subr.bf16.mxu1 %v6974_v45  ;;  %v8167_v37 = vmax.f32 %v1876_v5, %v2164_v29  ;;  %v8174_v40 = vmax.f32 %v1894_v28, %v2188_v34  ;;  %v2165_v0 = vmul.f32 0.05, %v1963_v36  ;;  %v8191_v44 = vld [vmem:[%s11206_s5 + $0x10] sm:$0xff]  ;;  %v8241_v28 = vld [vmem:[%s11206_s5 + $0x40] sm:$0xff]  ;;  %v8264_v29 = vld [vmem:[%s11206_s5 + $0x58] sm:$0xff] }
 0x3ea   : > { %6977 = vmatpush3.bf16.msra.mxu1 %v6974_v45  ;;  %v8186_v43 = vmax.f32 %v1888_v13, %v2180_v52  ;;  %v8193_v45 = vmax.f32 %v1969_v56, %v2173_v39  ;;  %v8269_v13 = vld [vmem:[%s11206_s5 + $0x60] sm:$0xff]  ;;  %v8280_v56 = vld [vmem:[%s11206_s5 + $0x68] sm:$0xff]  ;;  %v1975_v34 = vadd.f32 %v8074_v55, %v8129_v41  ;;  %v1965_v55 = vadd.f32 %v8068_v48, %v8110_v16 }
 0x3eb   : > { %v6978_v26 = vpack.c.bf16 %v2359_v46, %v2358_v63  ;;  %11517 = vst [vmem:[#allocation11_spill] sm:$0xff] %v8167_v37  ;;  %11518 = vst [vmem:[#allocation12_spill] sm:$0xff] %v8174_v40  ;;  %v7022_v7 = vpack.c.bf16 %v8156_v32, %v8167_v37  ;;  %v8206_v61 = vmax.f32 %v1963_v36, %v2165_v0  ;;  %v8211_v63 = vld [vmem:[%s11206_s5 + $0x20] sm:$0xff]  ;;  %v8298_v36 = vld [vmem:[%s11206_s5 + $0x78] sm:$0xff] }
 0x3ec   : > { %11519 = vst [vmem:[#allocation13_spill] sm:$0xff] %v8186_v43  ;;  %11520 = vst [vmem:[#allocation14_spill] sm:$0xff] %v8193_v45  ;;  %v7026_v46 = vpack.c.bf16 %v8174_v40, %v8186_v43  ;;  %v2181_v52 = vmul.f32 0.05, %v1975_v34 }
 0x3ed   : > { %6979 = vmatprep.subr.bf16.mxu1 %v6978_v26  ;;  %11521 = vst [vmem:[#allocation15_spill] sm:$0xff] %v8206_v61  ;;  %v7054_v5 = vpack.c.bf16 %v8193_v45, %v8206_v61 }
 0x3ee   : > { %6981 = vmatpush3.bf16.msra.mxu1 %v6978_v26  ;;  %v8227_v26 = vld [vmem:[%s11206_s5 + $0x30] sm:$0xff]  ;;  %v8308_v0 = vmax.f32 %v1975_v34, %v2181_v52  ;;  %v2052_v52 = vadd.f32 %v8084_v1, %v8110_v16 }
 0x3ef   : > { %6991 = vmatprep.subr.bf16.mxu1 %v6990_v53 }
 0x3f0   : > { %11523 = vst [vmem:[#allocation17_spill] sm:$0xff] %v8308_v0 }
 0x3f1   : > { %6258 = vmatmul.mubr.msk.f32.vlgmr.msra.gmra.mrb[64].mxu1 %vm874_vm2, %v2361_v50  ;;  %v8255_v50 = vld [vmem:[%s11206_s5 + $0x50] sm:$0xff] }
 0x3f2   : > { %6993 = vmatpush3.bf16.msra.mxu1 %v6990_v53  ;;  %6260 = vmatprep.mubr.msk.f32.mxu1 %vm874_vm2, %v2362_v24  ;;  %v8250_v53 = vld [vmem:[%s11206_s5 + $0x48] sm:$0xff]  ;;  %v1981_v24 = vadd.f32 %v8080_v60, %v8126_v33  ;;  %v1971_v60 = vadd.f32 %v8072_v54, %v8100_v11  ;;  %v2166_v54 = vmul.f32 0.05, %v1965_v55 }
 0x3f3   : > { %6995 = vmatprep.subr.bf16.mxu1 %v6994_v35 }
 0x3f4   : > { %v2174_v39 = vmul.f32 0.05, %v1971_v60 }
 0x3f5   : > { %6261 = vmatmul.mubr.msk.f32.gmra.mrb[66].mxu1 %vm874_vm2, %v2363_v23  ;;  %v2189_v23 = vmul.f32 0.05, %v1981_v24 }
 0x3f6   : > { %6997 = vmatpush3.bf16.msra.mxu1 %v6994_v35  ;;  %6303 = vmatprep.mubr.msk.f32.mxu1 %vm874_vm2, %v8172_v38  ;;  %v8287_v35 = vld [vmem:[%s11206_s5 + $0x70] sm:$0xff] }
 0x3f7   : > { %7023 = vmatprep.subr.bf16.mxu1 %v7022_v7 }
 0x3f9   : > { %6304 = vmatmul.mubr.msk.f32.vlgmr.msra.gmra.mrb[68].mxu1 %vm874_vm2, %v8184_v47 }
 0x3fa   : > { %7025 = vmatpush3.bf16.msra.mxu1 %v7022_v7  ;;  %6306 = vmatprep.mubr.msk.f32.mxu1 %vm874_vm2, %v8191_v44  ;;  %v8302_v7 = vmax.f32 %v1981_v24, %v2189_v23  ;;  %v8318_v24 = vmax.f32 %v1965_v55, %v2166_v54  ;;  %v2058_v55 = vadd.f32 %v8092_v31, %v8100_v11  ;;  %v2167_v31 = vmul.f32 0.05, %v2052_v52 }
 0x3fb   : > { %7027 = vmatprep.subr.bf16.mxu1 %v7026_v46 }
 0x3fc   : > { %11522 = vst [vmem:[#allocation16_spill] sm:$0xff] %v8302_v7  ;;  %v7058_v48 = vpack.c.bf16 %v8302_v7, %v8308_v0  ;;  %11525 = vst [vmem:[#allocation19_spill] sm:$0xff] %v8318_v24  ;;  %v2175_v54 = vmul.f32 0.05, %v2058_v55 }
 0x3fd   : > { %6307 = vmatmul.mubr.msk.f32.gmra.mrb[70].mxu1 %vm874_vm2, %v8204_v57 }
 0x3fe   : > { %7029 = vmatpush3.bf16.msra.mxu1 %v7026_v46  ;;  %6309 = vmatprep.mubr.msk.f32.mxu1 %vm874_vm2, %v8211_v63  ;;  %v8310_v46 = vmax.f32 %v1971_v60, %v2174_v39  ;;  %v1977_v60 = vadd.f32 %v8078_v58, %v8129_v41 }
 0x3ff   : > { %7055 = vmatprep.subr.bf16.mxu1 %v7054_v5 }
 0x400   : > { %11524 = vst [vmem:[#allocation18_spill] sm:$0xff] %v8310_v46  ;;  %v7086_v34 = vpack.c.bf16 %v8310_v46, %v8318_v24 }
 0x401   : > { %6310 = vmatmul.mubr.msk.f32.gmra.mrb[72].mxu1 %vm874_vm2, %v8222_v21 }
 0x402   : > { %6312 = vmatprep.mubr.msk.f32.mxu1 %vm874_vm2, %v8227_v26 }
 0x405   : > { %6313 = vmatmul.mubr.msk.f32.gmra.mrb[74].mxu1 %vm874_vm2, %v8236_v27 }
 0x406   : > { %6315 = vmatprep.mubr.msk.f32.mxu1 %vm874_vm2, %v8241_v28 }
 0x409   : > { %6316 = vmatmul.mubr.msk.f32.gmra.mrb[76].mxu1 %vm874_vm2, %v8250_v53 }
 0x40a   : > { %6318 = vmatprep.mubr.msk.f32.mxu1 %vm874_vm2, %v8255_v50 }
 0x40d   : > { %6319 = vmatmul.mubr.msk.f32.gmra.mrb[78].mxu1 %vm874_vm2, %v8264_v29 }
 0x40e   : > { %6321 = vmatprep.mubr.msk.f32.mxu1 %vm874_vm2, %v8269_v13 }
 0x411   : > { %6322 = vmatmul.mubr.msk.f32.gmra.mrb[80].mxu1 %vm874_vm2, %v8280_v56 }
 0x412   : > { %6324 = vmatprep.mubr.msk.f32.mxu1 %vm874_vm2, %v8287_v35 }
 0x415   : > { %6325 = vmatmul.mubr.msk.f32.gmra.mrb[82].mxu1 %vm874_vm2, %v8298_v36 }
 0x416   : > { %6370 = vmatprep.mubr.msk.f32.mxu1 %vm874_vm2, %v8172_v38 }
 0x419   : > { %6371 = vmatmul.mubr.msk.f32.vlgmr.msra.gmra.mrb[84].mxu1 %vm874_vm2, %v8184_v47 }
 0x41a   : > { %7057 = vmatpush3.bf16.msra.mxu1 %v7054_v5  ;;  %6373 = vmatprep.mubr.msk.f32.mxu1 %vm874_vm2, %v8191_v44  ;;  %v1983_v5 = vadd.f32 %v8082_v62, %v8126_v33  ;;  %v2182_v62 = vmul.f32 0.05, %v1977_v60 }
 0x41b   : > { %7059 = vmatprep.subr.bf16.mxu1 %v7058_v48 }
 0x41c   : > { %v2190_v23 = vmul.f32 0.05, %v1983_v5  ;;  %v8360_v58 = vmax.f32 %v1977_v60, %v2182_v62 }
 0x41d   : > { %6374 = vmatmul.mubr.msk.f32.gmra.mrb[86].mxu1 %vm874_vm2, %v8204_v57 }
 0x41e   : > { %7061 = vmatpush3.bf16.msra.mxu1 %v7058_v48  ;;  %6376 = vmatprep.mubr.msk.f32.mxu1 %vm874_vm2, %v8211_v63  ;;  %v8354_v39 = vmax.f32 %v1983_v5, %v2190_v23  ;;  %11527 = vst [vmem:[#allocation21_spill] sm:$0xff] %v8360_v58  ;;  %v8362_v48 = vmax.f32 %v2058_v55, %v2175_v54 }
 0x41f   : > { %7087 = vmatprep.subr.bf16.mxu1 %v7086_v34  ;;  %v8370_v5 = vmax.f32 %v2052_v52, %v2167_v31  ;;  %v2064_v23 = vadd.f32 %v8102_v22, %v8129_v41  ;;  %v2060_v55 = vadd.f32 %v8096_v9, %v8100_v11  ;;  %v2525_v9 = vld [vmem:[%s11206_s5 + $0x80] sm:$0xff] }
 0x420   : > { %11526 = vst [vmem:[#allocation20_spill] sm:$0xff] %v8354_v39  ;;  %11528 = vst [vmem:[#allocation22_spill] sm:$0xff] %v8362_v48  ;;  %v7090_v1 = vpack.c.bf16 %v8354_v39, %v8360_v58  ;;  %6271 = vmatprep.mubr.msk.f32.mxu0 %vm874_vm2, %v2525_v9 }
 0x421   : > { %6377 = vmatmul.mubr.msk.f32.gmra.mrb[88].mxu1 %vm874_vm2, %v8222_v21  ;;  %11529 = vst [vmem:[#allocation23_spill] sm:$0xff] %v8370_v5  ;;  %v7118_v60 = vpack.c.bf16 %v8362_v48, %v8370_v5  ;;  %v2183_v52 = vmul.f32 0.05, %v2064_v23  ;;  %v2176_v54 = vmul.f32 0.05, %v2060_v55 }
 0x422   : > { %6379 = vmatprep.mubr.msk.f32.mxu1 %vm874_vm2, %v8227_v26 }
 0x425   : > { %6380 = vmatmul.mubr.msk.f32.gmra.mrb[90].mxu1 %vm874_vm2, %v8236_v27 }
 0x426   : > { %6382 = vmatprep.mubr.msk.f32.mxu1 %vm874_vm2, %v8241_v28 }
 0x429   : > { %6383 = vmatmul.mubr.msk.f32.gmra.mrb[92].mxu1 %vm874_vm2, %v8250_v53 }
 0x42a   : > { %6385 = vmatprep.mubr.msk.f32.mxu1 %vm874_vm2, %v8255_v50 }
 0x42d   : > { %6386 = vmatmul.mubr.msk.f32.gmra.mrb[94].mxu1 %vm874_vm2, %v8264_v29 }
 0x42e   : > { %6388 = vmatprep.mubr.msk.f32.mxu1 %vm874_vm2, %v8269_v13 }
 0x431   : > { %6389 = vmatmul.mubr.msk.f32.gmra.mrb[96].mxu1 %vm874_vm2, %v8280_v56 }
 0x432   : > { %6391 = vmatprep.mubr.msk.f32.mxu1 %vm874_vm2, %v8287_v35 }
 0x435   : > { %6392 = vmatmul.mubr.msk.f32.gmra.mrb[98].mxu1 %vm874_vm2, %v8298_v36 }
 0x436   : > { %6437 = vmatprep.mubr.msk.f32.mxu1 %vm874_vm2, %v8172_v38 }
 0x439   : > { %6438 = vmatmul.mubr.msk.f32.vlgmr.msra.gmra.mrb[100].mxu1 %vm874_vm2, %v8184_v47 }
 0x43a   : > { %7089 = vmatpush3.bf16.msra.mxu1 %v7086_v34  ;;  %6440 = vmatprep.mubr.msk.f32.mxu1 %vm874_vm2, %v8191_v44  ;;  %v2070_v34 = vadd.f32 %v8112_v17, %v8126_v33  ;;  %v2054_v17 = vadd.f32 %v8088_v3, %v8110_v16  ;;  %v8418_v3 = vmax.f32 %v2060_v55, %v2176_v54 }
 0x43b   : > { %7091 = vmatprep.subr.bf16.mxu1 %v7090_v1  ;;  %v2066_v55 = vadd.f32 %v8106_v12, %v8129_v41 }
 0x43c   : > { %v2191_v62 = vmul.f32 0.05, %v2070_v34  ;;  %v2168_v22 = vmul.f32 0.05, %v2054_v17  ;;  %11532 = vst [vmem:[#allocation26_spill] sm:$0xff] %v8418_v3 }
 0x43d   : > { %6441 = vmatmul.mubr.msk.f32.gmra.mrb[102].mxu1 %vm874_vm2, %v8204_v57  ;;  %v2184_v54 = vmul.f32 0.05, %v2066_v55 }
 0x43e   : > { %7093 = vmatpush3.bf16.msra.mxu1 %v7090_v1  ;;  %6443 = vmatprep.mubr.msk.f32.mxu1 %vm874_vm2, %v8211_v63  ;;  %v8406_v31 = vmax.f32 %v2070_v34, %v2191_v62  ;;  %v8416_v1 = vmax.f32 %v2064_v23, %v2183_v52  ;;  %v8426_v62 = vmax.f32 %v2054_v17, %v2168_v22 }
 0x43f   : > { %7119 = vmatprep.subr.bf16.mxu1 %v7118_v60  ;;  %v2147_v17 = vadd.f32 %v8094_v8, %v8100_v11  ;;  %v8468_v12 = vmax.f32 %v2066_v55, %v2184_v54 }
 0x440   : > { %11530 = vst [vmem:[#allocation24_spill] sm:$0xff] %v8406_v31  ;;  %11531 = vst [vmem:[#allocation25_spill] sm:$0xff] %v8416_v1  ;;  %v7122_v34 = vpack.c.bf16 %v8406_v31, %v8416_v1  ;;  %v7150_v23 = vpack.c.bf16 %v8418_v3, %v8426_v62 }
 0x441   : > { %6444 = vmatmul.mubr.msk.f32.gmra.mrb[104].mxu1 %vm874_vm2, %v8222_v21  ;;  %11533 = vst [vmem:[#allocation27_spill] sm:$0xff] %v8426_v62  ;;  %v2177_v9 = vmul.f32 0.05, %v2147_v17  ;;  %11535 = vst [vmem:[#allocation29_spill] sm:$0xff] %v8468_v12 }
 0x442   : > { %6446 = vmatprep.mubr.msk.f32.mxu1 %vm874_vm2, %v8227_v26 }
 0x445   : > { %6447 = vmatmul.mubr.msk.f32.gmra.mrb[106].mxu1 %vm874_vm2, %v8236_v27 }
 0x446   : > { %6449 = vmatprep.mubr.msk.f32.mxu1 %vm874_vm2, %v8241_v28 }
 0x449   : > { %6450 = vmatmul.mubr.msk.f32.gmra.mrb[108].mxu1 %vm874_vm2, %v8250_v53 }
 0x44a   : > { %6452 = vmatprep.mubr.msk.f32.mxu1 %vm874_vm2, %v8255_v50 }
 0x44d   : > { %6453 = vmatmul.mubr.msk.f32.gmra.mrb[110].mxu1 %vm874_vm2, %v8264_v29 }
 0x44e   : > { %6455 = vmatprep.mubr.msk.f32.mxu1 %vm874_vm2, %v8269_v13 }
 0x451   : > { %6456 = vmatmul.mubr.msk.f32.gmra.mrb[112].mxu1 %vm874_vm2, %v8280_v56 }
 0x452   : > { %6458 = vmatprep.mubr.msk.f32.mxu1 %vm874_vm2, %v8287_v35 }
 0x455   : > { %6459 = vmatmul.mubr.msk.f32.gmra.mrb[114].mxu1 %vm874_vm2, %v8298_v36 }
 0x456   : > { %6504 = vmatprep.mubr.msk.f32.mxu1 %vm874_vm2, %v8172_v38 }
 0x459   : > { %6505 = vmatmul.mubr.msk.f32.vlgmr.msra.gmra.mrb[116].mxu1 %vm874_vm2, %v8184_v47 }
 0x45a   : > { %7121 = vmatpush3.bf16.msra.mxu1 %v7118_v60  ;;  %6507 = vmatprep.mubr.msk.f32.mxu1 %vm874_vm2, %v8191_v44  ;;  %v2072_v60 = vadd.f32 %v8116_v19, %v8126_v33  ;;  %v2141_v19 = vadd.f32 %v8086_v2, %v8110_v16 }
 0x45b   : > { %7123 = vmatprep.subr.bf16.mxu1 %v7122_v34 }
 0x45c   : > { %v2192_v52 = vmul.f32 0.05, %v2072_v60  ;;  %v2169_v8 = vmul.f32 0.05, %v2141_v19 }
 0x45d   : > { %6508 = vmatmul.mubr.msk.f32.gmra.mrb[118].mxu1 %vm874_vm2, %v8204_v57 }
 0x45e   : > { %7125 = vmatpush3.bf16.msra.mxu1 %v7122_v34  ;;  %6510 = vmatprep.mubr.msk.f32.mxu1 %vm874_vm2, %v8211_v63  ;;  %v8462_v22 = vmax.f32 %v2072_v60, %v2192_v52  ;;  %v8470_v34 = vmax.f32 %v2147_v17, %v2177_v9  ;;  %v8478_v60 = vmax.f32 %v2141_v19, %v2169_v8 }
 0x45f   : > { %7151 = vmatprep.subr.bf16.mxu1 %v7150_v23  ;;  %v2153_v17 = vadd.f32 %v8104_v42, %v8129_v41  ;;  %v2149_v52 = vadd.f32 %v8098_v10, %v8100_v11 }
 0x460   : > { %11534 = vst [vmem:[#allocation28_spill] sm:$0xff] %v8462_v22  ;;  %11536 = vst [vmem:[#allocation30_spill] sm:$0xff] %v8470_v34  ;;  %v7154_v2 = vpack.c.bf16 %v8462_v22, %v8468_v12  ;;  %v7182_v55 = vpack.c.bf16 %v8470_v34, %v8478_v60 }
 0x461   : > { %6511 = vmatmul.mubr.msk.f32.gmra.mrb[120].mxu1 %vm874_vm2, %v8222_v21  ;;  %11537 = vst [vmem:[#allocation31_spill] sm:$0xff] %v8478_v60  ;;  %v2185_v54 = vmul.f32 0.05, %v2153_v17  ;;  %v2178_v9 = vmul.f32 0.05, %v2149_v52 }
 0x462   : > { %6513 = vmatprep.mubr.msk.f32.mxu1 %vm874_vm2, %v8227_v26 }
 0x463   : > { %v8520_v11 = vmax.f32 %v2153_v17, %v2185_v54  ;;  %v8522_v42 = vmax.f32 %v2149_v52, %v2178_v9 }
 0x465   : > { %6514 = vmatmul.mubr.msk.f32.gmra.mrb[122].mxu1 %vm874_vm2, %v8236_v27  ;;  %11539 = vst [vmem:[#allocation33_spill] sm:$0xff] %v8520_v11  ;;  %11540 = vst [vmem:[#allocation34_spill] sm:$0xff] %v8522_v42 }
 0x466   : > { %6516 = vmatprep.mubr.msk.f32.mxu1 %vm874_vm2, %v8241_v28 }
 0x469   : > { %6517 = vmatmul.mubr.msk.f32.gmra.mrb[124].mxu1 %vm874_vm2, %v8250_v53 }
 0x46a   : > { %6519 = vmatprep.mubr.msk.f32.mxu1 %vm874_vm2, %v8255_v50 }
 0x46d   : > { %6520 = vmatmul.mubr.msk.f32.gmra.mrb[126].mxu1 %vm874_vm2, %v8264_v29 }
 0x46e   : > { %6522 = vmatprep.mubr.msk.f32.mxu1 %vm874_vm2, %v8269_v13 }
 0x471   : > { %6523 = vmatmul.mubr.msk.f32.gmra.mrb[128].mxu1 %vm874_vm2, %v8280_v56 }
 0x472   : > { %6525 = vmatprep.mubr.msk.f32.mxu1 %vm874_vm2, %v8287_v35 }
 0x475   : > { %6526 = vmatmul.mubr.msk.f32.gmra.mrb[130].mxu1 %vm874_vm2, %v8298_v36 }
 0x476   : > { %6571 = vmatprep.mubr.msk.f32.mxu1 %vm874_vm2, %v8172_v38 }
 0x479   : > { %6572 = vmatmul.mubr.msk.f32.vlgmr.msra.gmra.mrb[132].mxu1 %vm874_vm2, %v8184_v47 }
 0x47a   : > { %7153 = vmatpush3.bf16.msra.mxu1 %v7150_v23  ;;  %6574 = vmatprep.mubr.msk.f32.mxu1 %vm874_vm2, %v8191_v44  ;;  %v2159_v23 = vadd.f32 %v8114_v18, %v8126_v33  ;;  %v2143_v18 = vadd.f32 %v8090_v4, %v8110_v16 }
 0x47b   : > { %7155 = vmatprep.subr.bf16.mxu1 %v7154_v2 }
 0x47c   : > { %v2193_v19 = vmul.f32 0.05, %v2159_v23  ;;  %v2170_v10 = vmul.f32 0.05, %v2143_v18 }
 0x47d   : > { %6575 = vmatmul.mubr.msk.f32.gmra.mrb[134].mxu1 %vm874_vm2, %v8204_v57 }
 0x47e   : > { %7157 = vmatpush3.bf16.msra.mxu1 %v7154_v2  ;;  %6577 = vmatprep.mubr.msk.f32.mxu1 %vm874_vm2, %v8211_v63  ;;  %v8514_v8 = vmax.f32 %v2159_v23, %v2193_v19  ;;  %v8530_v16 = vmax.f32 %v2143_v18, %v2170_v10  ;;  %v2155_v23 = vadd.f32 %v8108_v14, %v8129_v41  ;;  %v2386_v10 = vpop.permute.xlu1 %2385 }
 0x47f   : > { %7183 = vmatprep.subr.bf16.mxu1 %v7182_v55 }
 0x480   : > { %11538 = vst [vmem:[#allocation32_spill] sm:$0xff] %v8514_v8  ;;  %v7186_v4 = vpack.c.bf16 %v8514_v8, %v8520_v11  ;;  %11541 = vst [vmem:[#allocation35_spill] sm:$0xff] %v8530_v16  ;;  %v7214_v2 = vpack.c.bf16 %v8522_v42, %v8530_v16  ;;  %v2186_v52 = vmul.f32 0.05, %v2155_v23 }
 0x481   : > { %6578 = vmatmul.mubr.msk.f32.gmra.mrb[136].mxu1 %vm874_vm2, %v8222_v21 }
 0x482   : > { %6580 = vmatprep.mubr.msk.f32.mxu1 %vm874_vm2, %v8227_v26 }
 0x485   : > { %6581 = vmatmul.mubr.msk.f32.gmra.mrb[138].mxu1 %vm874_vm2, %v8236_v27 }
 0x486   : > { %6583 = vmatprep.mubr.msk.f32.mxu1 %vm874_vm2, %v8241_v28 }
 0x489   : > { %6584 = vmatmul.mubr.msk.f32.gmra.mrb[140].mxu1 %vm874_vm2, %v8250_v53 }
 0x48a   : > { %6586 = vmatprep.mubr.msk.f32.mxu1 %vm874_vm2, %v8255_v50 }
 0x48d   : > { %6587 = vmatmul.mubr.msk.f32.gmra.mrb[142].mxu1 %vm874_vm2, %v8264_v29 }
 0x48e   : > { %6589 = vmatprep.mubr.msk.f32.mxu1 %vm874_vm2, %v8269_v13 }
 0x491   : > { %6590 = vmatmul.mubr.msk.f32.gmra.mrb[144].mxu1 %vm874_vm2, %v8280_v56 }
 0x492   : > { %6592 = vmatprep.mubr.msk.f32.mxu1 %vm874_vm2, %v8287_v35 }
 0x495   : > { %6593 = vmatmul.mubr.msk.f32.gmra.mrb[146].mxu1 %vm874_vm2, %v8298_v36 }
 0x496   : > { %6638 = vmatprep.mubr.msk.f32.mxu1 %vm874_vm2, %v8172_v38 }
 0x499   : > { %6639 = vmatmul.mubr.msk.f32.vlgmr.msra.gmra.mrb[148].mxu1 %vm874_vm2, %v8184_v47 }
 0x49a   : > { %7185 = vmatpush3.bf16.msra.mxu1 %v7182_v55  ;;  %6641 = vmatprep.mubr.msk.f32.mxu1 %vm874_vm2, %v8191_v44  ;;  %v2161_v55 = vadd.f32 %v8118_v51, %v8126_v33  ;;  %v8568_v51 = vmax.f32 %v2155_v23, %v2186_v52 }
 0x49b   : > { %7187 = vmatprep.subr.bf16.mxu1 %v7186_v4 }
 0x49c   : > { %v2194_v17 = vmul.f32 0.05, %v2161_v55  ;;  %11543 = vst [vmem:[#allocation37_spill] sm:$0xff] %v8568_v51 }
 0x49d   : > { %6642 = vmatmul.mubr.msk.f32.gmra.mrb[150].mxu1 %vm874_vm2, %v8204_v57 }
 0x49e   : > { %7189 = vmatpush3.bf16.msra.mxu1 %v7186_v4  ;;  %6644 = vmatprep.mubr.msk.f32.mxu1 %vm874_vm2, %v8211_v63  ;;  %v8562_v19 = vmax.f32 %v2161_v55, %v2194_v17  ;;  %v2381_v55 = vpop.permute.xlu0 %2380 }
 0x49f   : > { %7215 = vmatprep.subr.bf16.mxu1 %v7214_v2 }
 0x4a0   : > { %11542 = vst [vmem:[#allocation36_spill] sm:$0xff] %v8562_v19  ;;  %v7218_v14 = vpack.c.bf16 %v8562_v19, %v8568_v51 }
 0x4a1   : > { %6645 = vmatmul.mubr.msk.f32.gmra.mrb[152].mxu1 %vm874_vm2, %v8222_v21 }
 0x4a2   : > { %6647 = vmatprep.mubr.msk.f32.mxu1 %vm874_vm2, %v8227_v26 }
 0x4a5   : > { %6648 = vmatmul.mubr.msk.f32.gmra.mrb[154].mxu1 %vm874_vm2, %v8236_v27 }
 0x4a6   : > { %6650 = vmatprep.mubr.msk.f32.mxu1 %vm874_vm2, %v8241_v28 }
 0x4a9   : > { %6651 = vmatmul.mubr.msk.f32.gmra.mrb[156].mxu1 %vm874_vm2, %v8250_v53 }
 0x4aa   : > { %6653 = vmatprep.mubr.msk.f32.mxu1 %vm874_vm2, %v8255_v50 }
 0x4ad   : > { %6654 = vmatmul.mubr.msk.f32.gmra.mrb[158].mxu1 %vm874_vm2, %v8264_v29 }
 0x4ae   : > { %6656 = vmatprep.mubr.msk.f32.mxu1 %vm874_vm2, %v8269_v13 }
 0x4b1   : > { %6657 = vmatmul.mubr.msk.f32.gmra.mrb[160].mxu1 %vm874_vm2, %v8280_v56 }
 0x4b2   : > { %6659 = vmatprep.mubr.msk.f32.mxu1 %vm874_vm2, %v8287_v35 }
 0x4b5   : > { %6660 = vmatmul.mubr.msk.f32.gmra.mrb[162].mxu1 %vm874_vm2, %v8298_v36 }
 0x4b6   : > { %6705 = vmatprep.mubr.msk.f32.mxu1 %vm874_vm2, %v8172_v38 }
 0x4b9   : > { %6706 = vmatmul.mubr.msk.f32.vlgmr.msra.gmra.mrb[164].mxu1 %vm874_vm2, %v8184_v47 }
 0x4ba   : > { %7217 = vmatpush3.bf16.msra.mxu1 %v7214_v2  ;;  %6708 = vmatprep.mubr.msk.f32.mxu1 %vm874_vm2, %v8191_v44 }
 0x4bb   : > { %7219 = vmatprep.subr.bf16.mxu1 %v7218_v14 }
 0x4bd   : > { %6709 = vmatmul.mubr.msk.f32.gmra.mrb[166].mxu1 %vm874_vm2, %v8204_v57 }
 0x4be   : > { %7221 = vmatpush3.bf16.msra.mxu1 %v7218_v14  ;;  %6711 = vmatprep.mubr.msk.f32.mxu1 %vm874_vm2, %v8211_v63 }
 0x4c1   : > { %6712 = vmatmul.mubr.msk.f32.gmra.mrb[168].mxu1 %vm874_vm2, %v8222_v21 }
 0x4c2   : > { %6714 = vmatprep.mubr.msk.f32.mxu1 %vm874_vm2, %v8227_v26 }
 0x4c4   : > { %v6259_v33 = vpop.f32.mrb[64].mxu1 }
 0x4c5   : > { %v2472_v41 = vadd.f32 %v6259_v33, %v8120_v20  ;;  %v2466_v18 = vpop.f32.mrb[65].mxu1  ;;  %6715 = vmatmul.mubr.msk.f32.gmra.mrb[170].mxu1 %vm874_vm2, %v8236_v27 }
 0x4c6   : > { %v2467_v54 = vadd.f32 %v2466_v18, %v8122_v25  ;;  %6717 = vmatprep.mubr.msk.f32.mxu1 %vm874_vm2, %v8241_v28 }
 0x4c7   : > { %v2486_v9 = vmul.f32 0.05, %v2472_v41 }
 0x4c8   : > { %v2485_v4 = vmul.f32 0.05, %v2467_v54  ;;  %v6262_v2 = vpop.f32.mrb[66].mxu1 }
 0x4c9   : > { %v2490_v23 = vmax.f32 %v2472_v41, %v2486_v9  ;;  %v2482_v17 = vadd.f32 %v6262_v2, %v2386_v10  ;;  %v2476_v52 = vpop.f32.mrb[67].mxu1  ;;  %6718 = vmatmul.mubr.msk.f32.gmra.mrb[172].mxu1 %vm874_vm2, %v8250_v53 }
 0x4ca   : > { %v2489_v20 = vmax.f32 %v2467_v54, %v2485_v4  ;;  %v2477_v14 = vadd.f32 %v2476_v52, %v2381_v55  ;;  %6720 = vmatprep.mubr.msk.f32.mxu1 %vm874_vm2, %v8255_v50  ;;  %v2526_v4 = vld [vmem:[%s11206_s5 + $0x88] sm:$0xff] }
 0x4cb   : > { %v2488_v25 = vmul.f32 0.05, %v2482_v17 }
 0x4cc   : > { %v6982_v33 = vpack.c.bf16 %v2490_v23, %v2489_v20  ;;  %v2487_v18 = vmul.f32 0.05, %v2477_v14  ;;  %v8594_v6 = vpop.f32.mrb[68].mxu1  ;;  %v2528_v23 = vld [vmem:[%s11206_s5 + $0x98] sm:$0xff]  ;;  %v2529_v20 = vld [vmem:[%s11206_s5 + $0xa0] sm:$0xff] }
 0x4cd   : > { %v2492_v19 = vmax.f32 %v2482_v17, %v2488_v25  ;;  %v8596_v51 = vpop.f32.mrb[69].mxu1  ;;  %6721 = vmatmul.mubr.msk.f32.gmra.mrb[174].mxu1 %vm874_vm2, %v8264_v29 }
 0x4ce   : > { %v2491_v41 = vmax.f32 %v2477_v14, %v2487_v18  ;;  %6983 = vmatprep.subr.bf16.mxu0 %v6982_v33  ;;  %7247 = vmatprep.subr.bf16.mxu1 %v6982_v33  ;;  %v2533_v18 = vld [vmem:[%s11206_s5 + $0xc0] sm:$0xff] }
 0x4cf   : > { %6985 = vmatpush3.bf16.msra.mxu0 %v6982_v33  ;;  %6723 = vmatprep.mubr.msk.f32.mxu1 %vm874_vm2, %v8269_v13 }
 0x4d0   : > { %v6986_v54 = vpack.c.bf16 %v2492_v19, %v2491_v41  ;;  %v8602_v9 = vpop.f32.mrb[70].mxu1  ;;  %v2527_v19 = vld [vmem:[%s11206_s5 + $0x90] sm:$0xff] }
 0x4d1   : > { %v8604_v10 = vpop.f32.mrb[71].mxu1  ;;  %6724 = vmatmul.mubr.msk.f32.gmra.mrb[176].mxu1 %vm874_vm2, %v8280_v56 }
 0x4d2   : > { %6987 = vmatprep.subr.bf16.mxu0 %v6986_v54  ;;  %6726 = vmatprep.mubr.msk.f32.mxu1 %vm874_vm2, %v8287_v35 }
 0x4d3   : > { %6989 = vmatpush3.bf16.msra.mxu0 %v6986_v54 }
 0x4d4   : > { %v8613_v2 = vpop.f32.mrb[72].mxu1 }
 0x4d5   : > { %v8618_v55 = vpop.f32.mrb[73].mxu1  ;;  %6727 = vmatmul.mubr.msk.f32.gmra.mrb[178].mxu1 %vm874_vm2, %v8298_v36 }
 0x4d6   : > { %6272 = vmatmul.mubr.msk.f32.vlgmr.msra.gmra.mrb[68].mxu0 %vm874_vm2, %v2526_v4  ;;  %6772 = vmatprep.mubr.msk.f32.mxu1 %vm874_vm2, %v8172_v38  ;;  %v2530_v38 = vld [vmem:[%s11206_s5 + $0xa8] sm:$0xff] }
 0x4d7   : > { %6274 = vmatprep.mubr.msk.f32.mxu0 %vm874_vm2, %v2527_v19  ;;  %v2537_v19 = vld [vmem:[%s11206_s5 + $0xe0] sm:$0xff] }
 0x4d8   : > { %v8629_v17 = vpop.f32.mrb[74].mxu1 }
 0x4d9   : > { %v8631_v52 = vpop.f32.mrb[75].mxu1  ;;  %6773 = vmatmul.mubr.msk.f32.vlgmr.msra.gmra.mrb[180].mxu1 %vm874_vm2, %v8184_v47  ;;  %v2531_v47 = vld [vmem:[%s11206_s5 + $0xb0] sm:$0xff] }
 0x4da   : > { %7249 = vmatpush3.bf16.msra.mxu1 %v6982_v33  ;;  %6275 = vmatmul.mubr.msk.f32.gmra.mrb[70].mxu0 %vm874_vm2, %v2528_v23 }
 0x4db   : > { %7251 = vmatprep.subr.bf16.mxu1 %v6986_v54  ;;  %6775 = vmatprep.mubr.msk.f32.mxu1 %vm874_vm2, %v8191_v44  ;;  %v2532_v44 = vld [vmem:[%s11206_s5 + $0xb8] sm:$0xff] }
 0x4dc   : > { %v8644_v14 = vpop.f32.mrb[76].mxu1  ;;  %6277 = vmatprep.mubr.msk.f32.mxu0 %vm874_vm2, %v2529_v20  ;;  %v2539_v20 = vld [vmem:[%s11206_s5 + $0xf0] sm:$0xff] }
 0x4dd   : > { %v8650_v25 = vpop.f32.mrb[77].mxu1  ;;  %6776 = vmatmul.mubr.msk.f32.gmra.mrb[182].mxu1 %vm874_vm2, %v8204_v57  ;;  %v2534_v57 = vld [vmem:[%s11206_s5 + $0xc8] sm:$0xff] }
 0x4de   : > { %7253 = vmatpush3.bf16.msra.mxu1 %v6986_v54  ;;  %6278 = vmatmul.mubr.msk.f32.gmra.mrb[72].mxu0 %vm874_vm2, %v2530_v38  ;;  %v2535_v54 = vld [vmem:[%s11206_s5 + $0xd0] sm:$0xff] }
 0x4df   : > { %6778 = vmatprep.mubr.msk.f32.mxu1 %vm874_vm2, %v8211_v63  ;;  %6280 = vmatprep.mubr.msk.f32.mxu0 %vm874_vm2, %v2531_v47 }
 0x4e0   : > { %v8661_v33 = vpop.f32.mrb[78].mxu1 }
 0x4e1   : > { %v8666_v41 = vpop.f32.mrb[79].mxu1  ;;  %6779 = vmatmul.mubr.msk.f32.gmra.mrb[184].mxu1 %vm874_vm2, %v8222_v21  ;;  %v2536_v21 = vld [vmem:[%s11206_s5 + $0xd8] sm:$0xff] }
 0x4e2   : > { %6281 = vmatmul.mubr.msk.f32.gmra.mrb[74].mxu0 %vm874_vm2, %v2532_v44  ;;  %6781 = vmatprep.mubr.msk.f32.mxu1 %vm874_vm2, %v8227_v26 }
 0x4e3   : > { %6283 = vmatprep.mubr.msk.f32.mxu0 %vm874_vm2, %v2533_v18 }
 0x4e4   : > { %v8677_v63 = vpop.f32.mrb[80].mxu1 }
 0x4e5   : > { %v8682_v4 = vpop.f32.mrb[81].mxu1  ;;  %6782 = vmatmul.mubr.msk.f32.gmra.mrb[186].mxu1 %vm874_vm2, %v8236_v27  ;;  %v2538_v27 = vld [vmem:[%s11206_s5 + $0xe8] sm:$0xff] }
 0x4e6   : > { %6284 = vmatmul.mubr.msk.f32.gmra.mrb[76].mxu0 %vm874_vm2, %v2534_v57  ;;  %6784 = vmatprep.mubr.msk.f32.mxu1 %vm874_vm2, %v8241_v28 }
 0x4e7   : > { %6286 = vmatprep.mubr.msk.f32.mxu0 %vm874_vm2, %v2535_v54 }
 0x4e8   : > { %v8693_v26 = vpop.f32.mrb[82].mxu1 }
 0x4e9   : > { %v8698_v23 = vpop.f32.mrb[83].mxu1  ;;  %6785 = vmatmul.mubr.msk.f32.gmra.mrb[188].mxu1 %vm874_vm2, %v8250_v53  ;;  %v2540_v53 = vld [vmem:[%s11206_s5 + $0xf8] sm:$0xff] }
 0x4ea   : > { %6287 = vmatmul.mubr.msk.f32.gmra.mrb[78].mxu0 %vm874_vm2, %v2536_v21  ;;  %6787 = vmatprep.mubr.msk.f32.mxu1 %vm874_vm2, %v8255_v50 }
 0x4eb   : > { %6289 = vmatprep.mubr.msk.f32.mxu0 %vm874_vm2, %v2537_v19 }
 0x4ec   : > { %v8709_v28 = vpop.f32.mrb[84].mxu1 }
 0x4ed   : > { %v8714_v38 = vpop.f32.mrb[85].mxu1  ;;  %6788 = vmatmul.mubr.msk.f32.gmra.mrb[190].mxu1 %vm874_vm2, %v8264_v29 }
 0x4ee   : > { %6290 = vmatmul.mubr.msk.f32.gmra.mrb[80].mxu0 %vm874_vm2, %v2538_v27  ;;  %6790 = vmatprep.mubr.msk.f32.mxu1 %vm874_vm2, %v8269_v13 }
 0x4ef   : > { %6292 = vmatprep.mubr.msk.f32.mxu0 %vm874_vm2, %v2539_v20  ;;  %v8758_v20 = vpop.permute.xlu0 %2559 }
 0x4f0   : > { %v8725_v50 = vpop.f32.mrb[86].mxu1  ;;  %11545 = vst [vmem:[#allocation39_spill] sm:$0xff] %v8758_v20 }
 0x4f1   : > { %v8727_v47 = vpop.f32.mrb[87].mxu1  ;;  %6791 = vmatmul.mubr.msk.f32.gmra.mrb[192].mxu1 %vm874_vm2, %v8280_v56 }
 0x4f2   : > { %6293 = vmatmul.mubr.msk.f32.gmra.mrb[82].mxu0 %vm874_vm2, %v2540_v53  ;;  %6793 = vmatprep.mubr.msk.f32.mxu1 %vm874_vm2, %v8287_v35  ;;  %v8752_v35 = vpop.permute.xlu1 %2564 }
 0x4f3   : > { %11544 = vst [vmem:[#allocation38_spill] sm:$0xff] %v8752_v35  ;;  %v8766_v11 = vpop.permute.xlu0 %2864 }
 0x4f4   : > { %v8734_v29 = vpop.f32.mrb[88].mxu1 }
 0x4f5   : > { %v8736_v13 = vpop.f32.mrb[89].mxu1  ;;  %6794 = vmatmul.mubr.msk.f32.gmra.mrb[194].mxu1 %vm874_vm2, %v8298_v36 }
 0x4f6   : > { %v8764_v8 = vpop.permute.xlu1 %2869 }
 0x4f7   : > { %v8778_v39 = vpop.permute.xlu0 %2569 }
 0x4f8   : > { %v8740_v44 = vpop.f32.mrb[90].mxu1  ;;  %11547 = vst [vmem:[#allocation41_spill] sm:$0xff] %v8778_v39 }
 0x4f9   : > { %v8742_v18 = vpop.f32.mrb[91].mxu1 }
 0x4fa   : > { %v8772_v31 = vpop.permute.xlu1 %2574 }
 0x4fb   : > { %11546 = vst [vmem:[#allocation40_spill] sm:$0xff] %v8772_v31  ;;  %v8786_v0 = vpop.permute.xlu0 %2874 }
 0x4fc   : > { %v8744_v57 = vpop.f32.mrb[92].mxu1 }
 0x4fd   : > { %v8746_v54 = vpop.f32.mrb[93].mxu1 }
 0x4fe   : > { %v8784_v7 = vpop.permute.xlu1 %2879 }
 0x4ff   : > { %v8798_v48 = vpop.permute.xlu0 %2579 }
 0x500   : > { %v8748_v56 = vpop.f32.mrb[94].mxu1  ;;  %11554 = vst [vmem:[#allocation48_spill] sm:$0xff] %v8798_v48 }
 0x501   : > { %v8750_v21 = vpop.f32.mrb[95].mxu1 }
 0x502   : > { %v8792_v16 = vpop.permute.xlu1 %2584 }
 0x503   : > { %11551 = vst [vmem:[#allocation45_spill] sm:$0xff] %v8792_v16  ;;  %v8806_v30 = vpop.permute.xlu0 %2884 }
 0x504   : > { %v8754_v19 = vpop.f32.mrb[96].mxu1 }
 0x505   : > { %v8756_v27 = vpop.f32.mrb[97].mxu1 }
 0x506   : > { %v8804_v5 = vpop.permute.xlu1 %2889 }
 0x507   : > { %v8818_v37 = vpop.permute.xlu0 %2589 }
 0x508   : > { %v8760_v36 = vpop.f32.mrb[98].mxu1  ;;  %11562 = vst [vmem:[#allocation56_spill] sm:$0xff] %v8818_v37 }
 0x509   : > { %v8762_v53 = vpop.f32.mrb[99].mxu1 }
 0x50a   : > { %v8812_v45 = vpop.permute.xlu1 %2594 }
 0x50b   : > { %11559 = vst [vmem:[#allocation53_spill] sm:$0xff] %v8812_v45  ;;  %v8826_v16 = vpop.permute.xlu0 %2894 }
 0x50c   : > { %v8768_v22 = vpop.f32.mrb[100].mxu1 }
 0x50d   : > { %v8770_v12 = vpop.f32.mrb[101].mxu1 }
 0x50e   : > { %v8824_v48 = vpop.permute.xlu1 %2899 }
 0x50f   : > { %v8839_v37 = vpop.permute.xlu0 %2599 }
 0x510   : > { %v8774_v1 = vpop.f32.mrb[102].mxu1  ;;  %11570 = vst [vmem:[#allocation64_spill] sm:$0xff] %v8839_v37 }
 0x511   : > { %v8776_v42 = vpop.f32.mrb[103].mxu1 }
 0x512   : > { %v8832_v20 = vpop.permute.xlu1 %2604 }
 0x513   : > { %11567 = vst [vmem:[#allocation61_spill] sm:$0xff] %v8832_v20 }
 0x514   : > { %v8780_v58 = vpop.f32.mrb[104].mxu1 }
 0x515   : > { %v8782_v34 = vpop.f32.mrb[105].mxu1 }
 0x516   : > { %11548 = vst [vmem:[#allocation42_spill] sm:$0xff] %v8782_v34 }
 0x518   : > { %v8788_v60 = vpop.f32.mrb[106].mxu1 }
 0x519   : > { %11549 = vst [vmem:[#allocation43_spill] sm:$0xff] %v8788_v60  ;;  %v8790_v40 = vpop.f32.mrb[107].mxu1 }
 0x51a   : > { %11550 = vst [vmem:[#allocation44_spill] sm:$0xff] %v8790_v40 }
 0x51c   : > { %v8794_v3 = vpop.f32.mrb[108].mxu1 }
 0x51d   : > { %11552 = vst [vmem:[#allocation46_spill] sm:$0xff] %v8794_v3  ;;  %v8796_v62 = vpop.f32.mrb[109].mxu1 }
 0x51e   : > { %11553 = vst [vmem:[#allocation47_spill] sm:$0xff] %v8796_v62 }
 0x520   : > { %v8800_v43 = vpop.f32.mrb[110].mxu1 }
 0x521   : > { %11555 = vst [vmem:[#allocation49_spill] sm:$0xff] %v8800_v43  ;;  %v8802_v15 = vpop.f32.mrb[111].mxu1 }
 0x522   : > { %11556 = vst [vmem:[#allocation50_spill] sm:$0xff] %v8802_v15 }
 0x524   : > { %v8808_v46 = vpop.f32.mrb[112].mxu1 }
 0x525   : > { %11557 = vst [vmem:[#allocation51_spill] sm:$0xff] %v8808_v46  ;;  %v8810_v24 = vpop.f32.mrb[113].mxu1 }
 0x526   : > { %11558 = vst [vmem:[#allocation52_spill] sm:$0xff] %v8810_v24 }
 0x528   : > { %v8814_v61 = vpop.f32.mrb[114].mxu1 }
 0x529   : > { %11560 = vst [vmem:[#allocation54_spill] sm:$0xff] %v8814_v61  ;;  %v8816_v32 = vpop.f32.mrb[115].mxu1  ;;  %v8845_v61 = vpop.permute.xlu1 %2909 }
 0x52a   : > { %11561 = vst [vmem:[#allocation55_spill] sm:$0xff] %v8816_v32  ;;  %v11245_v32 = vmov 0.0|0.0  }
 0x52b   : > { %6998 = vmatprep.subr.bf16.mxu0 %v11245_v32 }
 0x52c   : > { %v8820_v49 = vpop.f32.mrb[116].mxu1 }
 0x52d   : > { %11563 = vst [vmem:[#allocation57_spill] sm:$0xff] %v8820_v49  ;;  %v8822_v59 = vpop.f32.mrb[117].mxu1 }
 0x52e   : > { %11564 = vst [vmem:[#allocation58_spill] sm:$0xff] %v8822_v59 }
 0x530   : > { %v8828_v39 = vpop.f32.mrb[118].mxu1 }
 0x531   : > { %11565 = vst [vmem:[#allocation59_spill] sm:$0xff] %v8828_v39  ;;  %v8830_v31 = vpop.f32.mrb[119].mxu1  ;;  %v8847_v39 = vpop.permute.xlu0 %2904 }
 0x532   : > { %11566 = vst [vmem:[#allocation60_spill] sm:$0xff] %v8830_v31 }
 0x534   : > { %v8834_v45 = vpop.f32.mrb[120].mxu1 }
 0x535   : > { %11568 = vst [vmem:[#allocation62_spill] sm:$0xff] %v8834_v45  ;;  %v8836_v35 = vpop.f32.mrb[121].mxu1  ;;  %v8853_v45 = vpop.permute.xlu1 %2614 }
 0x536   : > { %11569 = vst [vmem:[#allocation63_spill] sm:$0xff] %v8836_v35  ;;  %11575 = vst [vmem:[#allocation69_spill] sm:$0xff] %v8853_v45  ;;  %v8859_v32 = vpop.permute.xlu0 %2609 }
 0x537   : > { %11578 = vst [vmem:[#allocation72_spill] sm:$0xff] %v8859_v32 }
 0x538   : > { %v8841_v59 = vpop.f32.mrb[122].mxu1 }
 0x539   : > { %11571 = vst [vmem:[#allocation65_spill] sm:$0xff] %v8841_v59  ;;  %v8843_v49 = vpop.f32.mrb[123].mxu1 }
 0x53a   : > { %11572 = vst [vmem:[#allocation66_spill] sm:$0xff] %v8843_v49  ;;  %v8865_v49 = vpop.permute.xlu1 %2919  ;;  %v8867_v46 = vpop.permute.xlu0 %2914 }
 0x53c   : > { %v8849_v31 = vpop.f32.mrb[124].mxu1 }
 0x53d   : > { %11573 = vst [vmem:[#allocation67_spill] sm:$0xff] %v8849_v31  ;;  %v8851_v20 = vpop.f32.mrb[125].mxu1 }
 0x53e   : > { %11574 = vst [vmem:[#allocation68_spill] sm:$0xff] %v8851_v20  ;;  %v8873_v20 = vpop.permute.xlu1 %2624 }
 0x53f   : > { %11583 = vst [vmem:[#allocation77_spill] sm:$0xff] %v8873_v20 }
 0x540   : > { %v8855_v35 = vpop.f32.mrb[126].mxu1 }
 0x541   : > { %11576 = vst [vmem:[#allocation70_spill] sm:$0xff] %v8855_v35  ;;  %v8857_v24 = vpop.f32.mrb[127].mxu1 }
 0x542   : > { %11577 = vst [vmem:[#allocation71_spill] sm:$0xff] %v8857_v24  ;;  %v8879_v24 = vpop.permute.xlu0 %2619 }
 0x543   : > { %11586 = vst [vmem:[#allocation80_spill] sm:$0xff] %v8879_v24  ;;  %v8903_v24 = vadd.f32 %v8602_v9, %v8784_v7 }
 0x544   : > { %v8861_v37 = vpop.f32.mrb[128].mxu1 }
 0x545   : > { %11579 = vst [vmem:[#allocation73_spill] sm:$0xff] %v8861_v37  ;;  %v8863_v59 = vpop.f32.mrb[129].mxu1  ;;  %11593 = vst [vmem:[#allocation87_spill] sm:$0xff] %v8903_v24 }
 0x546   : > { %11580 = vst [vmem:[#allocation74_spill] sm:$0xff] %v8863_v59  ;;  %v8885_v59 = vpop.permute.xlu1 %2929  ;;  %v8887_v43 = vpop.permute.xlu0 %2924 }
 0x547   : > { %v8975_v40 = vadd.f32 %v8677_v63, %v8885_v59 }
 0x548   : > { %v8869_v15 = vpop.f32.mrb[130].mxu1 }
 0x549   : > { %11581 = vst [vmem:[#allocation75_spill] sm:$0xff] %v8869_v15  ;;  %v8871_v31 = vpop.f32.mrb[131].mxu1  ;;  %v8964_v15 = vadd.f32 %v8666_v41, %v8867_v46  ;;  %11615 = vst [vmem:[#allocation108_spill] sm:$0xff] %v8975_v40 }
 0x54a   : > { %11582 = vst [vmem:[#allocation76_spill] sm:$0xff] %v8871_v31  ;;  %v8893_v31 = vadd.f32 %v8594_v6, %v8764_v8  ;;  %v8913_v6 = vadd.f32 %v8613_v2, %v8804_v5 }
 0x54b   : > { %11612 = vst [vmem:[#allocation105_spill] sm:$0xff] %v8964_v15 }
 0x54c   : > { %v8875_v45 = vpop.f32.mrb[132].mxu1  ;;  %11590 = vst [vmem:[#allocation84_spill] sm:$0xff] %v8893_v31  ;;  %11596 = vst [vmem:[#allocation90_spill] sm:$0xff] %v8913_v6 }
 0x54d   : > { %11584 = vst [vmem:[#allocation78_spill] sm:$0xff] %v8875_v45  ;;  %v8877_v35 = vpop.f32.mrb[133].mxu1  ;;  %v8939_v45 = vadd.f32 %v8631_v52, %v8826_v16  ;;  %v8960_v52 = vadd.f32 %v8661_v33, %v8865_v49 }
 0x54e   : > { %11585 = vst [vmem:[#allocation79_spill] sm:$0xff] %v8877_v35  ;;  %v8899_v35 = vadd.f32 %v8596_v51, %v8766_v11  ;;  %v8922_v51 = vadd.f32 %v8618_v55, %v8806_v30  ;;  %v8942_v55 = vmul.f32 0.05, %v8903_v24 }
 0x54f   : > { %11605 = vst [vmem:[#allocation98_spill] sm:$0xff] %v8939_v45  ;;  %11611 = vst [vmem:[#allocation104_spill] sm:$0xff] %v8960_v52  ;;  %v9012_v63 = vmul.f32 0.05, %v8960_v52  ;;  %v9135_v52 = vadd.f32 %v8754_v19, %v8885_v59 }
 0x550   : > { %v8881_v32 = vpop.f32.mrb[134].mxu1  ;;  %11592 = vst [vmem:[#allocation86_spill] sm:$0xff] %v8899_v35  ;;  %11599 = vst [vmem:[#allocation93_spill] sm:$0xff] %v8922_v51  ;;  %v8931_v2 = vmul.f32 0.05, %v8899_v35 }
 0x551   : > { %11587 = vst [vmem:[#allocation81_spill] sm:$0xff] %v8881_v32  ;;  %v8883_v37 = vpop.f32.mrb[135].mxu1  ;;  %v8909_v32 = vadd.f32 %v8604_v10, %v8786_v0  ;;  %v8928_v10 = vpop.permute.xlu0 %2629  ;;  %11606 = vst [vmem:[#allocation99_spill] sm:$0xff] %v8942_v55  ;;  %v8971_v3 = vmul.f32 0.05, %v8922_v51 }
 0x552   : > { %11588 = vst [vmem:[#allocation82_spill] sm:$0xff] %v8883_v37  ;;  %v8905_v37 = vpop.permute.xlu1 %2634  ;;  %11602 = vst [vmem:[#allocation95_spill] sm:$0xff] %v8928_v10  ;;  %v9015_v55 = vmul.f32 0.05, %v8964_v15  ;;  %v11699_v15 = vld [vmem:[#allocation55_spill] sm:$0xff] }
 0x553   : > { %11594 = vst [vmem:[#allocation88_spill] sm:$0xff] %v8905_v37  ;;  %11595 = vst [vmem:[#allocation89_spill] sm:$0xff] %v8909_v32  ;;  %v11601_v37 = vmov 0.0   ;;  %v8953_v10 = vmul.f32 0.05, %v8909_v32 }
 0x554   : > { %v8889_v62 = vpop.f32.mrb[136].mxu1  ;;  %6359 = vmatprep.mubr.msk.f32.mxu0 %vm7407_vm3, %v11601_v37  ;;  %11603 = vst [vmem:[#allocation96_spill] sm:$0xff] %v8931_v2  ;;  %v8950_v37 = vadd.f32 %v8650_v25, %v8847_v39  ;;  %11614 = vst [vmem:[#allocation107_spill] sm:$0xff] %v8971_v3  ;;  %v8991_v25 = vadd.f32 %v8682_v4, %v8887_v43  ;;  %v9030_v4 = vadd.f32 %v8709_v28, %v8764_v8 }
 0x555   : > { %11589 = vst [vmem:[#allocation83_spill] sm:$0xff] %v8889_v62  ;;  %v8895_v20 = vpop.f32.mrb[137].mxu1  ;;  %11609 = vst [vmem:[#allocation102_spill] sm:$0xff] %v8953_v10  ;;  %v9005_v2 = vpop.permute.xlu0 %2934  ;;  %v9043_v3 = vadd.f32 %v8714_v38, %v8766_v11  ;;  %v9080_v38 = vadd.f32 %v8736_v13, %v8806_v30  ;;  %v9118_v13 = vadd.f32 %v8748_v56, %v8865_v49 }
 0x556   : > { %11591 = vst [vmem:[#allocation85_spill] sm:$0xff] %v8895_v20  ;;  %v8918_v20 = vmul.f32 0.05, %v8893_v31  ;;  %11608 = vst [vmem:[#allocation101_spill] sm:$0xff] %v8950_v37  ;;  %v8979_v33 = vpop.permute.xlu1 %2939  ;;  %v8999_v31 = vmul.f32 0.05, %v8950_v37  ;;  %v9026_v35 = vadd.f32 %v8698_v23, %v9005_v2  ;;  %v9066_v23 = vadd.f32 %v8734_v29, %v8804_v5 }
 0x557   : > { %11619 = vst [vmem:[#allocation112_spill] sm:$0xff] %v8991_v25  ;;  %v9003_v41 = vadd.f32 %v8693_v26, %v8979_v33  ;;  %11623 = vst [vmem:[#allocation116_spill] sm:$0xff] %v9012_v63  ;;  %v9039_v26 = vmul.f32 0.05, %v8991_v25  ;;  %v9076_v10 = vmul.f32 0.05, %v9030_v4  ;;  %v9104_v29 = vadd.f32 %v8744_v57, %v8845_v61 }
 0x558   : > { %v8915_v62 = vpop.f32.mrb[138].mxu1  ;;  %11598 = vst [vmem:[#allocation92_spill] sm:$0xff] %v8918_v20  ;;  %11621 = vst [vmem:[#allocation114_spill] sm:$0xff] %v8999_v31  ;;  %v9087_v63 = vmul.f32 0.05, %v9043_v3  ;;  %v11734_v37 = vld [vmem:[#allocation73_spill] sm:$0xff] }
 0x559   : > { %11597 = vst [vmem:[#allocation91_spill] sm:$0xff] %v8915_v62  ;;  %v8924_v9 = vpop.f32.mrb[139].mxu1  ;;  %v8935_v62 = vadd.f32 %v8629_v17, %v8824_v48  ;;  %v8956_v17 = vmul.f32 0.05, %v8913_v6  ;;  %11622 = vst [vmem:[#allocation115_spill] sm:$0xff] %v9003_v41  ;;  %v9054_v6 = vadd.f32 %v8725_v50, %v8784_v7  ;;  %v9091_v50 = vadd.f32 %v8740_v44, %v8824_v48 }
 0x55a   : > { %11600 = vst [vmem:[#allocation94_spill] sm:$0xff] %v8924_v9  ;;  %v8946_v9 = vadd.f32 %v8644_v14, %v8845_v61  ;;  %11624 = vst [vmem:[#allocation117_spill] sm:$0xff] %v9015_v55  ;;  %v9050_v51 = vmul.f32 0.05, %v9003_v41  ;;  %v9131_v25 = vmul.f32 0.05, %v9080_v38  ;;  %v9149_v41 = vadd.f32 %v8756_v27, %v8887_v43 }
 0x55b   : > { %11604 = vst [vmem:[#allocation97_spill] sm:$0xff] %v8935_v62  ;;  %11610 = vst [vmem:[#allocation103_spill] sm:$0xff] %v8956_v17  ;;  %v8984_v34 = vmul.f32 0.05, %v8935_v62  ;;  %v9142_v55 = vmul.f32 0.05, %v9091_v50  ;;  %v9186_v27 = vadd.f32 %v8768_v22, %v8764_v8  ;;  %v9447_v62 = vadd.f32 %v11734_v37, %v8885_v59 }
 0x55c   : > { %11607 = vst [vmem:[#allocation100_spill] sm:$0xff] %v8946_v9  ;;  %v8966_v14 = vpop.f32.mrb[140].mxu1  ;;  %v8996_v20 = vmul.f32 0.05, %v8946_v9  ;;  %11626 = vst [vmem:[#allocation119_spill] sm:$0xff] %v9026_v35 }
 0x55d   : > { %11613 = vst [vmem:[#allocation106_spill] sm:$0xff] %v8966_v14  ;;  %v8977_v60 = vpop.f32.mrb[141].mxu1  ;;  %11617 = vst [vmem:[#allocation110_spill] sm:$0xff] %v8984_v34  ;;  %v8987_v14 = vmul.f32 0.05, %v8939_v45  ;;  %v9062_v34 = vadd.f32 %v8727_v47, %v8786_v0  ;;  %v11747_v45 = vld [vmem:[#allocation76_spill] sm:$0xff] }
 0x55e   : > { %11616 = vst [vmem:[#allocation109_spill] sm:$0xff] %v8977_v60  ;;  %11620 = vst [vmem:[#allocation113_spill] sm:$0xff] %v8996_v20  ;;  %v9022_v60 = vmul.f32 0.05, %v8975_v40  ;;  %v9073_v20 = vmul.f32 0.05, %v9026_v35 }
 0x55f   : > { %11618 = vst [vmem:[#allocation111_spill] sm:$0xff] %v8987_v14  ;;  %11627 = vst [vmem:[#allocation120_spill] sm:$0xff] %v9039_v26  ;;  %v9100_v40 = vmul.f32 0.05, %v9054_v6  ;;  %v9108_v26 = vadd.f32 %v8746_v54, %v8847_v39  ;;  %v9111_v44 = vmul.f32 0.05, %v9062_v34 }
 0x560   : > { %v9017_v24 = vpop.f32.mrb[142].mxu1  ;;  %11625 = vst [vmem:[#allocation118_spill] sm:$0xff] %v9022_v60  ;;  %11628 = vst [vmem:[#allocation121_spill] sm:$0xff] %v9043_v3  ;;  %v9095_v60 = vadd.f32 %v8742_v18, %v8826_v16  ;;  %v9114_v18 = vmul.f32 0.05, %v9066_v23 }
 0x561   : > { %v9032_v17 = vpop.f32.mrb[143].mxu1  ;;  %11629 = vst [vmem:[#allocation122_spill] sm:$0xff] %v9050_v51  ;;  %11630 = vst [vmem:[#allocation123_spill] sm:$0xff] %v9054_v6  ;;  %v9122_v51 = vadd.f32 %v8750_v21, %v8867_v46  ;;  %v9154_v19 = vmul.f32 0.05, %v9104_v29  ;;  %v9161_v21 = vadd.f32 %v8760_v36, %v8979_v33 }
 0x562   : > { %11631 = vst [vmem:[#allocation124_spill] sm:$0xff] %v9062_v34  ;;  %11632 = vst [vmem:[#allocation125_spill] sm:$0xff] %v9066_v23  ;;  %v9145_v54 = vmul.f32 0.05, %v9095_v60  ;;  %v9157_v35 = vmul.f32 0.05, %v9108_v26  ;;  %v9210_v23 = vadd.f32 %v8774_v1, %v8784_v7 }
 0x563   : > { %11633 = vst [vmem:[#allocation126_spill] sm:$0xff] %v9073_v20  ;;  %11634 = vst [vmem:[#allocation127_spill] sm:$0xff] %v9076_v10  ;;  %v9168_v3 = vmul.f32 0.05, %v9118_v13  ;;  %v9171_v20 = vmul.f32 0.05, %v9122_v51 }
 0x564   : > { %v9068_v28 = vpop.f32.mrb[144].mxu1  ;;  %11635 = vst [vmem:[#allocation128_spill] sm:$0xff] %v9080_v38  ;;  %11636 = vst [vmem:[#allocation129_spill] sm:$0xff] %v9087_v63  ;;  %v9178_v36 = vmul.f32 0.05, %v9135_v52  ;;  %v9182_v63 = vadd.f32 %v8762_v53, %v9005_v2  ;;  %v9222_v53 = vadd.f32 %v8780_v58, %v8804_v5  ;;  %v11670_v1 = vld [vmem:[#allocation43_spill] sm:$0xff] }
 0x565   : > { %v9082_v47 = vpop.f32.mrb[145].mxu1  ;;  %11637 = vst [vmem:[#allocation130_spill] sm:$0xff] %v9091_v50  ;;  %11638 = vst [vmem:[#allocation131_spill] sm:$0xff] %v9095_v60  ;;  %v9195_v6 = vmul.f32 0.05, %v9149_v41 }
 0x566   : > { %11639 = vst [vmem:[#allocation132_spill] sm:$0xff] %v9100_v40  ;;  %11640 = vst [vmem:[#allocation133_spill] sm:$0xff] %v9104_v29  ;;  %v9206_v38 = vmul.f32 0.05, %v9161_v21  ;;  %v11675_v29 = vld [vmem:[#allocation46_spill] sm:$0xff] }
 0x567   : > { %11641 = vst [vmem:[#allocation134_spill] sm:$0xff] %v9108_v26  ;;  %11642 = vst [vmem:[#allocation135_spill] sm:$0xff] %v9111_v44  ;;  %v9232_v44 = vmul.f32 0.05, %v9186_v27  ;;  %v9260_v58 = vadd.f32 %v11675_v29, %v8845_v61  ;;  %v11690_v26 = vld [vmem:[#allocation52_spill] sm:$0xff] }
 0x568   : > { %11643 = vst [vmem:[#allocation136_spill] sm:$0xff] %v9114_v18  ;;  %11644 = vst [vmem:[#allocation137_spill] sm:$0xff] %v9118_v13  ;;  %v9124_v57 = vpop.f32.mrb[146].mxu1 }
 0x569   : > { %11645 = vst [vmem:[#allocation138_spill] sm:$0xff] %v9122_v51  ;;  %11646 = vst [vmem:[#allocation139_spill] sm:$0xff] %v9131_v25  ;;  %v9137_v56 = vpop.f32.mrb[147].mxu1  ;;  %v9199_v25 = vadd.f32 %v8770_v12, %v8766_v11  ;;  %v11667_v12 = vld [vmem:[#allocation42_spill] sm:$0xff]  ;;  %v9256_v51 = vmul.f32 0.05, %v9210_v23 }
 0x56a   : > { %11647 = vst [vmem:[#allocation140_spill] sm:$0xff] %v9135_v52  ;;  %11648 = vst [vmem:[#allocation141_spill] sm:$0xff] %v9142_v55  ;;  %v9218_v55 = vadd.f32 %v8776_v42, %v8786_v0  ;;  %v11672_v52 = vld [vmem:[#allocation44_spill] sm:$0xff] }
 0x56b   : > { %11649 = vst [vmem:[#allocation142_spill] sm:$0xff] %v9145_v54  ;;  %11650 = vst [vmem:[#allocation143_spill] sm:$0xff] %v9149_v41  ;;  %v9243_v13 = vmul.f32 0.05, %v9199_v25  ;;  %v11686_v54 = vld [vmem:[#allocation51_spill] sm:$0xff] }
 0x56c   : > { %11651 = vst [vmem:[#allocation144_spill] sm:$0xff] %v9154_v19  ;;  %11652 = vst [vmem:[#allocation145_spill] sm:$0xff] %v9157_v35  ;;  %v9173_v40 = vpop.f32.mrb[148].mxu1  ;;  %v9229_v19 = vmul.f32 0.05, %v9182_v63  ;;  %v11681_v35 = vld [vmem:[#allocation49_spill] sm:$0xff]  ;;  %v9291_v60 = vadd.f32 %v11686_v54, %v8885_v59 }
 0x56d   : > { %11653 = vst [vmem:[#allocation146_spill] sm:$0xff] %v9161_v21  ;;  %11654 = vst [vmem:[#allocation147_spill] sm:$0xff] %v9168_v3  ;;  %v9188_v18 = vpop.f32.mrb[149].mxu1  ;;  %v9236_v3 = vadd.f32 %v11667_v12, %v8806_v30  ;;  %v9274_v12 = vadd.f32 %v11681_v35, %v8865_v49  ;;  %v9310_v54 = vmul.f32 0.05, %v9260_v58 }
 0x56e   : > { %11655 = vst [vmem:[#allocation148_spill] sm:$0xff] %v9171_v20  ;;  %11656 = vst [vmem:[#allocation149_spill] sm:$0xff] %v9178_v36  ;;  %v9247_v36 = vadd.f32 %v11670_v1, %v8824_v48  ;;  %v9251_v20 = vadd.f32 %v11672_v52, %v8826_v16  ;;  %v9267_v1 = vmul.f32 0.05, %v9218_v55  ;;  %v9270_v52 = vmul.f32 0.05, %v9222_v53 }
 0x56f   : > { %11657 = vst [vmem:[#allocation150_spill] sm:$0xff] %v9182_v63  ;;  %11658 = vst [vmem:[#allocation151_spill] sm:$0xff] %v9186_v27  ;;  %v9287_v50 = vmul.f32 0.05, %v9236_v3  ;;  %v9324_v63 = vmul.f32 0.05, %v9274_v12 }
 0x570   : > { %11659 = vst [vmem:[#allocation152_spill] sm:$0xff] %v9195_v6  ;;  %11660 = vst [vmem:[#allocation153_spill] sm:$0xff] %v9199_v25  ;;  %v9224_v22 = vpop.f32.mrb[150].mxu1  ;;  %v11677_v6 = vld [vmem:[#allocation47_spill] sm:$0xff]  ;;  %v9298_v34 = vmul.f32 0.05, %v9247_v36  ;;  %v9338_v25 = vadd.f32 %v11699_v15, %v9005_v2 }
 0x571   : > { %11661 = vst [vmem:[#allocation154_spill] sm:$0xff] %v9206_v38  ;;  %11662 = vst [vmem:[#allocation155_spill] sm:$0xff] %v9210_v23  ;;  %v9238_v42 = vpop.f32.mrb[151].mxu1  ;;  %v9264_v41 = vadd.f32 %v11677_v6, %v8847_v39  ;;  %v11683_v38 = vld [vmem:[#allocation50_spill] sm:$0xff]  ;;  %v9301_v6 = vmul.f32 0.05, %v9251_v20 }
 0x572   : > { %11663 = vst [vmem:[#allocation156_spill] sm:$0xff] %v9218_v55  ;;  %11664 = vst [vmem:[#allocation157_spill] sm:$0xff] %v9222_v53  ;;  %v9278_v21 = vadd.f32 %v11683_v38, %v8867_v46  ;;  %v11694_v38 = vld [vmem:[#allocation54_spill] sm:$0xff] }
 0x573   : > { %11665 = vst [vmem:[#allocation158_spill] sm:$0xff] %v9229_v19  ;;  %11666 = vst [vmem:[#allocation159_spill] sm:$0xff] %v9232_v44  ;;  %v9305_v44 = vadd.f32 %v11690_v26, %v8887_v43  ;;  %v9313_v19 = vmul.f32 0.05, %v9264_v41  ;;  %v11701_v26 = vld [vmem:[#allocation57_spill] sm:$0xff]  ;;  %v11711_v15 = vld [vmem:[#allocation62_spill] sm:$0xff] }
 0x574   : > { %11668 = vst [vmem:[#allocation42_spill] sm:$0xff] %v9236_v3  ;;  %11669 = vst [vmem:[#allocation160_spill] sm:$0xff] %v9243_v13  ;;  %v9280_v29 = vpop.f32.mrb[152].mxu1  ;;  %v9317_v13 = vadd.f32 %v11694_v38, %v8979_v33  ;;  %v9327_v27 = vmul.f32 0.05, %v9278_v21 }
 0x575   : > { %11671 = vst [vmem:[#allocation43_spill] sm:$0xff] %v9247_v36  ;;  %11673 = vst [vmem:[#allocation44_spill] sm:$0xff] %v9251_v20  ;;  %v9293_v35 = vpop.f32.mrb[153].mxu1  ;;  %v9334_v38 = vmul.f32 0.05, %v9291_v60  ;;  %v11709_v36 = vld [vmem:[#allocation60_spill] sm:$0xff] }
 0x576   : > { %11674 = vst [vmem:[#allocation161_spill] sm:$0xff] %v9256_v51  ;;  %11676 = vst [vmem:[#allocation46_spill] sm:$0xff] %v9260_v58  ;;  %v9351_v23 = vmul.f32 0.05, %v9305_v44  ;;  %v9362_v9 = vmul.f32 0.05, %v9317_v13 }
 0x577   : > { %11678 = vst [vmem:[#allocation47_spill] sm:$0xff] %v9264_v41  ;;  %11679 = vst [vmem:[#allocation162_spill] sm:$0xff] %v9267_v1  ;;  %v11707_v1 = vld [vmem:[#allocation59_spill] sm:$0xff]  ;;  %v9385_v58 = vmul.f32 0.05, %v9338_v25  ;;  %v11729_v41 = vld [vmem:[#allocation70_spill] sm:$0xff] }
 0x578   : > { %11680 = vst [vmem:[#allocation163_spill] sm:$0xff] %v9270_v52  ;;  %11682 = vst [vmem:[#allocation49_spill] sm:$0xff] %v9274_v12  ;;  %v9329_v51 = vpop.f32.mrb[154].mxu1  ;;  %v9342_v52 = vadd.f32 %v11701_v26, %v8764_v8  ;;  %v9378_v26 = vadd.f32 %v11711_v15, %v8804_v5  ;;  %v11738_v20 = vld [vmem:[#allocation74_spill] sm:$0xff] }
 0x579   : > { %11684 = vst [vmem:[#allocation50_spill] sm:$0xff] %v9278_v21  ;;  %11685 = vst [vmem:[#allocation164_spill] sm:$0xff] %v9287_v50  ;;  %v9344_v53 = vpop.f32.mrb[155].mxu1  ;;  %v11704_v50 = vld [vmem:[#allocation58_spill] sm:$0xff] }
 0x57a   : > { %11687 = vst [vmem:[#allocation51_spill] sm:$0xff] %v9291_v60  ;;  %11688 = vst [vmem:[#allocation165_spill] sm:$0xff] %v9298_v34  ;;  %v9355_v3 = vadd.f32 %v11704_v50, %v8766_v11  ;;  %v9366_v34 = vadd.f32 %v11707_v1, %v8784_v7  ;;  %v9388_v55 = vmul.f32 0.05, %v9342_v52  ;;  %v11715_v50 = vld [vmem:[#allocation63_spill] sm:$0xff]  ;;  %v11718_v1 = vld [vmem:[#allocation65_spill] sm:$0xff] }
 0x57b   : > { %11689 = vst [vmem:[#allocation166_spill] sm:$0xff] %v9301_v6  ;;  %11691 = vst [vmem:[#allocation52_spill] sm:$0xff] %v9305_v44  ;;  %v9374_v6 = vadd.f32 %v11709_v36, %v8786_v0  ;;  %v11720_v60 = vld [vmem:[#allocation66_spill] sm:$0xff] }
 0x57c   : > { %11692 = vst [vmem:[#allocation167_spill] sm:$0xff] %v9310_v54  ;;  %11693 = vst [vmem:[#allocation168_spill] sm:$0xff] %v9313_v19  ;;  %v9380_v54 = vpop.f32.mrb[156].mxu1  ;;  %v9399_v12 = vmul.f32 0.05, %v9355_v3  ;;  %v11723_v19 = vld [vmem:[#allocation67_spill] sm:$0xff] }
 0x57d   : > { %11695 = vst [vmem:[#allocation54_spill] sm:$0xff] %v9317_v13  ;;  %11696 = vst [vmem:[#allocation169_spill] sm:$0xff] %v9324_v63  ;;  %v9392_v63 = vadd.f32 %v11715_v50, %v8806_v30  ;;  %v9394_v36 = vpop.f32.mrb[157].mxu1  ;;  %v9412_v21 = vmul.f32 0.05, %v9366_v34  ;;  %v9416_v15 = vadd.f32 %v11723_v19, %v8845_v61  ;;  %v9430_v50 = vadd.f32 %v11729_v41, %v8865_v49 }
 0x57e   : > { %11697 = vst [vmem:[#allocation170_spill] sm:$0xff] %v9327_v27  ;;  %11698 = vst [vmem:[#allocation171_spill] sm:$0xff] %v9334_v38  ;;  %v9403_v38 = vadd.f32 %v11718_v1, %v8824_v48  ;;  %v9407_v27 = vadd.f32 %v11720_v60, %v8826_v16  ;;  %v9423_v1 = vmul.f32 0.05, %v9374_v6  ;;  %v9426_v60 = vmul.f32 0.05, %v9378_v26 }
 0x57f   : > { %11700 = vst [vmem:[#allocation55_spill] sm:$0xff] %v9338_v25  ;;  %11702 = vst [vmem:[#allocation57_spill] sm:$0xff] %v9342_v52  ;;  %v9443_v31 = vmul.f32 0.05, %v9392_v63  ;;  %v9466_v37 = vmul.f32 0.05, %v9416_v15 }
 0x580   : > { %11703 = vst [vmem:[#allocation172_spill] sm:$0xff] %v9351_v23  ;;  %11705 = vst [vmem:[#allocation58_spill] sm:$0xff] %v9355_v3  ;;  %v11725_v23 = vld [vmem:[#allocation68_spill] sm:$0xff]  ;;  %v9436_v19 = vpop.f32.mrb[158].mxu1  ;;  %v9454_v14 = vmul.f32 0.05, %v9403_v38  ;;  %v9494_v3 = vadd.f32 %v11747_v45, %v9005_v2 }
 0x581   : > { %11706 = vst [vmem:[#allocation173_spill] sm:$0xff] %v9362_v9  ;;  %11708 = vst [vmem:[#allocation59_spill] sm:$0xff] %v9366_v34  ;;  %v9420_v44 = vadd.f32 %v11725_v23, %v8847_v39  ;;  %v11731_v9 = vld [vmem:[#allocation71_spill] sm:$0xff]  ;;  %v9449_v41 = vpop.f32.mrb[159].mxu1  ;;  %v9457_v23 = vmul.f32 0.05, %v9407_v27 }
 0x582   : > { %11710 = vst [vmem:[#allocation60_spill] sm:$0xff] %v9374_v6  ;;  %11712 = vst [vmem:[#allocation62_spill] sm:$0xff] %v9378_v26  ;;  %v9434_v13 = vadd.f32 %v11731_v9, %v8867_v46  ;;  %v11742_v9 = vld [vmem:[#allocation75_spill] sm:$0xff]  ;;  %v9480_v25 = vmul.f32 0.05, %v9430_v50 }
 0x583   : > { %11713 = vst [vmem:[#allocation174_spill] sm:$0xff] %v9385_v58  ;;  %11714 = vst [vmem:[#allocation175_spill] sm:$0xff] %v9388_v55  ;;  %v9461_v55 = vadd.f32 %v11738_v20, %v8887_v43  ;;  %v9469_v58 = vmul.f32 0.05, %v9420_v44  ;;  %v11748_v20 = vld [vmem:[#allocation78_spill] sm:$0xff]  ;;  %v11757_v45 = vld [vmem:[#allocation83_spill] sm:$0xff] }
 0x584   : > { %11716 = vst [vmem:[#allocation63_spill] sm:$0xff] %v9392_v63  ;;  %11717 = vst [vmem:[#allocation176_spill] sm:$0xff] %v9399_v12  ;;  %v9473_v12 = vadd.f32 %v11742_v9, %v8979_v33  ;;  %v9483_v52 = vmul.f32 0.05, %v9434_v13  ;;  %v9490_v9 = vmul.f32 0.05, %v9447_v62 }
 0x585   : > { %11719 = vst [vmem:[#allocation65_spill] sm:$0xff] %v9403_v38  ;;  %11721 = vst [vmem:[#allocation66_spill] sm:$0xff] %v9407_v27  ;;  %v9507_v34 = vmul.f32 0.05, %v9461_v55  ;;  %v11756_v38 = vld [vmem:[#allocation82_spill] sm:$0xff]  ;;  %v9603_v27 = vadd.f32 %v9068_v28, %v8885_v59 }
 0x586   : > { %11722 = vst [vmem:[#allocation177_spill] sm:$0xff] %v9412_v21  ;;  %11724 = vst [vmem:[#allocation67_spill] sm:$0xff] %v9416_v15  ;;  %v9485_v21 = vpop.f32.mrb[160].mxu1  ;;  %v9518_v32 = vmul.f32 0.05, %v9473_v12 }
 0x587   : > { %11726 = vst [vmem:[#allocation68_spill] sm:$0xff] %v9420_v44  ;;  %11727 = vst [vmem:[#allocation178_spill] sm:$0xff] %v9423_v1  ;;  %v9500_v26 = vpop.f32.mrb[161].mxu1  ;;  %v11754_v1 = vld [vmem:[#allocation81_spill] sm:$0xff]  ;;  %v9541_v15 = vmul.f32 0.05, %v9494_v3 }
 0x588   : > { %11728 = vst [vmem:[#allocation179_spill] sm:$0xff] %v9426_v60  ;;  %11730 = vst [vmem:[#allocation70_spill] sm:$0xff] %v9430_v50  ;;  %v9498_v60 = vadd.f32 %v11748_v20, %v8764_v8  ;;  %v9534_v20 = vadd.f32 %v11757_v45, %v8804_v5 }
 0x589   : > { %11732 = vst [vmem:[#allocation71_spill] sm:$0xff] %v9434_v13  ;;  %11733 = vst [vmem:[#allocation180_spill] sm:$0xff] %v9443_v31  ;;  %v11751_v31 = vld [vmem:[#allocation79_spill] sm:$0xff] }
 0x58a   : > { %11735 = vst [vmem:[#allocation73_spill] sm:$0xff] %v9447_v62  ;;  %11736 = vst [vmem:[#allocation181_spill] sm:$0xff] %v9454_v14  ;;  %v9511_v63 = vadd.f32 %v11751_v31, %v8766_v11  ;;  %v9522_v14 = vadd.f32 %v11754_v1, %v8784_v7  ;;  %v9544_v6 = vmul.f32 0.05, %v9498_v60  ;;  %v11761_v31 = vld [vmem:[#allocation85_spill] sm:$0xff]  ;;  %v11764_v1 = vld [vmem:[#allocation91_spill] sm:$0xff] }
 0x58b   : > { %11737 = vst [vmem:[#allocation182_spill] sm:$0xff] %v9457_v23  ;;  %11739 = vst [vmem:[#allocation74_spill] sm:$0xff] %v9461_v55  ;;  %v9530_v23 = vadd.f32 %v11756_v38, %v8786_v0  ;;  %v11765_v62 = vld [vmem:[#allocation94_spill] sm:$0xff] }
 0x58c   : > { %11740 = vst [vmem:[#allocation183_spill] sm:$0xff] %v9466_v37  ;;  %11741 = vst [vmem:[#allocation184_spill] sm:$0xff] %v9469_v58  ;;  %v9536_v37 = vpop.f32.mrb[162].mxu1  ;;  %v9555_v50 = vmul.f32 0.05, %v9511_v63  ;;  %v11767_v58 = vld [vmem:[#allocation106_spill] sm:$0xff] }
 0x58d   : > { %11743 = vst [vmem:[#allocation75_spill] sm:$0xff] %v9473_v12  ;;  %11744 = vst [vmem:[#allocation185_spill] sm:$0xff] %v9480_v25  ;;  %v9548_v25 = vadd.f32 %v11761_v31, %v8806_v30  ;;  %v9550_v38 = vpop.f32.mrb[163].mxu1  ;;  %v9568_v13 = vmul.f32 0.05, %v9522_v14  ;;  %v9572_v45 = vadd.f32 %v11767_v58, %v8845_v61  ;;  %v9586_v31 = vadd.f32 %v9017_v24, %v8865_v49 }
 0x58e   : > { %11745 = vst [vmem:[#allocation186_spill] sm:$0xff] %v9483_v52  ;;  %11746 = vst [vmem:[#allocation187_spill] sm:$0xff] %v9490_v9  ;;  %v9559_v9 = vadd.f32 %v11764_v1, %v8824_v48  ;;  %v9563_v52 = vadd.f32 %v11765_v62, %v8826_v16  ;;  %v9579_v1 = vmul.f32 0.05, %v9530_v23  ;;  %v9582_v62 = vmul.f32 0.05, %v9534_v20 }
 0x58f   : > { %11749 = vst [vmem:[#allocation76_spill] sm:$0xff] %v9498_v60  ;;  %11750 = vst [vmem:[#allocation78_spill] sm:$0xff] %v9507_v34  ;;  %v11769_v34 = vld [vmem:[#allocation109_spill] sm:$0xff]  ;;  %v9592_v58 = vpop.f32.mrb[164].mxu1  ;;  %v9599_v44 = vmul.f32 0.05, %v9548_v25  ;;  %v9617_v12 = vadd.f32 %v9082_v47, %v8887_v43 }
 0x590   : > { %11752 = vst [vmem:[#allocation79_spill] sm:$0xff] %v9511_v63  ;;  %11753 = vst [vmem:[#allocation188_spill] sm:$0xff] %v9518_v32  ;;  %v9576_v55 = vadd.f32 %v11769_v34, %v8847_v39  ;;  %v9590_v32 = vadd.f32 %v9032_v17, %v8867_v46  ;;  %v9605_v24 = vpop.f32.mrb[165].mxu1  ;;  %v9610_v10 = vmul.f32 0.05, %v9559_v9  ;;  %v9646_v17 = vadd.f32 %v9124_v57, %v8979_v33 }
 0x591   : > { %11755 = vst [vmem:[#allocation81_spill] sm:$0xff] %v9522_v14  ;;  %11758 = vst [vmem:[#allocation82_spill] sm:$0xff] %v9534_v20  ;;  %v9613_v34 = vmul.f32 0.05, %v9563_v52  ;;  %v9622_v28 = vmul.f32 0.05, %v9572_v45  ;;  %v9675_v20 = vadd.f32 %v9224_v22, %v8784_v7  ;;  %v9683_v57 = vadd.f32 %v9238_v42, %v8786_v0 }
 0x592   : > { %11759 = vst [vmem:[#allocation83_spill] sm:$0xff] %v9541_v15  ;;  %11760 = vst [vmem:[#allocation189_spill] sm:$0xff] %v9544_v6  ;;  %v9625_v60 = vmul.f32 0.05, %v9576_v55  ;;  %v9632_v63 = vmul.f32 0.05, %v9586_v31 }
 0x593   : > { %11762 = vst [vmem:[#allocation85_spill] sm:$0xff] %v9548_v25  ;;  %11763 = vst [vmem:[#allocation190_spill] sm:$0xff] %v9555_v50  ;;  %v9635_v47 = vmul.f32 0.05, %v9590_v32  ;;  %v9637_v15 = vpop.f32.mrb[166].mxu1  ;;  %v9650_v50 = vadd.f32 %v9137_v56, %v9005_v2  ;;  %v9671_v25 = vadd.f32 %v9188_v18, %v8766_v11  ;;  %v9687_v56 = vadd.f32 %v9280_v29, %v8804_v5 }
 0x594   : > { %11766 = vst [vmem:[#allocation91_spill] sm:$0xff] %v9568_v13  ;;  %11768 = vst [vmem:[#allocation94_spill] sm:$0xff] %v9572_v45  ;;  %v9642_v13 = vmul.f32 0.05, %v9603_v27  ;;  %v9659_v6 = vmul.f32 0.05, %v9617_v12  ;;  %v9751_v45 = vadd.f32 %v9485_v21, %v8885_v59 }
 0x595   : > { %11770 = vst [vmem:[#allocation106_spill] sm:$0xff] %v9576_v55  ;;  %11771 = vst [vmem:[#allocation109_spill] sm:$0xff] %v9582_v62  ;;  %v9652_v62 = vpop.f32.mrb[167].mxu1  ;;  %v9692_v22 = vmul.f32 0.05, %v9646_v17 }
 0x596   : > { %11772 = vst [vmem:[#allocation191_spill] sm:$0xff] %v9586_v31  ;;  %11773 = vst [vmem:[#allocation192_spill] sm:$0xff] %v9590_v32  ;;  %v6713_v18 = vpop.f32.mrb[168].mxu1  ;;  %v9695_v14 = vmul.f32 0.05, %v9650_v50  ;;  %v9740_v31 = vadd.f32 %v9449_v41, %v8867_v46 }
 0x597   : > { %11774 = vst [vmem:[#allocation193_spill] sm:$0xff] %v9599_v44  ;;  %11775 = vst [vmem:[#allocation194_spill] sm:$0xff] %v9603_v27  ;;  %v9663_v44 = vadd.f32 %v9173_v40, %v8764_v8  ;;  %v9699_v40 = vadd.f32 %v9293_v35, %v8806_v30  ;;  %v4654_v42 = vpop.f32.mrb[169].mxu1  ;;  %v9715_v27 = vmul.f32 0.05, %v9671_v25 }
 0x598   : > { %11776 = vst [vmem:[#allocation195_spill] sm:$0xff] %v9617_v12  ;;  %11777 = vst [vmem:[#allocation196_spill] sm:$0xff] %v9622_v28  ;;  %v9708_v28 = vadd.f32 %v9329_v51, %v8824_v48  ;;  %v9718_v35 = vmul.f32 0.05, %v9675_v20  ;;  %v9729_v51 = vmul.f32 0.05, %v9683_v57  ;;  %v9736_v12 = vadd.f32 %v9436_v19, %v8865_v49 }
 0x599   : > { %11778 = vst [vmem:[#allocation197_spill] sm:$0xff] %v9625_v60  ;;  %11779 = vst [vmem:[#allocation198_spill] sm:$0xff] %v9632_v63  ;;  %v9704_v29 = vmul.f32 0.05, %v9663_v44  ;;  %v9722_v63 = vadd.f32 %v9380_v54, %v8845_v61  ;;  %v6716_v54 = vpop.f32.mrb[170].mxu1 }
 0x59a   : > { %11780 = vst [vmem:[#allocation199_spill] sm:$0xff] %v9635_v47  ;;  %11781 = vst [vmem:[#allocation200_spill] sm:$0xff] %v9642_v13  ;;  %v9712_v13 = vadd.f32 %v9344_v53, %v8826_v16  ;;  %v9732_v53 = vmul.f32 0.05, %v9687_v56  ;;  %v9747_v32 = vmul.f32 0.05, %v9699_v40  ;;  %v9763_v47 = vadd.f32 %v9500_v26, %v8887_v43 }
 0x59b   : > { %11782 = vst [vmem:[#allocation201_spill] sm:$0xff] %v9659_v6  ;;  %11783 = vst [vmem:[#allocation202_spill] sm:$0xff] %v9663_v44  ;;  %v9726_v6 = vadd.f32 %v9394_v36, %v8847_v39  ;;  %v4664_v19 = vpop.f32.mrb[171].mxu1  ;;  %v9756_v41 = vmul.f32 0.05, %v9708_v28  ;;  %v9796_v44 = vadd.f32 %v9550_v38, %v9005_v2  ;;  %v9830_v38 = vadd.f32 %v6713_v18, %v8804_v5 }
 0x59c   : > { %11784 = vst [vmem:[#allocation203_spill] sm:$0xff] %v9675_v20  ;;  %11785 = vst [vmem:[#allocation204_spill] sm:$0xff] %v9687_v56  ;;  %v9759_v55 = vmul.f32 0.05, %v9712_v13  ;;  %v9780_v26 = vmul.f32 0.05, %v9736_v12  ;;  %v9792_v20 = vadd.f32 %v9536_v37, %v8979_v33  ;;  %v9827_v37 = vadd.f32 %v9652_v62, %v8786_v0 }
 0x59d   : > { %11786 = vst [vmem:[#allocation205_spill] sm:$0xff] %v9692_v22  ;;  %11787 = vst [vmem:[#allocation206_spill] sm:$0xff] %v9699_v40  ;;  %v9770_v22 = vmul.f32 0.05, %v9722_v63  ;;  %v9773_v60 = vmul.f32 0.05, %v9726_v6  ;;  %v9815_v40 = vadd.f32 %v9605_v24, %v8766_v11  ;;  %v9841_v56 = vadd.f32 %v4654_v42, %v8806_v30 }
 0x59e   : > { %11788 = vst [vmem:[#allocation207_spill] sm:$0xff] %v9704_v29  ;;  %11789 = vst [vmem:[#allocation208_spill] sm:$0xff] %v9715_v27  ;;  %v9783_v36 = vmul.f32 0.05, %v9740_v31  ;;  %v6719_v27 = vpop.f32.mrb[172].mxu1  ;;  %v9852_v24 = vadd.f32 %v4664_v19, %v8826_v16 }
 0x59f   : > { %11790 = vst [vmem:[#allocation209_spill] sm:$0xff] %v9718_v35  ;;  %11791 = vst [vmem:[#allocation210_spill] sm:$0xff] %v9722_v63  ;;  %v9788_v35 = vmul.f32 0.05, %v9751_v45  ;;  %v4674_v29 = vpop.f32.mrb[173].mxu1  ;;  %v9861_v42 = vadd.f32 %v6719_v27, %v8845_v61 }
 0x5a0   : > { %11792 = vst [vmem:[#allocation211_spill] sm:$0xff] %v9726_v6  ;;  %11793 = vst [vmem:[#allocation212_spill] sm:$0xff] %v9732_v53  ;;  %v9803_v21 = vmul.f32 0.05, %v9763_v47  ;;  %v9819_v53 = vadd.f32 %v9637_v15, %v8784_v7  ;;  %v9835_v15 = vmul.f32 0.05, %v9792_v20  ;;  %v9864_v62 = vadd.f32 %v4674_v29, %v8847_v39 }
 0x5a1   : > { %11794 = vst [vmem:[#allocation213_spill] sm:$0xff] %v9736_v12  ;;  %11795 = vst [vmem:[#allocation214_spill] sm:$0xff] %v9740_v31  ;;  %v9838_v63 = vmul.f32 0.05, %v9796_v44  ;;  %v9894_v6 = vmul.f32 0.05, %v9852_v24 }
 0x5a2   : > { %11796 = vst [vmem:[#allocation215_spill] sm:$0xff] %v9747_v32  ;;  %11797 = vst [vmem:[#allocation216_spill] sm:$0xff] %v9751_v45  ;;  %v9807_v32 = vadd.f32 %v9592_v58, %v8764_v8  ;;  %v9858_v45 = vmul.f32 0.05, %v9819_v53 }
 0x5a3   : > { %11798 = vst [vmem:[#allocation217_spill] sm:$0xff] %v9756_v41  ;;  %11799 = vst [vmem:[#allocation218_spill] sm:$0xff] %v9763_v47 }
 0x5a4   : > { %11800 = vst [vmem:[#allocation219_spill] sm:$0xff] %v9770_v22  ;;  %11801 = vst [vmem:[#allocation220_spill] sm:$0xff] %v9773_v60  ;;  %v6722_v22 = vpop.f32.mrb[174].mxu1  ;;  %v9846_v18 = vmul.f32 0.05, %v9807_v32 }
 0x5a5   : > { %11802 = vst [vmem:[#allocation221_spill] sm:$0xff] %v9780_v26  ;;  %11803 = vst [vmem:[#allocation222_spill] sm:$0xff] %v9783_v36  ;;  %v4684_v58 = vpop.f32.mrb[175].mxu1  ;;  %v9849_v26 = vadd.f32 %v6716_v54, %v8824_v48  ;;  %v9870_v54 = vmul.f32 0.05, %v9830_v38  ;;  %v9873_v19 = vadd.f32 %v6722_v22, %v8865_v49 }
 0x5a6   : > { %11804 = vst [vmem:[#allocation223_spill] sm:$0xff] %v9788_v35  ;;  %11805 = vst [vmem:[#allocation224_spill] sm:$0xff] %v9792_v20  ;;  %v9855_v35 = vmul.f32 0.05, %v9815_v40  ;;  %v9876_v47 = vadd.f32 %v4684_v58, %v8867_v46  ;;  %v6725_v12 = vpop.f32.mrb[176].mxu1 }
 0x5a7   : > { %11806 = vst [vmem:[#allocation225_spill] sm:$0xff] %v9796_v44  ;;  %11807 = vst [vmem:[#allocation226_spill] sm:$0xff] %v9803_v21  ;;  %v9867_v21 = vmul.f32 0.05, %v9827_v37  ;;  %v9883_v36 = vmul.f32 0.05, %v9841_v56  ;;  %v9886_v31 = vadd.f32 %v6725_v12, %v8885_v59 }
 0x5a8   : > { %11808 = vst [vmem:[#allocation227_spill] sm:$0xff] %v9807_v32  ;;  %11809 = vst [vmem:[#allocation228_spill] sm:$0xff] %v9815_v40  ;;  %v4694_v60 = vpop.f32.mrb[177].mxu1  ;;  %v9891_v58 = vmul.f32 0.05, %v9849_v26 }
 0x5a9   : > { %11810 = vst [vmem:[#allocation229_spill] sm:$0xff] %v9819_v53  ;;  %11811 = vst [vmem:[#allocation230_spill] sm:$0xff] %v9827_v37  ;;  %v9897_v27 = vadd.f32 %v4694_v60, %v8887_v43  ;;  %v9907_v22 = vmul.f32 0.05, %v9864_v62  ;;  %v9914_v60 = vmul.f32 0.05, %v9873_v19 }
 0x5aa   : > { %11812 = vst [vmem:[#allocation231_spill] sm:$0xff] %v9830_v38  ;;  %11813 = vst [vmem:[#allocation232_spill] sm:$0xff] %v9835_v15  ;;  %v9904_v15 = vmul.f32 0.05, %v9861_v42  ;;  %v9917_v29 = vmul.f32 0.05, %v9876_v47 }
 0x5ab   : > { %11814 = vst [vmem:[#allocation233_spill] sm:$0xff] %v9838_v63  ;;  %11815 = vst [vmem:[#allocation234_spill] sm:$0xff] %v9841_v56  ;;  %v9925_v53 = vmul.f32 0.05, %v9897_v27  ;;  %v6273_v32 = vpop.f32.mrb[68].mxu0  ;;  %v11839_v37 = vld [vmem:[#allocation38_spill] sm:$0xff] }
 0x5ac   : > { %11816 = vst [vmem:[#allocation235_spill] sm:$0xff] %v9846_v18  ;;  %11817 = vst [vmem:[#allocation236_spill] sm:$0xff] %v9849_v26  ;;  %v2757_v40 = vadd.f32 %v6273_v32, %v11839_v37  ;;  %v11842_v63 = vld [vmem:[#allocation39_spill] sm:$0xff] }
 0x5ad   : > { %11818 = vst [vmem:[#allocation237_spill] sm:$0xff] %v9852_v24  ;;  %11819 = vst [vmem:[#allocation238_spill] sm:$0xff] %v9855_v35  ;;  %v6728_v35 = vpop.f32.mrb[178].mxu1 }
 0x5ae   : > { %11820 = vst [vmem:[#allocation239_spill] sm:$0xff] %v9858_v45  ;;  %11821 = vst [vmem:[#allocation240_spill] sm:$0xff] %v9861_v42  ;;  %v9922_v45 = vmul.f32 0.05, %v9886_v31  ;;  %v9928_v18 = vadd.f32 %v6728_v35, %v8979_v33  ;;  %v2831_v37 = vmul.f32 0.05, %v2757_v40 }
 0x5af   : > { %11822 = vst [vmem:[#allocation241_spill] sm:$0xff] %v9864_v62  ;;  %11823 = vst [vmem:[#allocation242_spill] sm:$0xff] %v9867_v21  ;;  %v11846_v21 = vld [vmem:[#allocation84_spill] sm:$0xff] }
 0x5b0   : > { %11824 = vst [vmem:[#allocation243_spill] sm:$0xff] %v9870_v54  ;;  %11825 = vst [vmem:[#allocation244_spill] sm:$0xff] %v9873_v19  ;;  %v4704_v54 = vpop.f32.mrb[179].mxu1  ;;  %v9943_v20 = vmul.f32 0.05, %v9928_v18  ;;  %v9960_v32 = vmax.f32 %v2757_v40, %v2831_v37  ;;  %v11847_v40 = vld [vmem:[#allocation92_spill] sm:$0xff] }
 0x5b1   : > { %11826 = vst [vmem:[#allocation245_spill] sm:$0xff] %v9876_v47  ;;  %11827 = vst [vmem:[#allocation246_spill] sm:$0xff] %v9883_v36  ;;  %v9936_v12 = vadd.f32 %v4704_v54, %v9005_v2  ;;  %v2751_v36 = vpop.f32.mrb[69].mxu0  ;;  %v11848_v37 = vmax.f32 %v11846_v21, %v11847_v40  ;;  %v11854_v40 = vld [vmem:[#allocation45_spill] sm:$0xff] }
 0x5b2   : > { %11828 = vst [vmem:[#allocation247_spill] sm:$0xff] %v9886_v31  ;;  %11829 = vst [vmem:[#allocation248_spill] sm:$0xff] %v9891_v58  ;;  %v2752_v38 = vadd.f32 %v2751_v36, %v11842_v63  ;;  %v6774_v58 = vpop.f32.mrb[180].mxu1  ;;  %v6276_v36 = vpop.f32.mrb[70].mxu0  ;;  %v11845_v31 = vld [vmem:[#allocation41_spill] sm:$0xff] }
 0x5b3   : > { %11830 = vst [vmem:[#allocation249_spill] sm:$0xff] %v9894_v6  ;;  %11831 = vst [vmem:[#allocation250_spill] sm:$0xff] %v9897_v27  ;;  %v9951_v54 = vmul.f32 0.05, %v9936_v12  ;;  %v4903_v63 = vadd.f32 %v6774_v58, %v8764_v8  ;;  %v4897_v42 = vpop.f32.mrb[181].mxu1  ;;  %v2761_v47 = vpop.f32.mrb[71].mxu0 }
 0x5b4   : > { %11832 = vst [vmem:[#allocation251_spill] sm:$0xff] %v9904_v15  ;;  %11833 = vst [vmem:[#allocation252_spill] sm:$0xff] %v9907_v22  ;;  %v2830_v15 = vmul.f32 0.05, %v2752_v38  ;;  %v2762_v8 = vadd.f32 %v2761_v47, %v11845_v31  ;;  %v6777_v27 = vpop.f32.mrb[182].mxu1  ;;  %v6279_v56 = vpop.f32.mrb[72].mxu0 }
 0x5b5   : > { %11834 = vst [vmem:[#allocation253_spill] sm:$0xff] %v9914_v60  ;;  %11835 = vst [vmem:[#allocation254_spill] sm:$0xff] %v9917_v29  ;;  %v11844_v60 = vld [vmem:[#allocation40_spill] sm:$0xff]  ;;  %v4898_v29 = vadd.f32 %v4897_v42, %v8766_v11  ;;  %v4977_v35 = vmul.f32 0.05, %v4903_v63  ;;  %v11849_v11 = vld [vmem:[#allocation127_spill] sm:$0xff] }
 0x5b6   : > { %11836 = vst [vmem:[#allocation255_spill] sm:$0xff] %v9922_v45  ;;  %11837 = vst [vmem:[#allocation256_spill] sm:$0xff] %v9925_v53  ;;  %v2767_v19 = vadd.f32 %v6276_v36, %v11844_v60  ;;  %v9966_v45 = vmax.f32 %v2752_v38, %v2830_v15  ;;  %v11850_v42 = vmax.f32 %v9030_v4, %v11849_v11  ;;  %v2832_v38 = vmul.f32 0.05, %v2762_v8  ;;  %v4907_v31 = vpop.f32.mrb[183].mxu1  ;;  %v11851_v47 = vld [vmem:[#allocation86_spill] sm:$0xff] }
 0x5b7   : > { %11838 = vst [vmem:[#allocation257_spill] sm:$0xff] %v9928_v18  ;;  %11840 = vst [vmem:[#allocation38_spill] sm:$0xff] %v9936_v12  ;;  %v4976_v53 = vmul.f32 0.05, %v4898_v29  ;;  %v4993_v36 = vmax.f32 %v4903_v63, %v4977_v35  ;;  %v4913_v15 = vadd.f32 %v6777_v27, %v8784_v7  ;;  %v11852_v18 = vld [vmem:[#allocation96_spill] sm:$0xff]  ;;  %v4908_v4 = vadd.f32 %v4907_v31, %v8786_v0  ;;  %v2771_v11 = vpop.f32.mrb[73].mxu0 }
 0x5b8   : > { %11841 = vst [vmem:[#allocation258_spill] sm:$0xff] %v9943_v20  ;;  %11843 = vst [vmem:[#allocation39_spill] sm:$0xff] %v9951_v54  ;;  %v2833_v58 = vmul.f32 0.05, %v2767_v19  ;;  %v3168_v20 = vmul.f32 %v11848_v37, %v9960_v32  ;;  %v9977_v60 = vmul.f32 %v11850_v42, %v9960_v32  ;;  %v11853_v54 = vmax.f32 %v11851_v47, %v11852_v18  ;;  %v11856_v27 = vld [vmem:[#allocation48_spill] sm:$0xff]  ;;  %v11872_v6 = vld [vmem:[#allocation61_spill] sm:$0xff] }
 0x5b9   : > { %v4992_v21 = vmax.f32 %v4898_v29, %v4976_v53  ;;  %v2777_v37 = vadd.f32 %v6279_v56, %v11854_v40  ;;  %v9989_v35 = vmul.f32 %v4993_v36, %v9960_v32  ;;  %v9991_v63 = vmax.f32 %v2762_v8, %v2832_v38  ;;  %v11858_v36 = vld [vmem:[#allocation89_spill] sm:$0xff]  ;;  %v11859_v8 = vld [vmem:[#allocation102_spill] sm:$0xff]  ;;  %v11870_v40 = vld [vmem:[#allocation107_spill] sm:$0xff] }
 0x5ba   : > { %v3167_v12 = vmul.f32 %v11853_v54, %v9966_v45  ;;  %v9984_v22 = vmax.f32 %v2767_v19, %v2833_v58  ;;  %v4979_v7 = vmul.f32 0.05, %v4913_v15  ;;  %v2772_v42 = vadd.f32 %v2771_v11, %v11856_v27  ;;  %v6780_v54 = vpop.f32.mrb[184].mxu1  ;;  %v6282_v58 = vpop.f32.mrb[74].mxu0  ;;  %v11861_v27 = vld [vmem:[#allocation53_spill] sm:$0xff] }
 0x5bb   : > { %11855 = vst [vmem:[#allocation40_spill] sm:$0xff] %v9989_v35  ;;  %v9995_v62 = vmul.f32 %v4992_v21, %v9966_v45  ;;  %v2835_v18 = vmul.f32 0.05, %v2777_v37  ;;  %v4978_v19 = vmul.f32 0.05, %v4908_v4  ;;  %v4923_v0 = vadd.f32 %v6780_v54, %v8804_v5  ;;  %v4917_v31 = vpop.f32.mrb[185].mxu1 }
 0x5bc   : > { %v6999_v53 = vpack.c.bf16 %v3168_v20, %v3167_v12  ;;  %v4995_v29 = vmax.f32 %v4913_v15, %v4979_v7  ;;  %v2834_v56 = vmul.f32 0.05, %v2772_v42  ;;  %v11860_v38 = vmax.f32 %v11858_v36, %v11859_v8  ;;  %v2781_v20 = vpop.f32.mrb[75].mxu0 }
 0x5bd   : > { %11857 = vst [vmem:[#allocation41_spill] sm:$0xff] %v9995_v62  ;;  %v10004_v21 = vmax.f32 %v2777_v37, %v2835_v18  ;;  %v4994_v11 = vmax.f32 %v4908_v4, %v4978_v19  ;;  %v2787_v26 = vadd.f32 %v6282_v58, %v11861_v27  ;;  %v4981_v15 = vmul.f32 0.05, %v4923_v0  ;;  %v11865_v18 = vld [vmem:[#allocation56_spill] sm:$0xff]  ;;  %v6783_v19 = vpop.f32.mrb[186].mxu1  ;;  %v11867_v58 = vld [vmem:[#allocation99_spill] sm:$0xff] }
 0x5be   : > { %v3169_v47 = vmul.f32 %v11860_v38, %v9991_v63  ;;  %7000 = vmatpush3.bf16.msra.mxu0 %v6999_v53  ;;  %v10008_v12 = vmul.f32 %v4995_v29, %v9984_v22  ;;  %v10010_v5 = vmax.f32 %v2772_v42, %v2834_v56  ;;  %v4918_v7 = vadd.f32 %v4917_v31, %v8806_v30  ;;  %v11866_v53 = vld [vmem:[#allocation87_spill] sm:$0xff]  ;;  %v6285_v27 = vpop.f32.mrb[76].mxu0  ;;  %v4927_v30 = vpop.f32.mrb[187].mxu1  ;;  %v11869_v31 = vld [vmem:[#allocation93_spill] sm:$0xff] }
 0x5bf   : > { %v11863_v54 = vmov 0.0|0.0   ;;  %v10015_v36 = vmul.f32 %v4994_v11, %v9991_v63  ;;  %v2837_v37 = vmul.f32 0.05, %v2787_v26  ;;  %v2782_v4 = vadd.f32 %v2781_v20, %v11865_v18  ;;  %v6786_v20 = vpop.f32.mrb[188].mxu1 }
 0x5c0   : > { %11862 = vst [vmem:[#allocation84_spill] sm:$0xff] %v10008_v12  ;;  %7001 = vmatprep.subr.bf16.mxu0 %v11863_v54  ;;  %v11868_v8 = vmax.f32 %v11866_v53, %v11867_v58  ;;  %v4997_v38 = vmax.f32 %v4923_v0, %v4981_v15  ;;  %v4980_v42 = vmul.f32 0.05, %v4918_v7  ;;  %v4933_v56 = vadd.f32 %v6783_v19, %v8824_v48  ;;  %v2791_v58 = vpop.f32.mrb[77].mxu0 }
 0x5c1   : > { %11864 = vst [vmem:[#allocation92_spill] sm:$0xff] %v10015_v36  ;;  %v11871_v11 = vmax.f32 %v11869_v31, %v11870_v40  ;;  %v10029_v18 = vmax.f32 %v2787_v26, %v2837_v37  ;;  %v2836_v35 = vmul.f32 0.05, %v2782_v4  ;;  %v2797_v53 = vadd.f32 %v6285_v27, %v11872_v6  ;;  %v11874_v31 = vld [vmem:[#allocation64_spill] sm:$0xff] }
 0x5c2   : > { %v3170_v29 = vmul.f32 %v11868_v8, %v9984_v22  ;;  %v10033_v0 = vmul.f32 %v4997_v38, %v10004_v21  ;;  %v4996_v48 = vmax.f32 %v4918_v7, %v4980_v42  ;;  %v4983_v15 = vmul.f32 0.05, %v4933_v56  ;;  %v6288_v38 = vpop.f32.mrb[78].mxu0  ;;  %v11876_v7 = vld [vmem:[#allocation90_spill] sm:$0xff]  ;;  %v11877_v42 = vld [vmem:[#allocation103_spill] sm:$0xff] }
 0x5c3   : > { %v3171_v62 = vmul.f32 %v11871_v11, %v10010_v5  ;;  %v10035_v8 = vmax.f32 %v2782_v4, %v2836_v35  ;;  %v2839_v24 = vmul.f32 0.05, %v2797_v53  ;;  %v4928_v40 = vadd.f32 %v4927_v30, %v8826_v16  ;;  %v4937_v4 = vpop.f32.mrb[189].mxu1  ;;  %v11879_v30 = vld [vmem:[#allocation69_spill] sm:$0xff] }
 0x5c4   : > { %11873 = vst [vmem:[#allocation127_spill] sm:$0xff] %v10033_v0  ;;  %v7002_v19 = vpack.c.bf16 %v3170_v29, %v3169_v47  ;;  %v2792_v11 = vadd.f32 %v2791_v58, %v11874_v31  ;;  %v10040_v26 = vmul.f32 %v4996_v48, %v10010_v5  ;;  %v4999_v37 = vmax.f32 %v4933_v56, %v4983_v15  ;;  %v2801_v48 = vpop.f32.mrb[79].mxu0  ;;  %v11882_v56 = vld [vmem:[#allocation98_spill] sm:$0xff] }
 0x5c5   : > { %v4943_v6 = vadd.f32 %v6786_v20, %v8845_v61  ;;  %v11878_v47 = vmax.f32 %v11876_v7, %v11877_v42  ;;  %v10047_v29 = vmax.f32 %v2797_v53, %v2839_v24  ;;  %v4982_v16 = vmul.f32 0.05, %v4928_v40  ;;  %v6789_v7 = vpop.f32.mrb[190].mxu1  ;;  %v6291_v36 = vpop.f32.mrb[80].mxu0 }
 0x5c6   : > { %11875 = vst [vmem:[#allocation86_spill] sm:$0xff] %v10040_v26  ;;  %7003 = vmatpush3.bf16.msra.mxu0 %v7002_v19  ;;  %v2838_v27 = vmul.f32 0.05, %v2792_v11  ;;  %v2807_v58 = vadd.f32 %v6288_v38, %v11879_v30  ;;  %v10054_v61 = vmul.f32 %v4999_v37, %v10029_v18  ;;  %v4938_v53 = vadd.f32 %v4937_v4, %v8847_v39  ;;  %v11883_v37 = vld [vmem:[#allocation111_spill] sm:$0xff]  ;;  %v2811_v4 = vpop.f32.mrb[81].mxu0 }
 0x5c7   : > { %v3172_v35 = vmul.f32 %v11878_v47, %v10004_v21  ;;  %7004 = vmatprep.subr.bf16.mxu0 %v11863_v54  ;;  %v4985_v20 = vmul.f32 0.05, %v4943_v6  ;;  %v4998_v19 = vmax.f32 %v4928_v40, %v4982_v16  ;;  %v11881_v47 = vld [vmem:[#allocation72_spill] sm:$0xff]  ;;  %v4953_v30 = vadd.f32 %v6789_v7, %v8865_v49  ;;  %v6294_v12 = vpop.f32.mrb[82].mxu0 }
 0x5c8   : > { %11880 = vst [vmem:[#allocation96_spill] sm:$0xff] %v10054_v61  ;;  %v10056_v31 = vmax.f32 %v2792_v11, %v2838_v27  ;;  %v2841_v24 = vmul.f32 0.05, %v2807_v58  ;;  %v2802_v38 = vadd.f32 %v2801_v48, %v11881_v47  ;;  %v11884_v26 = vmax.f32 %v11882_v56, %v11883_v37  ;;  %v11888_v48 = vld [vmem:[#allocation97_spill] sm:$0xff]  ;;  %v11891_v37 = vld [vmem:[#allocation80_spill] sm:$0xff] }
 0x5c9   : > { %v7005_v15 = vpack.c.bf16 %v3172_v35, %v3171_v62  ;;  %v5001_v42 = vmax.f32 %v4943_v6, %v4985_v20  ;;  %v4947_v62 = vpop.f32.mrb[191].mxu1  ;;  %v10066_v40 = vmul.f32 %v4998_v19, %v10035_v8  ;;  %v4984_v39 = vmul.f32 0.05, %v4938_v53  ;;  %v11886_v6 = vld [vmem:[#allocation77_spill] sm:$0xff] }
 0x5ca   : > { %v3173_v0 = vmul.f32 %v11884_v26, %v10035_v8  ;;  %v10068_v11 = vmax.f32 %v2807_v58, %v2841_v24  ;;  %v2817_v35 = vadd.f32 %v6291_v36, %v11886_v6  ;;  %v2840_v16 = vmul.f32 0.05, %v2802_v38  ;;  %v11889_v26 = vld [vmem:[#allocation110_spill] sm:$0xff]  ;;  %v6792_v7 = vpop.f32.mrb[192].mxu1 }
 0x5cb   : > { %7006 = vmatpush3.bf16.msra.mxu0 %v7005_v15  ;;  %11885 = vst [vmem:[#allocation45_spill] sm:$0xff] %v10066_v40  ;;  %v10073_v49 = vmul.f32 %v5001_v42, %v10047_v29  ;;  %v4987_v27 = vmul.f32 0.05, %v4953_v30  ;;  %v11890_v56 = vmax.f32 %v11888_v48, %v11889_v26  ;;  %v5000_v15 = vmax.f32 %v4938_v53, %v4984_v39  ;;  %v4957_v44 = vpop.f32.mrb[193].mxu1  ;;  %v2821_v39 = vpop.f32.mrb[83].mxu0  ;;  %v11985_v40 = vld [vmem:[#allocation155_spill] sm:$0xff] }
 0x5cc   : > { %7007 = vmatprep.subr.bf16.mxu0 %v11863_v54  ;;  %v2843_v19 = vmul.f32 0.05, %v2817_v35  ;;  %v4948_v24 = vadd.f32 %v4947_v62, %v8867_v46  ;;  %v10082_v36 = vmax.f32 %v2802_v38, %v2840_v16  ;;  %v2812_v6 = vadd.f32 %v2811_v4, %v11891_v37  ;;  %v11895_v62 = vld [vmem:[#allocation101_spill] sm:$0xff]  ;;  %v11896_v4 = vld [vmem:[#allocation114_spill] sm:$0xff] }
 0x5cd   : > { %11887 = vst [vmem:[#allocation48_spill] sm:$0xff] %v10073_v49  ;;  %v3174_v20 = vmul.f32 %v11890_v56, %v10029_v18  ;;  %v5003_v47 = vmax.f32 %v4953_v30, %v4987_v27  ;;  %v10086_v41 = vmul.f32 %v5000_v15, %v10056_v31  ;;  %v4963_v53 = vadd.f32 %v6792_v7, %v8885_v59  ;;  %v11894_v30 = vld [vmem:[#allocation88_spill] sm:$0xff]  ;;  %v11899_v15 = vld [vmem:[#allocation113_spill] sm:$0xff] }
 0x5ce   : > { %v10088_v48 = vmax.f32 %v2817_v35, %v2843_v19  ;;  %v4986_v26 = vmul.f32 0.05, %v4948_v24  ;;  %v2842_v38 = vmul.f32 0.05, %v2812_v6  ;;  %v11897_v16 = vmax.f32 %v11895_v62, %v11896_v4  ;;  %v11981_v49 = vld [vmem:[#allocation156_spill] sm:$0xff] }
 0x5cf   : > { %v7008_v42 = vpack.c.bf16 %v3174_v20, %v3173_v0  ;;  %11892 = vst [vmem:[#allocation89_spill] sm:$0xff] %v10086_v41  ;;  %v10092_v46 = vmul.f32 %v5003_v47, %v10068_v11  ;;  %v2827_v0 = vadd.f32 %v6294_v12, %v11894_v30  ;;  %v4989_v59 = vmul.f32 0.05, %v4963_v53  ;;  %v11898_v20 = vld [vmem:[#allocation100_spill] sm:$0xff]  ;;  %v6795_v47 = vpop.f32.mrb[194].mxu1  ;;  %v11901_v30 = vld [vmem:[#allocation95_spill] sm:$0xff] }
 0x5d0   : > { %v3175_v27 = vmul.f32 %v11897_v16, %v10056_v31  ;;  %v5002_v56 = vmax.f32 %v4948_v24, %v4986_v26  ;;  %v11900_v19 = vmax.f32 %v11898_v20, %v11899_v15  ;;  %v4958_v37 = vadd.f32 %v4957_v44, %v8887_v43  ;;  %v4967_v4 = vpop.f32.mrb[195].mxu1 }
 0x5d1   : > { %11893 = vst [vmem:[#allocation102_spill] sm:$0xff] %v10092_v46  ;;  %7009 = vmatpush3.bf16.msra.mxu0 %v7008_v42  ;;  %v10106_v42 = vmax.f32 %v2812_v6, %v2842_v38  ;;  %v2845_v12 = vmul.f32 0.05, %v2827_v0  ;;  %v2822_v62 = vadd.f32 %v2821_v39, %v11901_v30  ;;  %v5005_v24 = vmax.f32 %v4963_v53, %v4989_v59  ;;  %v11903_v6 = vld [vmem:[#allocation105_spill] sm:$0xff]  ;;  %v11907_v39 = vld [vmem:[#allocation104_spill] sm:$0xff]  ;;  %v11977_v46 = vld [vmem:[#allocation151_spill] sm:$0xff] }
 0x5d2   : > { %7010 = vmatprep.subr.bf16.mxu0 %v11863_v54  ;;  %v3176_v7 = vmul.f32 %v11900_v19, %v10047_v29  ;;  %v10111_v16 = vmul.f32 %v5002_v56, %v10082_v36  ;;  %v4973_v35 = vadd.f32 %v6795_v47, %v8979_v33  ;;  %v4988_v20 = vmul.f32 0.05, %v4958_v37  ;;  %v11904_v38 = vld [vmem:[#allocation117_spill] sm:$0xff]  ;;  %v11908_v33 = vld [vmem:[#allocation116_spill] sm:$0xff] }
 0x5d3   : > { %v10114_v58 = vmax.f32 %v2827_v0, %v2845_v12  ;;  %v2844_v15 = vmul.f32 0.05, %v2822_v62  ;;  %v11905_v19 = vmax.f32 %v11903_v6, %v11904_v38  ;;  %v10123_v44 = vmul.f32 %v5005_v24, %v10088_v48  ;;  %v11910_v47 = vld [vmem:[#allocation112_spill] sm:$0xff] }
 0x5d4   : > { %11902 = vst [vmem:[#allocation53_spill] sm:$0xff] %v10111_v16  ;;  %v7011_v26 = vpack.c.bf16 %v3176_v7, %v3175_v27  ;;  %v4991_v53 = vmul.f32 0.05, %v4973_v35  ;;  %v11909_v0 = vmax.f32 %v11907_v39, %v11908_v33  ;;  %v5004_v56 = vmax.f32 %v4958_v37, %v4988_v20  ;;  %v11911_v12 = vld [vmem:[#allocation120_spill] sm:$0xff]  ;;  %v11916_v37 = vld [vmem:[#allocation115_spill] sm:$0xff]  ;;  %v11973_v16 = vld [vmem:[#allocation153_spill] sm:$0xff] }
 0x5d5   : > { %v3177_v41 = vmul.f32 %v11905_v19, %v10082_v36  ;;  %11906 = vst [vmem:[#allocation56_spill] sm:$0xff] %v10123_v44  ;;  %v10129_v59 = vmax.f32 %v2822_v62, %v2844_v15  ;;  %v4968_v7 = vadd.f32 %v4967_v4, %v9005_v2  ;;  %v11912_v30 = vmax.f32 %v11910_v47, %v11911_v12  ;;  %v11913_v38 = vld [vmem:[#allocation108_spill] sm:$0xff]  ;;  %v11914_v19 = vld [vmem:[#allocation118_spill] sm:$0xff]  ;;  %v11920_v4 = vld [vmem:[#allocation119_spill] sm:$0xff] }
 0x5d6   : > { %7012 = vmatpush3.bf16.msra.mxu0 %v7011_v26  ;;  %v3178_v27 = vmul.f32 %v11909_v0, %v10068_v11  ;;  %v5007_v6 = vmax.f32 %v4973_v35, %v4991_v53  ;;  %v11915_v43 = vmax.f32 %v11913_v38, %v11914_v19  ;;  %v11917_v62 = vld [vmem:[#allocation122_spill] sm:$0xff]  ;;  %v10146_v33 = vmul.f32 %v5004_v56, %v10106_v42  ;;  %v11924_v53 = vld [vmem:[#allocation129_spill] sm:$0xff]  ;;  %v11927_v38 = vld [vmem:[#allocation124_spill] sm:$0xff] }
 0x5d7   : > { %7013 = vmatprep.subr.bf16.mxu0 %v11863_v54  ;;  %v3179_v24 = vmul.f32 %v11912_v30, %v10106_v42  ;;  %v11918_v20 = vmax.f32 %v11916_v37, %v11917_v62  ;;  %v4990_v2 = vmul.f32 0.05, %v4968_v7  ;;  %v11921_v0 = vld [vmem:[#allocation126_spill] sm:$0xff]  ;;  %v11928_v56 = vld [vmem:[#allocation135_spill] sm:$0xff] }
 0x5d8   : > { %v7014_v26 = vpack.c.bf16 %v3178_v27, %v3177_v41  ;;  %v3180_v39 = vmul.f32 %v11915_v43, %v10088_v48  ;;  %11919 = vst [vmem:[#allocation87_spill] sm:$0xff] %v10146_v33  ;;  %v11922_v47 = vmax.f32 %v11920_v4, %v11921_v0  ;;  %v11923_v41 = vld [vmem:[#allocation121_spill] sm:$0xff]  ;;  %v10157_v43 = vmul.f32 %v5007_v6, %v10114_v58  ;;  %v11930_v62 = vld [vmem:[#allocation123_spill] sm:$0xff] }
 0x5d9   : > { %v3182_v15 = vmul.f32 %v11918_v20, %v10114_v58  ;;  %v11925_v27 = vmax.f32 %v11923_v41, %v11924_v53  ;;  %v11929_v19 = vmax.f32 %v11927_v38, %v11928_v56  ;;  %v11931_v20 = vld [vmem:[#allocation132_spill] sm:$0xff]  ;;  %v5006_v41 = vmax.f32 %v4968_v7, %v4990_v2  ;;  %v11934_v53 = vld [vmem:[#allocation139_spill] sm:$0xff]  ;;  %v11936_v56 = vld [vmem:[#allocation125_spill] sm:$0xff] }
 0x5da   : > { %v3181_v35 = vmul.f32 %v11922_v47, %v10129_v59  ;;  %11926 = vst [vmem:[#allocation99_spill] sm:$0xff] %v10157_v43  ;;  %7015 = vmatpush3.bf16.msra.mxu0 %v7014_v26  ;;  %v7017_v30 = vpack.c.bf16 %v3180_v39, %v3179_v24  ;;  %v11932_v4 = vmax.f32 %v11930_v62, %v11931_v20  ;;  %v11933_v39 = vld [vmem:[#allocation128_spill] sm:$0xff]  ;;  %v11939_v7 = vld [vmem:[#allocation131_spill] sm:$0xff]  ;;  %v11949_v47 = vld [vmem:[#allocation133_spill] sm:$0xff] }
 0x5db   : > { %v3430_v12 = vmul.f32 %v11925_v27, %v9966_v45  ;;  %v10163_v37 = vmul.f32 %v11929_v19, %v9991_v63  ;;  %7016 = vmatprep.subr.bf16.mxu0 %v11863_v54  ;;  %v11935_v27 = vmax.f32 %v11933_v39, %v11934_v53  ;;  %v11937_v19 = vld [vmem:[#allocation136_spill] sm:$0xff]  ;;  %v11970_v43 = vld [vmem:[#allocation154_spill] sm:$0xff] }
 0x5dc   : > { %v10169_v0 = vmul.f32 %v11932_v4, %v9984_v22  ;;  %v7020_v6 = vpack.c.bf16 %v3182_v15, %v3181_v35  ;;  %v11938_v62 = vmax.f32 %v11936_v56, %v11937_v19  ;;  %v11940_v15 = vld [vmem:[#allocation142_spill] sm:$0xff]  ;;  %v10196_v35 = vmul.f32 %v5006_v41, %v10129_v59  ;;  %v11944_v4 = vld [vmem:[#allocation141_spill] sm:$0xff] }
 0x5dd   : > { %v7031_v24 = vpack.c.bf16 %v9977_v60, %v3430_v12  ;;  %v10181_v38 = vmul.f32 %v11935_v27, %v10010_v5  ;;  %v11941_v2 = vmax.f32 %v11939_v7, %v11940_v15  ;;  %v11943_v12 = vld [vmem:[#allocation130_spill] sm:$0xff]  ;;  %v11947_v56 = vld [vmem:[#allocation145_spill] sm:$0xff]  ;;  %v11950_v7 = vld [vmem:[#allocation144_spill] sm:$0xff] }
 0x5de   : > { %v10187_v20 = vmul.f32 %v11938_v62, %v10004_v21  ;;  %11942 = vst [vmem:[#allocation93_spill] sm:$0xff] %v10196_v35  ;;  %v11945_v39 = vmax.f32 %v11943_v12, %v11944_v4  ;;  %v11946_v27 = vld [vmem:[#allocation134_spill] sm:$0xff]  ;;  %v11951_v15 = vmax.f32 %v11949_v47, %v11950_v7  ;;  %7018 = vmatpush3.bf16.msra.mxu0 %v7017_v30  ;;  %v11953_v4 = vld [vmem:[#allocation148_spill] sm:$0xff]  ;;  %v11958_v47 = vld [vmem:[#allocation143_spill] sm:$0xff] }
 0x5df   : > { %v10193_v60 = vmul.f32 %v11941_v2, %v10035_v8  ;;  %v11948_v19 = vmax.f32 %v11946_v27, %v11947_v56  ;;  %v11952_v12 = vld [vmem:[#allocation138_spill] sm:$0xff]  ;;  %v11955_v27 = vld [vmem:[#allocation137_spill] sm:$0xff]  ;;  %v11956_v56 = vld [vmem:[#allocation147_spill] sm:$0xff]  ;;  %7019 = vmatprep.subr.bf16.mxu0 %v11863_v54 }
 0x5e0   : > { %v10202_v53 = vmul.f32 %v11945_v39, %v10029_v18  ;;  %v10214_v2 = vmul.f32 %v11951_v15, %v10047_v29  ;;  %v11954_v39 = vmax.f32 %v11952_v12, %v11953_v4  ;;  %v11959_v7 = vld [vmem:[#allocation152_spill] sm:$0xff]  ;;  %v11969_v12 = vld [vmem:[#allocation146_spill] sm:$0xff] }
 0x5e1   : > { %v10208_v62 = vmul.f32 %v11948_v19, %v10056_v31  ;;  %v11957_v19 = vmax.f32 %v11955_v27, %v11956_v56  ;;  %v11960_v15 = vmax.f32 %v11958_v47, %v11959_v7  ;;  %v11963_v27 = vld [vmem:[#allocation149_spill] sm:$0xff]  ;;  %v11965_v7 = vld [vmem:[#allocation150_spill] sm:$0xff]  ;;  %v11971_v44 = vmax.f32 %v11969_v12, %v11970_v43 }
 0x5e2   : > { %v10222_v26 = vmul.f32 %v11954_v39, %v10082_v36  ;;  %v11962_v39 = vld [vmem:[#allocation140_spill] sm:$0xff]  ;;  %v11982_v43 = vld [vmem:[#allocation162_spill] sm:$0xff]  ;;  %7021 = vmatpush3.bf16.msra.mxu0 %v7020_v6 }
 0x5e3   : > { %v10228_v33 = vmul.f32 %v11957_v19, %v10068_v11  ;;  %v10234_v30 = vmul.f32 %v11960_v15, %v10106_v42  ;;  %v11964_v56 = vmax.f32 %v11962_v39, %v11963_v27  ;;  %v11966_v15 = vld [vmem:[#allocation158_spill] sm:$0xff]  ;;  %v10261_v4 = vmul.f32 %v11971_v44, %v10114_v58  ;;  %v11974_v39 = vld [vmem:[#allocation160_spill] sm:$0xff]  ;;  %7030 = vmatprep.subr.bf16.mxu0 %v11863_v54 }
 0x5e4   : > { %v11967_v41 = vmax.f32 %v11965_v7, %v11966_v15  ;;  %v11975_v27 = vmax.f32 %v11973_v16, %v11974_v39  ;;  %v11978_v7 = vld [vmem:[#allocation159_spill] sm:$0xff]  ;;  %v11983_v44 = vmax.f32 %v11981_v49, %v11982_v43  ;;  %v11986_v16 = vld [vmem:[#allocation161_spill] sm:$0xff]  ;;  %v12009_v47 = vld [vmem:[#allocation46_spill] sm:$0xff] }
 0x5e5   : > { %11961 = vst [vmem:[#allocation107_spill] sm:$0xff] %v10234_v30  ;;  %v10247_v19 = vmul.f32 %v11964_v56, %v10088_v48  ;;  %11972 = vst [vmem:[#allocation64_spill] sm:$0xff] %v10261_v4  ;;  %v11987_v39 = vmax.f32 %v11985_v40, %v11986_v16  ;;  %v11993_v49 = vld [vmem:[#allocation157_spill] sm:$0xff]  ;;  %v11994_v43 = vld [vmem:[#allocation163_spill] sm:$0xff]  ;;  %v11479_v4 = vmov 0.088388346  }
 0x5e6   : > { %v10255_v35 = vmul.f32 %v11967_v41, %v10129_v59  ;;  %v10267_v56 = vmul.f32 %v11975_v27, %v9966_v45  ;;  %v11979_v41 = vmax.f32 %v11977_v46, %v11978_v7  ;;  %v10281_v12 = vmul.f32 %v11983_v44, %v9991_v63  ;;  %v11989_v46 = vld [vmem:[#allocation42_spill] sm:$0xff]  ;;  %v11990_v7 = vld [vmem:[#allocation164_spill] sm:$0xff]  ;;  %6360 = vmatmul.mubr.f32.vlgmr.msra.gmra.mrb[84].mxu0 %v11479_v4 }
 0x5e7   : > { %v10287_v27 = vmul.f32 %v11987_v39, %v9984_v22  ;;  %v11995_v44 = vmax.f32 %v11993_v49, %v11994_v43  ;;  %v11997_v40 = vld [vmem:[#allocation44_spill] sm:$0xff]  ;;  %v11998_v16 = vld [vmem:[#allocation166_spill] sm:$0xff]  ;;  %7032 = vmatpush3.bf16.msra.mxu0 %v7031_v24  ;;  %v12071_v24 = vpack.c.bf16 %v10169_v0, %v10163_v37 }
 0x5e8   : > { %11968 = vst [vmem:[#allocation61_spill] sm:$0xff] %v10255_v35  ;;  %11976 = vst [vmem:[#allocation90_spill] sm:$0xff] %v10267_v56  ;;  %v10275_v15 = vmul.f32 %v11979_v41, %v9960_v32  ;;  %v11991_v41 = vmax.f32 %v11989_v46, %v11990_v7  ;;  %v11999_v39 = vmax.f32 %v11997_v40, %v11998_v16  ;;  %v12001_v7 = vld [vmem:[#allocation43_spill] sm:$0xff]  ;;  %v12006_v35 = vld [vmem:[#allocation168_spill] sm:$0xff]  ;;  %7033 = vmatprep.subr.bf16.mxu0 %v11863_v54 }
 0x5e9   : > { %11984 = vst [vmem:[#allocation69_spill] sm:$0xff] %v10281_v12  ;;  %11988 = vst [vmem:[#allocation72_spill] sm:$0xff] %v10287_v27  ;;  %v10301_v30 = vmul.f32 %v11995_v44, %v10004_v21  ;;  %v12005_v44 = vld [vmem:[#allocation47_spill] sm:$0xff]  ;;  %v12013_v12 = vld [vmem:[#allocation50_spill] sm:$0xff] }
 0x5ea   : > { %11980 = vst [vmem:[#allocation103_spill] sm:$0xff] %v10275_v15  ;;  %v10295_v61 = vmul.f32 %v11991_v41, %v10010_v5  ;;  %v10307_v6 = vmul.f32 %v11999_v39, %v10035_v8  ;;  %v12002_v41 = vld [vmem:[#allocation165_spill] sm:$0xff]  ;;  %v12007_v40 = vmax.f32 %v12005_v44, %v12006_v35  ;;  %v12010_v56 = vld [vmem:[#allocation167_spill] sm:$0xff]  ;;  %v12079_v0 = vld [vmem:[#allocation70_spill] sm:$0xff] }
 0x5eb   : > { %11996 = vst [vmem:[#allocation111_spill] sm:$0xff] %v10301_v30  ;;  %v12003_v49 = vmax.f32 %v12001_v7, %v12002_v41  ;;  %v12011_v15 = vmax.f32 %v12009_v47, %v12010_v56  ;;  %v12014_v7 = vld [vmem:[#allocation170_spill] sm:$0xff]  ;;  %v12017_v27 = vld [vmem:[#allocation49_spill] sm:$0xff]  ;;  %v12021_v56 = vld [vmem:[#allocation52_spill] sm:$0xff]  ;;  %v12033_v47 = vmov 0.0   ;;  %7035 = vmatpush3.bf16.msra.mxu0 %v12071_v24 }
 0x5ec   : > { %11992 = vst [vmem:[#allocation98_spill] sm:$0xff] %v10295_v61  ;;  %12000 = vst [vmem:[#allocation77_spill] sm:$0xff] %v10307_v6  ;;  %v10324_v16 = vmul.f32 %v12007_v40, %v10056_v31  ;;  %v12015_v41 = vmax.f32 %v12013_v12, %v12014_v7  ;;  %v12018_v35 = vld [vmem:[#allocation169_spill] sm:$0xff]  ;;  %v12025_v12 = vld [vmem:[#allocation51_spill] sm:$0xff]  ;;  %6426 = vmatprep.mubr.msk.f32.mxu0 %vm7407_vm3, %v12033_v47  ;;  %7036 = vmatprep.subr.bf16.mxu0 %v11863_v54 }
 0x5ed   : > { %v10318_v43 = vmul.f32 %v12003_v49, %v10029_v18  ;;  %v10332_v46 = vmul.f32 %v12011_v15, %v10047_v29  ;;  %v12019_v44 = vmax.f32 %v12017_v27, %v12018_v35  ;;  %v12022_v15 = vld [vmem:[#allocation172_spill] sm:$0xff]  ;;  %v12026_v7 = vld [vmem:[#allocation171_spill] sm:$0xff]  ;;  %v12030_v35 = vld [vmem:[#allocation174_spill] sm:$0xff] }
 0x5ee   : > { %12008 = vst [vmem:[#allocation110_spill] sm:$0xff] %v10324_v16  ;;  %v10338_v49 = vmul.f32 %v12015_v41, %v10082_v36  ;;  %v12023_v39 = vmax.f32 %v12021_v56, %v12022_v15  ;;  %v12027_v41 = vmax.f32 %v12025_v12, %v12026_v7  ;;  %v12029_v27 = vld [vmem:[#allocation55_spill] sm:$0xff]  ;;  %v12034_v15 = vld [vmem:[#allocation54_spill] sm:$0xff]  ;;  %v12035_v12 = vld [vmem:[#allocation173_spill] sm:$0xff] }
 0x5ef   : > { %12004 = vst [vmem:[#allocation97_spill] sm:$0xff] %v10318_v43  ;;  %12012 = vst [vmem:[#allocation80_spill] sm:$0xff] %v10332_v46  ;;  %v10344_v40 = vmul.f32 %v12019_v44, %v10068_v11  ;;  %v12031_v44 = vmax.f32 %v12029_v27, %v12030_v35  ;;  %v12036_v7 = vmax.f32 %v12034_v15, %v12035_v12  ;;  %v12038_v27 = vld [vmem:[#allocation58_spill] sm:$0xff]  ;;  %v12039_v35 = vld [vmem:[#allocation176_spill] sm:$0xff] }
 0x5f0   : > { %12016 = vst [vmem:[#allocation88_spill] sm:$0xff] %v10338_v49  ;;  %v10353_v61 = vmul.f32 %v12023_v39, %v10106_v42  ;;  %v10359_v30 = vmul.f32 %v12027_v41, %v10088_v48  ;;  %v12042_v39 = vld [vmem:[#allocation57_spill] sm:$0xff]  ;;  %v12043_v56 = vld [vmem:[#allocation175_spill] sm:$0xff]  ;;  %v12045_v15 = vld [vmem:[#allocation60_spill] sm:$0xff] }
 0x5f1   : > { %12020 = vst [vmem:[#allocation101_spill] sm:$0xff] %v10344_v40  ;;  %v10365_v4 = vmul.f32 %v12031_v44, %v10129_v59  ;;  %v10377_v41 = vmul.f32 %v12036_v7, %v10114_v58  ;;  %v12040_v44 = vmax.f32 %v12038_v27, %v12039_v35  ;;  %v12044_v49 = vmax.f32 %v12042_v39, %v12043_v56  ;;  %v12046_v12 = vld [vmem:[#allocation178_spill] sm:$0xff]  ;;  %v12049_v27 = vld [vmem:[#allocation177_spill] sm:$0xff]  ;;  %v12052_v39 = vld [vmem:[#allocation180_spill] sm:$0xff] }
 0x5f2   : > { %12024 = vst [vmem:[#allocation114_spill] sm:$0xff] %v10353_v61  ;;  %12028 = vst [vmem:[#allocation100_spill] sm:$0xff] %v10359_v30  ;;  %v12047_v7 = vmax.f32 %v12045_v15, %v12046_v12  ;;  %v12048_v61 = vld [vmem:[#allocation59_spill] sm:$0xff]  ;;  %v12055_v46 = vld [vmem:[#allocation62_spill] sm:$0xff] }
 0x5f3   : > { %12032 = vst [vmem:[#allocation113_spill] sm:$0xff] %v10365_v4  ;;  %12037 = vst [vmem:[#allocation95_spill] sm:$0xff] %v10377_v41  ;;  %v10386_v6 = vmul.f32 %v12040_v44, %v9966_v45  ;;  %v10392_v40 = vmul.f32 %v12044_v49, %v9960_v32  ;;  %v12050_v35 = vmax.f32 %v12048_v61, %v12049_v27  ;;  %v12051_v30 = vld [vmem:[#allocation63_spill] sm:$0xff]  ;;  %v12059_v4 = vld [vmem:[#allocation66_spill] sm:$0xff] }
 0x5f4   : > { %v10398_v16 = vmul.f32 %v12047_v7, %v9991_v63  ;;  %v12053_v49 = vmax.f32 %v12051_v30, %v12052_v39  ;;  %v12056_v15 = vld [vmem:[#allocation179_spill] sm:$0xff]  ;;  %v12060_v61 = vld [vmem:[#allocation182_spill] sm:$0xff]  ;;  %v12063_v41 = vld [vmem:[#allocation65_spill] sm:$0xff] }
 0x5f5   : > { %12041 = vst [vmem:[#allocation105_spill] sm:$0xff] %v10386_v6  ;;  %v10406_v44 = vmul.f32 %v12050_v35, %v9984_v22  ;;  %v12057_v12 = vmax.f32 %v12055_v46, %v12056_v15  ;;  %v12061_v27 = vmax.f32 %v12059_v4, %v12060_v61  ;;  %v12064_v30 = vld [vmem:[#allocation181_spill] sm:$0xff]  ;;  %v12067_v43 = vld [vmem:[#allocation68_spill] sm:$0xff] }
 0x5f6   : > { %v10412_v56 = vmul.f32 %v12053_v49, %v10010_v5  ;;  %v12065_v39 = vmax.f32 %v12063_v41, %v12064_v30  ;;  %v12068_v46 = vld [vmem:[#allocation184_spill] sm:$0xff]  ;;  %v12072_v41 = vld [vmem:[#allocation67_spill] sm:$0xff]  ;;  %v12080_v24 = vld [vmem:[#allocation185_spill] sm:$0xff] }
 0x5f7   : > { %v10418_v7 = vmul.f32 %v12057_v12, %v10004_v21  ;;  %v10426_v35 = vmul.f32 %v12061_v27, %v10035_v8  ;;  %v12069_v15 = vmax.f32 %v12067_v43, %v12068_v46  ;;  %v12073_v27 = vld [vmem:[#allocation183_spill] sm:$0xff]  ;;  %v12077_v46 = vld [vmem:[#allocation186_spill] sm:$0xff]  ;;  %v12081_v61 = vmax.f32 %v12079_v0, %v12080_v24 }
 0x5f8   : > { %12054 = vst [vmem:[#allocation117_spill] sm:$0xff] %v10412_v56  ;;  %v10432_v49 = vmul.f32 %v12065_v39, %v10029_v18  ;;  %v12074_v30 = vmax.f32 %v12072_v41, %v12073_v27  ;;  %v12076_v43 = vld [vmem:[#allocation71_spill] sm:$0xff]  ;;  %v12082_v41 = vld [vmem:[#allocation74_spill] sm:$0xff] }
 0x5f9   : > { %12058 = vst [vmem:[#allocation104_spill] sm:$0xff] %v10418_v7  ;;  %12062 = vst [vmem:[#allocation116_spill] sm:$0xff] %v10426_v35  ;;  %v10438_v12 = vmul.f32 %v12069_v15, %v10056_v31  ;;  %v12078_v15 = vmax.f32 %v12076_v43, %v12077_v46  ;;  %v10466_v4 = vmul.f32 %v12081_v61, %v10068_v11  ;;  %v12083_v27 = vld [vmem:[#allocation78_spill] sm:$0xff]  ;;  %v12085_v43 = vld [vmem:[#allocation73_spill] sm:$0xff] }
 0x5fa   : > { %12066 = vst [vmem:[#allocation112_spill] sm:$0xff] %v10432_v49  ;;  %v10451_v39 = vmul.f32 %v12074_v30, %v10047_v29  ;;  %v12084_v30 = vmax.f32 %v12082_v41, %v12083_v27  ;;  %v12086_v46 = vld [vmem:[#allocation187_spill] sm:$0xff]  ;;  %v12091_v41 = vld [vmem:[#allocation188_spill] sm:$0xff] }
 0x5fb   : > { %12070 = vst [vmem:[#allocation120_spill] sm:$0xff] %v10438_v12  ;;  %v10457_v6 = vmul.f32 %v12078_v15, %v10082_v36  ;;  %v12087_v15 = vmax.f32 %v12085_v43, %v12086_v46  ;;  %v12088_v0 = vld [vmem:[#allocation83_spill] sm:$0xff]  ;;  %v12094_v43 = vld [vmem:[#allocation190_spill] sm:$0xff] }
 0x5fc   : > { %12075 = vst [vmem:[#allocation108_spill] sm:$0xff] %v10451_v39  ;;  %v10472_v56 = vmul.f32 %v12084_v30, %v10106_v42  ;;  %v12089_v61 = vmax.f32 %v9494_v3, %v12088_v0  ;;  %v12090_v35 = vld [vmem:[#allocation75_spill] sm:$0xff]  ;;  %v12097_v0 = vld [vmem:[#allocation76_spill] sm:$0xff] }
 0x5fd   : > { %v10478_v7 = vmul.f32 %v12087_v15, %v10088_v48  ;;  %v12092_v27 = vmax.f32 %v12090_v35, %v12091_v41  ;;  %v12093_v49 = vld [vmem:[#allocation79_spill] sm:$0xff]  ;;  %v12100_v35 = vmax.f32 %v9530_v23, %v9579_v1  ;;  %v12109_v1 = vld [vmem:[#allocation82_spill] sm:$0xff] }
 0x5fe   : > { %v10486_v24 = vmul.f32 %v12089_v61, %v10129_v59  ;;  %v12095_v46 = vmax.f32 %v12093_v49, %v12094_v43  ;;  %v12098_v61 = vld [vmem:[#allocation189_spill] sm:$0xff]  ;;  %v12101_v49 = vpack.c.bf16 %v10187_v20, %v10181_v38 }
 0x5ff   : > { %v10492_v30 = vmul.f32 %v12092_v27, %v10114_v58  ;;  %v12099_v12 = vmax.f32 %v12097_v0, %v12098_v61  ;;  %v10514_v41 = vmul.f32 %v12100_v35, %v9991_v63  ;;  %v12102_v43 = vld [vmem:[#allocation81_spill] sm:$0xff] }
 0x600   : > { %v10498_v15 = vmul.f32 %v12095_v46, %v9966_v45  ;;  %7038 = vmatpush3.bf16.msra.mxu0 %v12101_v49  ;;  %v12103_v46 = vld [vmem:[#allocation91_spill] sm:$0xff]  ;;  %v12106_v61 = vld [vmem:[#allocation193_spill] sm:$0xff] }
 0x601   : > { %v10508_v39 = vmul.f32 %v12099_v12, %v9960_v32  ;;  %v12104_v3 = vmax.f32 %v12102_v43, %v12103_v46  ;;  %v12105_v12 = vld [vmem:[#allocation85_spill] sm:$0xff]  ;;  %7039 = vmatprep.subr.bf16.mxu0 %v11863_v54 }
 0x602   : > { %12096 = vst [vmem:[#allocation118_spill] sm:$0xff] %v10498_v15  ;;  %v12107_v37 = vmax.f32 %v12105_v12, %v12106_v61  ;;  %v12110_v35 = vld [vmem:[#allocation109_spill] sm:$0xff]  ;;  %v12115_v12 = vld [vmem:[#allocation106_spill] sm:$0xff] }
 0x603   : > { %v10525_v0 = vmul.f32 %v12104_v3, %v9984_v22  ;;  %v12111_v38 = vmax.f32 %v12109_v1, %v12110_v35  ;;  %v12113_v3 = vmax.f32 %v9563_v52, %v9613_v34  ;;  %v12116_v61 = vld [vmem:[#allocation197_spill] sm:$0xff]  ;;  %v12118_v34 = vld [vmem:[#allocation94_spill] sm:$0xff] }
 0x604   : > { %v10531_v23 = vmul.f32 %v12107_v37, %v10010_v5  ;;  %v12114_v37 = vmax.f32 %v9559_v9, %v9610_v10  ;;  %v12117_v1 = vmax.f32 %v12115_v12, %v12116_v61  ;;  %v12121_v10 = vld [vmem:[#allocation192_spill] sm:$0xff]  ;;  %v12122_v9 = vld [vmem:[#allocation199_spill] sm:$0xff]  ;;  %v12133_v12 = vpack.c.bf16 %v10202_v53, %v10193_v60 }
 0x605   : > { %v10537_v20 = vmul.f32 %v12111_v38, %v10004_v21  ;;  %v10546_v43 = vmul.f32 %v12113_v3, %v10035_v8  ;;  %v12119_v3 = vld [vmem:[#allocation196_spill] sm:$0xff]  ;;  %v12124_v61 = vld [vmem:[#allocation191_spill] sm:$0xff] }
 0x606   : > { %12108 = vst [vmem:[#allocation115_spill] sm:$0xff] %v10531_v23  ;;  %v10552_v46 = vmul.f32 %v12114_v37, %v10029_v18  ;;  %v10558_v35 = vmul.f32 %v12117_v1, %v10056_v31  ;;  %v12120_v49 = vmax.f32 %v12118_v34, %v12119_v3  ;;  %v12123_v37 = vmax.f32 %v12121_v10, %v12122_v9  ;;  %v12125_v1 = vld [vmem:[#allocation198_spill] sm:$0xff]  ;;  %v12127_v23 = vld [vmem:[#allocation195_spill] sm:$0xff]  ;;  %v12128_v34 = vld [vmem:[#allocation201_spill] sm:$0xff] }
 0x607   : > { %12112 = vst [vmem:[#allocation122_spill] sm:$0xff] %v10537_v20  ;;  %v12126_v38 = vmax.f32 %v12124_v61, %v12125_v1  ;;  %v12130_v20 = vld [vmem:[#allocation194_spill] sm:$0xff]  ;;  %v12131_v10 = vld [vmem:[#allocation200_spill] sm:$0xff]  ;;  %7041 = vmatpush3.bf16.msra.mxu0 %v12133_v12  ;;  %v12134_v61 = vmax.f32 %v9650_v50, %v9695_v14  ;;  %v12135_v1 = vld [vmem:[#allocation205_spill] sm:$0xff] }
 0x608   : > { %v10568_v27 = vmul.f32 %v12120_v49, %v10047_v29  ;;  %v10574_v15 = vmul.f32 %v12123_v37, %v10082_v36  ;;  %v12129_v49 = vmax.f32 %v12127_v23, %v12128_v34  ;;  %v12132_v9 = vmax.f32 %v12130_v20, %v12131_v10  ;;  %7042 = vmatprep.subr.bf16.mxu0 %v11863_v54  ;;  %v12140_v50 = vld [vmem:[#allocation202_spill] sm:$0xff]  ;;  %v12141_v10 = vld [vmem:[#allocation207_spill] sm:$0xff] }
 0x609   : > { %v10582_v52 = vmul.f32 %v12126_v38, %v10068_v11  ;;  %v10605_v23 = vmul.f32 %v12134_v61, %v10129_v59  ;;  %v12136_v34 = vmax.f32 %v9646_v17, %v12135_v1  ;;  %v12142_v17 = vmax.f32 %v12140_v50, %v12141_v10  ;;  %v12149_v12 = vld [vmem:[#allocation206_spill] sm:$0xff]  ;;  %v12150_v50 = vld [vmem:[#allocation215_spill] sm:$0xff]  ;;  %v12153_v38 = vld [vmem:[#allocation204_spill] sm:$0xff] }
 0x60a   : > { %v10588_v3 = vmul.f32 %v12129_v49, %v10106_v42  ;;  %v10594_v37 = vmul.f32 %v12132_v9, %v10088_v48  ;;  %v12137_v49 = vld [vmem:[#allocation208_spill] sm:$0xff]  ;;  %v12151_v10 = vmax.f32 %v12149_v12, %v12150_v50  ;;  %v12159_v12 = vld [vmem:[#allocation217_spill] sm:$0xff]  ;;  %v12166_v1 = vpack.c.bf16 %v10214_v2, %v10208_v62 }
 0x60b   : > { %v10611_v20 = vmul.f32 %v12136_v34, %v10114_v58  ;;  %v12138_v60 = vmax.f32 %v9671_v25, %v12137_v49  ;;  %v10628_v9 = vmul.f32 %v12142_v17, %v9960_v32  ;;  %v12143_v25 = vmax.f32 %v9683_v57, %v9729_v51  ;;  %v12145_v34 = vld [vmem:[#allocation203_spill] sm:$0xff]  ;;  %v12146_v49 = vld [vmem:[#allocation209_spill] sm:$0xff]  ;;  %v12154_v57 = vld [vmem:[#allocation212_spill] sm:$0xff] }
 0x60c   : > { %v10648_v17 = vmul.f32 %v12151_v10, %v10010_v5  ;;  %v12155_v51 = vmax.f32 %v12153_v38, %v12154_v57  ;;  %v12162_v10 = vld [vmem:[#allocation211_spill] sm:$0xff]  ;;  %v12163_v38 = vld [vmem:[#allocation220_spill] sm:$0xff]  ;;  %7044 = vmatpush3.bf16.msra.mxu0 %v12166_v1  ;;  %v12174_v2 = vld [vmem:[#allocation213_spill] sm:$0xff] }
 0x60d   : > { %v10617_v53 = vmul.f32 %v12138_v60, %v9966_v45  ;;  %v10634_v61 = vmul.f32 %v12143_v25, %v9991_v63  ;;  %v12147_v60 = vmax.f32 %v12145_v34, %v12146_v49  ;;  %v12157_v34 = vmax.f32 %v9712_v13, %v9759_v55  ;;  %7045 = vmatprep.subr.bf16.mxu0 %v11863_v54  ;;  %v12175_v1 = vld [vmem:[#allocation221_spill] sm:$0xff] }
 0x60e   : > { %12152 = vst [vmem:[#allocation129_spill] sm:$0xff] %v10648_v17  ;;  %v10654_v25 = vmul.f32 %v12155_v51, %v10004_v21  ;;  %v12164_v57 = vmax.f32 %v12162_v10, %v12163_v38  ;;  %v12171_v10 = vld [vmem:[#allocation214_spill] sm:$0xff]  ;;  %v12176_v13 = vmax.f32 %v12174_v2, %v12175_v1  ;;  %v12184_v2 = vld [vmem:[#allocation233_spill] sm:$0xff] }
 0x60f   : > { %12139 = vst [vmem:[#allocation119_spill] sm:$0xff] %v10617_v53  ;;  %12144 = vst [vmem:[#allocation126_spill] sm:$0xff] %v10634_v61  ;;  %v10642_v14 = vmul.f32 %v12147_v60, %v9984_v22  ;;  %v10662_v49 = vmul.f32 %v12157_v34, %v10035_v8  ;;  %v12160_v60 = vmax.f32 %v9708_v28, %v12159_v12  ;;  %v12167_v28 = vld [vmem:[#allocation210_spill] sm:$0xff]  ;;  %v12168_v34 = vld [vmem:[#allocation219_spill] sm:$0xff] }
 0x610   : > { %12156 = vst [vmem:[#allocation124_spill] sm:$0xff] %v10654_v25  ;;  %v10674_v51 = vmul.f32 %v12164_v57, %v10056_v31  ;;  %v12169_v12 = vmax.f32 %v12167_v28, %v12168_v34  ;;  %v12172_v38 = vld [vmem:[#allocation222_spill] sm:$0xff]  ;;  %v10702_v55 = vmul.f32 %v12176_v13, %v10068_v11  ;;  %v12189_v61 = vld [vmem:[#allocation228_spill] sm:$0xff] }
 0x611   : > { %12148 = vst [vmem:[#allocation121_spill] sm:$0xff] %v10642_v14  ;;  %12158 = vst [vmem:[#allocation135_spill] sm:$0xff] %v10662_v49  ;;  %v10668_v50 = vmul.f32 %v12160_v60, %v10029_v18  ;;  %v12173_v57 = vmax.f32 %v12171_v10, %v12172_v38  ;;  %v12177_v28 = vld [vmem:[#allocation218_spill] sm:$0xff]  ;;  %v12180_v10 = vld [vmem:[#allocation216_spill] sm:$0xff] }
 0x612   : > { %12165 = vst [vmem:[#allocation132_spill] sm:$0xff] %v10674_v51  ;;  %v10687_v60 = vmul.f32 %v12169_v12, %v10047_v29  ;;  %v12178_v34 = vld [vmem:[#allocation226_spill] sm:$0xff]  ;;  %v12181_v38 = vld [vmem:[#allocation223_spill] sm:$0xff]  ;;  %v12183_v49 = vld [vmem:[#allocation225_spill] sm:$0xff] }
 0x613   : > { %12161 = vst [vmem:[#allocation123_spill] sm:$0xff] %v10668_v50  ;;  %v10693_v53 = vmul.f32 %v12173_v57, %v10082_v36  ;;  %v12179_v12 = vmax.f32 %v12177_v28, %v12178_v34  ;;  %v12182_v57 = vmax.f32 %v12180_v10, %v12181_v38  ;;  %v12185_v13 = vmax.f32 %v12183_v49, %v12184_v2  ;;  %v12186_v50 = vld [vmem:[#allocation224_spill] sm:$0xff]  ;;  %v12190_v10 = vld [vmem:[#allocation238_spill] sm:$0xff]  ;;  %v12192_v2 = vld [vmem:[#allocation227_spill] sm:$0xff] }
 0x614   : > { %12170 = vst [vmem:[#allocation128_spill] sm:$0xff] %v10687_v60  ;;  %v12187_v28 = vld [vmem:[#allocation232_spill] sm:$0xff]  ;;  %v12191_v38 = vmax.f32 %v12189_v61, %v12190_v10  ;;  %v12199_v10 = vld [vmem:[#allocation229_spill] sm:$0xff] }
 0x615   : > { %v10708_v17 = vmul.f32 %v12179_v12, %v10106_v42  ;;  %v10714_v25 = vmul.f32 %v12182_v57, %v10088_v48  ;;  %v10722_v1 = vmul.f32 %v12185_v13, %v10129_v59  ;;  %v12188_v34 = vmax.f32 %v12186_v50, %v12187_v28  ;;  %v12193_v13 = vld [vmem:[#allocation235_spill] sm:$0xff]  ;;  %v12195_v50 = vld [vmem:[#allocation230_spill] sm:$0xff] }
 0x616   : > { %v10734_v57 = vmul.f32 %v12191_v38, %v9966_v45  ;;  %v7174_v62 = vpack.c.bf16 %v10702_v55, %v10693_v53  ;;  %v12194_v51 = vmax.f32 %v12192_v2, %v12193_v13  ;;  %v12196_v28 = vld [vmem:[#allocation242_spill] sm:$0xff]  ;;  %v12198_v45 = vpack.c.bf16 %v10228_v33, %v10222_v26  ;;  %v12200_v38 = vld [vmem:[#allocation239_spill] sm:$0xff] }
 0x617   : > { %v10728_v12 = vmul.f32 %v12188_v34, %v10114_v58  ;;  %v12197_v34 = vmax.f32 %v12195_v50, %v12196_v28  ;;  %v12201_v49 = vmax.f32 %v12199_v10, %v12200_v38  ;;  %v12206_v28 = vld [vmem:[#allocation243_spill] sm:$0xff]  ;;  %v12212_v38 = vld [vmem:[#allocation248_spill] sm:$0xff] }
 0x618   : > { %v10744_v60 = vmul.f32 %v12194_v51, %v9960_v32  ;;  %7047 = vmatpush3.bf16.msra.mxu0 %v12198_v45  ;;  %v12202_v32 = vld [vmem:[#allocation234_spill] sm:$0xff] }
 0x619   : > { %v10750_v14 = vmul.f32 %v12197_v34, %v9991_v63  ;;  %v7180_v61 = vpack.c.bf16 %v10728_v12, %v10722_v1  ;;  %v10761_v2 = vmul.f32 %v12201_v49, %v9984_v22  ;;  %v12203_v51 = vld [vmem:[#allocation246_spill] sm:$0xff]  ;;  %v12205_v63 = vld [vmem:[#allocation231_spill] sm:$0xff]  ;;  %7048 = vmatprep.subr.bf16.mxu0 %v11863_v54  ;;  %v12208_v22 = vld [vmem:[#allocation237_spill] sm:$0xff] }
 0x61a   : > { %v12204_v13 = vmax.f32 %v12202_v32, %v12203_v51  ;;  %v12207_v33 = vmax.f32 %v12205_v63, %v12206_v28  ;;  %v12209_v49 = vld [vmem:[#allocation249_spill] sm:$0xff]  ;;  %v12309_v53 = vpack.c.bf16 %v10744_v60, %v10734_v57  ;;  %v12318_v57 = vld [vmem:[#allocation84_spill] sm:$0xff] }
 0x61b   : > { %v12210_v45 = vmax.f32 %v12208_v22, %v12209_v49  ;;  %v12218_v49 = vld [vmem:[#allocation251_spill] sm:$0xff]  ;;  %v12316_v1 = vld [vmem:[#allocation41_spill] sm:$0xff] }
 0x61c   : > { %v10767_v50 = vmul.f32 %v12204_v13, %v10010_v5  ;;  %v10773_v26 = vmul.f32 %v12207_v33, %v10004_v21  ;;  %v12211_v5 = vld [vmem:[#allocation236_spill] sm:$0xff]  ;;  %v12214_v21 = vld [vmem:[#allocation241_spill] sm:$0xff]  ;;  %v12226_v33 = vld [vmem:[#allocation250_spill] sm:$0xff] }
 0x61d   : > { %v10782_v10 = vmul.f32 %v12210_v45, %v10035_v8  ;;  %v12213_v32 = vmax.f32 %v12211_v5, %v12212_v38  ;;  %v12215_v13 = vld [vmem:[#allocation252_spill] sm:$0xff]  ;;  %v12221_v5 = vld [vmem:[#allocation254_spill] sm:$0xff] }
 0x61e   : > { %v12216_v63 = vmax.f32 %v12214_v21, %v12215_v13  ;;  %v12217_v8 = vld [vmem:[#allocation240_spill] sm:$0xff]  ;;  %v12224_v13 = vld [vmem:[#allocation253_spill] sm:$0xff] }
 0x61f   : > { %v10788_v51 = vmul.f32 %v12213_v32, %v10029_v18  ;;  %v12219_v45 = vmax.f32 %v12217_v8, %v12218_v49  ;;  %v12220_v18 = vld [vmem:[#allocation245_spill] sm:$0xff]  ;;  %v12223_v21 = vld [vmem:[#allocation244_spill] sm:$0xff] }
 0x620   : > { %v10794_v28 = vmul.f32 %v12216_v63, %v10056_v31  ;;  %v12222_v38 = vmax.f32 %v12220_v18, %v12221_v5  ;;  %v12225_v63 = vmax.f32 %v12223_v21, %v12224_v13  ;;  %v12227_v8 = vld [vmem:[#allocation256_spill] sm:$0xff]  ;;  %v12230_v18 = vld [vmem:[#allocation255_spill] sm:$0xff]  ;;  %v12234_v21 = vld [vmem:[#allocation38_spill] sm:$0xff] }
 0x621   : > { %v10804_v34 = vmul.f32 %v12219_v45, %v10047_v29  ;;  %v12228_v29 = vmax.f32 %v12226_v33, %v12227_v8  ;;  %v12229_v45 = vld [vmem:[#allocation247_spill] sm:$0xff]  ;;  %v12238_v8 = vld [vmem:[#allocation258_spill] sm:$0xff]  ;;  %v12312_v55 = vpack.c.bf16 %v10788_v51, %v10782_v10  ;;  %v12324_v10 = vld [vmem:[#allocation96_spill] sm:$0xff] }
 0x622   : > { %v10810_v32 = vmul.f32 %v12222_v38, %v10082_v36  ;;  %v10818_v22 = vmul.f32 %v12225_v63, %v10068_v11  ;;  %v12231_v36 = vmax.f32 %v12229_v45, %v12230_v18  ;;  %v12232_v38 = vld [vmem:[#allocation107_spill] sm:$0xff]  ;;  %v12240_v18 = vld [vmem:[#allocation64_spill] sm:$0xff]  ;;  %v12325_v51 = vld [vmem:[#allocation45_spill] sm:$0xff] }
 0x623   : > { %v10824_v49 = vmul.f32 %v12228_v29, %v10106_v42  ;;  %v12233_v31 = vpack.c.bf16 %v10247_v19, %v12232_v38  ;;  %v7203_v11 = vpack.c.bf16 %v10804_v34, %v10794_v28  ;;  %v12235_v13 = vld [vmem:[#allocation39_spill] sm:$0xff]  ;;  %v12237_v42 = vld [vmem:[#allocation257_spill] sm:$0xff]  ;;  %v12243_v38 = vmov 0.088388346  }
 0x624   : > { %v10830_v5 = vmul.f32 %v12231_v36, %v10088_v48  ;;  %v12236_v63 = vmax.f32 %v12234_v21, %v12235_v13  ;;  %v12239_v29 = vmax.f32 %v12237_v42, %v12238_v8  ;;  %v7206_v48 = vpack.c.bf16 %v10818_v22, %v10810_v32  ;;  %v12245_v21 = vld [vmem:[#allocation90_spill] sm:$0xff]  ;;  %v12248_v42 = vld [vmem:[#allocation69_spill] sm:$0xff]  ;;  %v12327_v22 = vld [vmem:[#allocation48_spill] sm:$0xff] }
 0x625   : > { %7050 = vmatpush3.bf16.msra.mxu0 %v12233_v31  ;;  %v12257_v31 = vld [vmem:[#allocation110_spill] sm:$0xff]  ;;  %v12326_v28 = vpack.c.bf16 %v12324_v10, %v12325_v51  ;;  %v12328_v32 = vld [vmem:[#allocation89_spill] sm:$0xff] }
 0x626   : > { %v10841_v33 = vmul.f32 %v12236_v63, %v10129_v59  ;;  %v10847_v45 = vmul.f32 %v12239_v29, %v10114_v58  ;;  %7051 = vmatprep.subr.bf16.mxu0 %v11863_v54  ;;  %v12241_v59 = vld [vmem:[#allocation61_spill] sm:$0xff]  ;;  %v12244_v58 = vld [vmem:[#allocation103_spill] sm:$0xff]  ;;  %v12247_v63 = vld [vmem:[#allocation72_spill] sm:$0xff] }
 0x627   : > { %v12242_v36 = vpack.c.bf16 %v12240_v18, %v12241_v59  ;;  %v12246_v13 = vpack.c.bf16 %v12244_v58, %v12245_v21  ;;  %v12249_v8 = vpack.c.bf16 %v12247_v63, %v12248_v42  ;;  %v12250_v29 = vld [vmem:[#allocation111_spill] sm:$0xff]  ;;  %v12251_v18 = vld [vmem:[#allocation98_spill] sm:$0xff]  ;;  %v12254_v58 = vld [vmem:[#allocation77_spill] sm:$0xff] }
 0x628   : > { %v12252_v59 = vpack.c.bf16 %v12250_v29, %v12251_v18  ;;  %v12259_v63 = vld [vmem:[#allocation101_spill] sm:$0xff]  ;;  %v12260_v42 = vld [vmem:[#allocation88_spill] sm:$0xff]  ;;  %v12263_v18 = vld [vmem:[#allocation114_spill] sm:$0xff]  ;;  %v12314_v60 = vpack.c.bf16 %v10847_v45, %v10841_v33 }
 0x629   : > { %7053 = vmatpush3.bf16.msra.mxu0 %v12242_v36  ;;  %v12253_v36 = vld [vmem:[#allocation97_spill] sm:$0xff]  ;;  %v12262_v29 = vld [vmem:[#allocation100_spill] sm:$0xff]  ;;  %v12330_v33 = vld [vmem:[#allocation102_spill] sm:$0xff] }
 0x62a   : > { %7062 = vmatprep.subr.bf16.mxu0 %v11863_v54  ;;  %v12255_v21 = vpack.c.bf16 %v12253_v36, %v12254_v58  ;;  %v12265_v36 = vld [vmem:[#allocation95_spill] sm:$0xff]  ;;  %v12266_v58 = vld [vmem:[#allocation113_spill] sm:$0xff] }
 0x62b   : > { %v12331_v45 = vld [vmem:[#allocation53_spill] sm:$0xff] }
 0x62c   : > { %6427 = vmatmul.mubr.f32.vlgmr.msra.gmra.mrb[86].mxu0 %v12243_v38 }
 0x62d   : > { %7064 = vmatpush3.bf16.msra.mxu0 %v12246_v13  ;;  %6493 = vmatprep.mubr.msk.f32.mxu0 %vm7407_vm3, %v12033_v47  ;;  %v12256_v13 = vld [vmem:[#allocation80_spill] sm:$0xff] }
 0x62e   : > { %7065 = vmatprep.subr.bf16.mxu0 %v11863_v54  ;;  %v12258_v19 = vpack.c.bf16 %v12256_v13, %v12257_v31  ;;  %v12270_v13 = vpack.c.bf16 %v10406_v44, %v10398_v16  ;;  %v12280_v16 = vpack.c.bf16 %v10466_v4, %v10457_v6  ;;  %v12281_v44 = vpack.c.bf16 %v10478_v7, %v10472_v56  ;;  %v12286_v7 = vld [vmem:[#allocation122_spill] sm:$0xff]  ;;  %v12287_v4 = vld [vmem:[#allocation115_spill] sm:$0xff] }
 0x62f   : > { %v12285_v56 = vpack.c.bf16 %v10525_v0, %v10514_v41  ;;  %v12291_v41 = vpack.c.bf16 %v10582_v52, %v10574_v15  ;;  %v12292_v0 = vpack.c.bf16 %v10594_v37, %v10588_v3  ;;  %v12299_v3 = vld [vmem:[#allocation124_spill] sm:$0xff]  ;;  %v12300_v37 = vld [vmem:[#allocation129_spill] sm:$0xff] }
 0x631   : > { %7067 = vmatpush3.bf16.msra.mxu0 %v12249_v8  ;;  %v12261_v8 = vpack.c.bf16 %v12259_v63, %v12260_v42  ;;  %v12271_v63 = vld [vmem:[#allocation104_spill] sm:$0xff]  ;;  %v12272_v42 = vld [vmem:[#allocation117_spill] sm:$0xff] }
 0x632   : > { %7068 = vmatprep.subr.bf16.mxu0 %v11863_v54 }
 0x635   : > { %7070 = vmatpush3.bf16.msra.mxu0 %v12252_v59  ;;  %v12264_v59 = vpack.c.bf16 %v12262_v29, %v12263_v18  ;;  %v12274_v29 = vld [vmem:[#allocation112_spill] sm:$0xff] }
 0x636   : > { %7071 = vmatprep.subr.bf16.mxu0 %v11863_v54 }
 0x639   : > { %7073 = vmatpush3.bf16.msra.mxu0 %v12255_v21  ;;  %v12267_v21 = vpack.c.bf16 %v12265_v36, %v12266_v58  ;;  %v12278_v36 = vld [vmem:[#allocation120_spill] sm:$0xff] }
 0x63a   : > { %7074 = vmatprep.subr.bf16.mxu0 %v11863_v54 }
 0x63d   : > { %7076 = vmatpush3.bf16.msra.mxu0 %v12258_v19  ;;  %v12268_v19 = vld [vmem:[#allocation105_spill] sm:$0xff] }
 0x63e   : > { %7077 = vmatprep.subr.bf16.mxu0 %v11863_v54  ;;  %v12269_v31 = vpack.c.bf16 %v10392_v40, %v12268_v19  ;;  %v12275_v40 = vld [vmem:[#allocation116_spill] sm:$0xff]  ;;  %v12283_v19 = vld [vmem:[#allocation118_spill] sm:$0xff] }
 0x63f   : > { %v12276_v18 = vpack.c.bf16 %v12274_v29, %v12275_v40  ;;  %v12284_v6 = vpack.c.bf16 %v10508_v39, %v12283_v19  ;;  %v12289_v39 = vpack.c.bf16 %v10552_v46, %v10546_v43  ;;  %v12293_v43 = vpack.c.bf16 %v10611_v20, %v10605_v23  ;;  %v12296_v46 = vld [vmem:[#allocation121_spill] sm:$0xff]  ;;  %v12302_v20 = vld [vmem:[#allocation123_spill] sm:$0xff]  ;;  %v12333_v29 = vld [vmem:[#allocation56_spill] sm:$0xff] }
 0x640   : > { %v12301_v23 = vpack.c.bf16 %v12299_v3, %v12300_v37  ;;  %v12334_v40 = vld [vmem:[#allocation87_spill] sm:$0xff] }
 0x641   : > { %7079 = vmatpush3.bf16.msra.mxu0 %v12261_v8  ;;  %v12273_v8 = vpack.c.bf16 %v12271_v63, %v12272_v42  ;;  %v12306_v63 = vld [vmem:[#allocation132_spill] sm:$0xff] }
 0x642   : > { %7080 = vmatprep.subr.bf16.mxu0 %v11863_v54 }
 0x645   : > { %7082 = vmatpush3.bf16.msra.mxu0 %v12264_v59  ;;  %v12277_v59 = vld [vmem:[#allocation108_spill] sm:$0xff] }
 0x646   : > { %7083 = vmatprep.subr.bf16.mxu0 %v11863_v54  ;;  %v12279_v58 = vpack.c.bf16 %v12277_v59, %v12278_v36  ;;  %v12336_v59 = vld [vmem:[#allocation99_spill] sm:$0xff]  ;;  %v12337_v36 = vld [vmem:[#allocation93_spill] sm:$0xff] }
 0x649   : > { %7085 = vmatpush3.bf16.msra.mxu0 %v12267_v21  ;;  %v12282_v21 = vpack.c.bf16 %v10492_v30, %v10486_v24  ;;  %v12288_v24 = vpack.c.bf16 %v12286_v7, %v12287_v4  ;;  %v12290_v30 = vpack.c.bf16 %v10568_v27, %v10558_v35  ;;  %v12294_v27 = vld [vmem:[#allocation119_spill] sm:$0xff]  ;;  %v12297_v35 = vld [vmem:[#allocation126_spill] sm:$0xff] }
 0x64a   : > { %7094 = vmatprep.subr.bf16.mxu0 %v11863_v54  ;;  %v12295_v15 = vpack.c.bf16 %v10628_v9, %v12294_v27  ;;  %v12298_v52 = vpack.c.bf16 %v12296_v46, %v12297_v35  ;;  %v12303_v9 = vld [vmem:[#allocation135_spill] sm:$0xff]  ;;  %v5233_v27 = vld [vmem:[%s11204_s3 + $0xa0] sm:$0xff] }
 0x64c   : > { %6494 = vmatmul.mubr.f32.vlgmr.msra.gmra.mrb[88].mxu0 %v12243_v38 }
 0x64d   : > { %7096 = vmatpush3.bf16.msra.mxu0 %v12269_v31  ;;  %6560 = vmatprep.mubr.msk.f32.mxu0 %vm7407_vm3, %v12033_v47  ;;  %v12304_v31 = vpack.c.bf16 %v12302_v20, %v12303_v9 }
 0x64e   : > { %7097 = vmatprep.subr.bf16.mxu0 %v11863_v54 }
 0x651   : > { %7099 = vmatpush3.bf16.msra.mxu0 %v12270_v13  ;;  %v12305_v13 = vld [vmem:[#allocation128_spill] sm:$0xff] }
 0x652   : > { %7100 = vmatprep.subr.bf16.mxu0 %v11863_v54  ;;  %v12307_v42 = vpack.c.bf16 %v12305_v13, %v12306_v63 }
 0x655   : > { %7102 = vmatpush3.bf16.msra.mxu0 %v12273_v8  ;;  %v12308_v8 = vpack.c.bf16 %v10714_v25, %v10708_v17  ;;  %v12310_v17 = vpack.c.bf16 %v10761_v2, %v10750_v14  ;;  %v12311_v25 = vpack.c.bf16 %v10773_v26, %v10767_v50  ;;  %v12313_v14 = vpack.c.bf16 %v10830_v5, %v10824_v49  ;;  %v12321_v50 = vld [vmem:[#allocation127_spill] sm:$0xff]  ;;  %v12322_v26 = vld [vmem:[#allocation86_spill] sm:$0xff] }
 0x656   : > { %7103 = vmatprep.subr.bf16.mxu0 %v11863_v54  ;;  %v12323_v34 = vpack.c.bf16 %v12321_v50, %v12322_v26  ;;  %v12329_v49 = vpack.c.bf16 %v12327_v22, %v12328_v32 }
 0x659   : > { %7105 = vmatpush3.bf16.msra.mxu0 %v12276_v18  ;;  %v12335_v18 = vpack.c.bf16 %v12333_v29, %v12334_v40 }
 0x65a   : > { %7106 = vmatprep.subr.bf16.mxu0 %v11863_v54 }
 0x65d   : > { %7108 = vmatpush3.bf16.msra.mxu0 %v12279_v58  ;;  %v12338_v58 = vpack.c.bf16 %v12336_v59, %v12337_v36  ;;  %v12342_v36 = vld [vmem:[#allocation10_spill] sm:$0xff] }
 0x65e   : > { %7109 = vmatprep.subr.bf16.mxu0 %v11863_v54 }
 0x661   : > { %7111 = vmatpush3.bf16.msra.mxu0 %v12280_v16 }
 0x662   : > { %7112 = vmatprep.subr.bf16.mxu0 %v11863_v54 }
 0x665   : > { %7114 = vmatpush3.bf16.msra.mxu0 %v12281_v44 }
 0x666   : > { %7115 = vmatprep.subr.bf16.mxu0 %v11863_v54 }
 0x669   : > { %7117 = vmatpush3.bf16.msra.mxu0 %v12282_v21 }
 0x66a   : > { %7126 = vmatprep.subr.bf16.mxu0 %v11863_v54 }
 0x66c   : > { %6561 = vmatmul.mubr.f32.vlgmr.msra.gmra.mrb[90].mxu0 %v12243_v38 }
 0x66d   : > { %7128 = vmatpush3.bf16.msra.mxu0 %v12284_v6  ;;  %6627 = vmatprep.mubr.msk.f32.mxu0 %vm7407_vm3, %v12033_v47 }
 0x66e   : > { %7129 = vmatprep.subr.bf16.mxu0 %v11863_v54 }
 0x671   : > { %7131 = vmatpush3.bf16.msra.mxu0 %v12285_v56 }
 0x672   : > { %7132 = vmatprep.subr.bf16.mxu0 %v11863_v54 }
 0x675   : > { %7134 = vmatpush3.bf16.msra.mxu0 %v12288_v24 }
 0x676   : > { %7135 = vmatprep.subr.bf16.mxu0 %v11863_v54 }
 0x679   : > { %7137 = vmatpush3.bf16.msra.mxu0 %v12289_v39 }
 0x67a   : > { %7138 = vmatprep.subr.bf16.mxu0 %v11863_v54 }
 0x67d   : > { %7140 = vmatpush3.bf16.msra.mxu0 %v12290_v30 }
 0x67e   : > { %7141 = vmatprep.subr.bf16.mxu0 %v11863_v54 }
 0x681   : > { %7143 = vmatpush3.bf16.msra.mxu0 %v12291_v41 }
 0x682   : > { %7144 = vmatprep.subr.bf16.mxu0 %v11863_v54 }
 0x685   : > { %7146 = vmatpush3.bf16.msra.mxu0 %v12292_v0  ;;  %v5237_v0 = vld [vmem:[%s11204_s3 + $0xc0] sm:$0xff] }
 0x686   : > { %7147 = vmatprep.subr.bf16.mxu0 %v11863_v54  ;;  %6839 = vmatprep.mubr.msk.f32.mxu1 %vm874_vm2, %v5237_v0  ;;  %v12345_v0 = vld [vmem:[#allocation19_spill] sm:$0xff] }
 0x689   : > { %7149 = vmatpush3.bf16.msra.mxu0 %v12293_v43  ;;  %v5240_v43 = vld [vmem:[%s11204_s3 + $0xd8] sm:$0xff] }
 0x68a   : > { %7158 = vmatprep.subr.bf16.mxu0 %v11863_v54 }
 0x68c   : > { %6628 = vmatmul.mubr.f32.vlgmr.msra.gmra.mrb[92].mxu0 %v12243_v38 }
 0x68d   : > { %7160 = vmatpush3.bf16.msra.mxu0 %v12295_v15  ;;  %6694 = vmatprep.mubr.msk.f32.mxu0 %vm7407_vm3, %v12033_v47 }
 0x68e   : > { %7161 = vmatprep.subr.bf16.mxu0 %v11863_v54 }
 0x691   : > { %7163 = vmatpush3.bf16.msra.mxu0 %v12298_v52 }
 0x692   : > { %7164 = vmatprep.subr.bf16.mxu0 %v11863_v54 }
 0x695   : > { %7166 = vmatpush3.bf16.msra.mxu0 %v12301_v23 }
 0x696   : > { %7167 = vmatprep.subr.bf16.mxu0 %v11863_v54 }
 0x699   : > { %7169 = vmatpush3.bf16.msra.mxu0 %v12304_v31 }
 0x69a   : > { %7170 = vmatprep.subr.bf16.mxu0 %v11863_v54 }
 0x69d   : > { %7172 = vmatpush3.bf16.msra.mxu0 %v12307_v42 }
 0x69e   : > { %7173 = vmatprep.subr.bf16.mxu0 %v11863_v54 }
 0x6a1   : > { %7175 = vmatpush3.bf16.msra.mxu0 %v7174_v62  ;;  %v12315_v62 = vld [vmem:[#allocation40_spill] sm:$0xff] }
 0x6a2   : > { %7176 = vmatprep.subr.bf16.mxu0 %v11863_v54  ;;  %v12317_v12 = vpack.c.bf16 %v12315_v62, %v12316_v1 }
 0x6a5   : > { %7178 = vmatpush3.bf16.msra.mxu0 %v12308_v8 }
 0x6a6   : > { %7179 = vmatprep.subr.bf16.mxu0 %v11863_v54 }
 0x6a9   : > { %7181 = vmatpush3.bf16.msra.mxu0 %v7180_v61  ;;  %v12319_v61 = vld [vmem:[#allocation92_spill] sm:$0xff] }
 0x6aa   : > { %7190 = vmatprep.subr.bf16.mxu0 %v11863_v54  ;;  %v12320_v2 = vpack.c.bf16 %v12318_v57, %v12319_v61 }
 0x6ac   : > { %6695 = vmatmul.mubr.f32.vlgmr.msra.gmra.mrb[94].mxu0 %v12243_v38 }
 0x6ad   : > { %7192 = vmatpush3.bf16.msra.mxu0 %v12309_v53  ;;  %6761 = vmatprep.mubr.msk.f32.mxu0 %vm7407_vm3, %v12033_v47 }
 0x6ae   : > { %7193 = vmatprep.subr.bf16.mxu0 %v11863_v54 }
 0x6b1   : > { %7195 = vmatpush3.bf16.msra.mxu0 %v12310_v17 }
 0x6b2   : > { %7196 = vmatprep.subr.bf16.mxu0 %v11863_v54 }
 0x6b5   : > { %7198 = vmatpush3.bf16.msra.mxu0 %v12311_v25 }
 0x6b6   : > { %7199 = vmatprep.subr.bf16.mxu0 %v11863_v54 }
 0x6b9   : > { %7201 = vmatpush3.bf16.msra.mxu0 %v12312_v55  ;;  %v3249_v5 = vpop.f32.mrb[84].mxu0 }
 0x6ba   : > { %7202 = vmatprep.subr.bf16.mxu0 %v11863_v54 }
 0x6bd   : > { %7204 = vmatpush3.bf16.msra.mxu0 %v7203_v11  ;;  %v6361_v11 = vpop.f32.mrb[85].mxu0 }
 0x6be   : > { %7205 = vmatprep.subr.bf16.mxu0 %v11863_v54 }
 0x6c1   : > { %7207 = vmatpush3.bf16.msra.mxu0 %v7206_v48  ;;  %v12332_v48 = vpack.c.bf16 %v12330_v33, %v12331_v45  ;;  %v12340_v33 = vld [vmem:[#allocation6_spill] sm:$0xff] }
 0x6c2   : > { %7208 = vmatprep.subr.bf16.mxu0 %v11863_v54 }
 0x6c5   : > { %7210 = vmatpush3.bf16.msra.mxu0 %v12313_v14 }
 0x6c6   : > { %7211 = vmatprep.subr.bf16.mxu0 %v11863_v54 }
 0x6c9   : > { %7213 = vmatpush3.bf16.msra.mxu0 %v12314_v60 }
 0x6ca   : > { %7222 = vmatprep.subr.bf16.mxu0 %v11863_v54 }
 0x6cc   : > { %6762 = vmatmul.mubr.f32.vlgmr.msra.gmra.mrb[96].mxu0 %v12243_v38 }
 0x6cd   : > { %7224 = vmatpush3.bf16.msra.mxu0 %v12317_v12  ;;  %6828 = vmatprep.mubr.msk.f32.mxu0 %vm7407_vm3, %v12033_v47  ;;  %v5104_v12 = vlaneseq }
 0x6ce   : > { %7225 = vmatprep.subr.bf16.mxu0 %v11863_v54 }
 0x6cf   : > { %v5105_v50 = vshrl.u32 %v5104_v12, 7  ;;  %v12354_v12 = vld [vmem:[#allocation35_spill] sm:$0xff] }
 0x6d1   : > { %7227 = vmatpush3.bf16.msra.mxu0 %v12320_v2  ;;  %v11093_v26 = vsub.s32 0, %v5105_v50 }
 0x6d2   : > { %7228 = vmatprep.subr.bf16.mxu0 %v11863_v54 }
 0x6d5   : > { %7230 = vmatpush3.bf16.msra.mxu0 %v12323_v34 }
 0x6d6   : > { %7231 = vmatprep.subr.bf16.mxu0 %v11863_v54 }
 0x6d9   : > { %7233 = vmatpush3.bf16.msra.mxu0 %v12326_v28 }
 0x6da   : > { %7234 = vmatprep.subr.bf16.mxu0 %v11863_v54 }
 0x6dd   : > { %7236 = vmatpush3.bf16.msra.mxu0 %v12329_v49 }
 0x6de   : > { %7237 = vmatprep.subr.bf16.mxu0 %v11863_v54 }
 0x6e1   : > { %7239 = vmatpush3.bf16.msra.mxu0 %v12332_v48 }
 0x6e2   : > { %7240 = vmatprep.subr.bf16.mxu0 %v11863_v54 }
 0x6e5   : > { %7242 = vmatpush3.bf16.msra.mxu0 %v12335_v18  ;;  %v12341_v18 = vld [vmem:[#allocation11_spill] sm:$0xff] }
 0x6e6   : > { %7243 = vmatprep.subr.bf16.mxu0 %v11863_v54 }
 0x6e9   : > { %7245 = vmatpush3.bf16.msra.mxu0 %v12338_v58 }
 0x6ea   : > { %7262 = vmatprep.subr.bf16.mxu0 %v11863_v54 }
 0x6ec   : > { %6829 = vmatmul.mubr.f32.vlgmr.msra.gmra.mrb[98].mxu0 %v12243_v38  ;;  %v5239_v38 = vld [vmem:[%s11204_s3 + $0xd0] sm:$0xff] }
 0x6ed   : > { %6867 = vmatprep.mubr.msk.f32.mxu0 %vm7407_vm3, %v12033_v47  ;;  %v5238_v47 = vld [vmem:[%s11204_s3 + $0xc8] sm:$0xff] }
 0x6ee   : > { %6840 = vmatmul.mubr.msk.f32.vlgmr.msra.gmra.mrb[196].mxu1 %vm874_vm2, %v5238_v47 }
 0x6ef   : > { %6842 = vmatprep.mubr.msk.f32.mxu1 %vm874_vm2, %v5239_v38  ;;  %v12346_v38 = vld [vmem:[#allocation18_spill] sm:$0xff] }
 0x6f2   : > { %6843 = vmatmul.mubr.msk.f32.gmra.mrb[198].mxu1 %vm874_vm2, %v5240_v43 }
 0x6f3   : > { %6853 = vmatprep.mubr.msk.f32.mxu1 %vm874_vm2, %v5233_v27 }
 0x6ff   : > { %v3512_v16 = vpop.f32.mrb[86].mxu0 }
 0x700   : > { %v5094_v44 = vmax.f32 %v3249_v5, %v3512_v16  ;;  %v6428_v21 = vpop.f32.mrb[87].mxu0 }
 0x701   : > { %v12343_v21 = vld [vmem:[#allocation15_spill] sm:$0xff] }
 0x71f   : > { %v3775_v19 = vpop.f32.mrb[88].mxu0 }
 0x720   : > { %v5095_v6 = vmax.f32 %v5094_v44, %v3775_v19  ;;  %v6495_v56 = vpop.f32.mrb[89].mxu0 }
 0x73f   : > { %v4038_v7 = vpop.f32.mrb[90].mxu0 }
 0x740   : > { %v5096_v4 = vmax.f32 %v5095_v6, %v4038_v7  ;;  %v6562_v24 = vpop.f32.mrb[91].mxu0 }
 0x75f   : > { %v4301_v39 = vpop.f32.mrb[92].mxu0 }
 0x760   : > { %v5097_v30 = vmax.f32 %v5096_v4, %v4301_v39  ;;  %v6629_v41 = vpop.f32.mrb[93].mxu0 }
 0x77f   : > { %v4564_v15 = vpop.f32.mrb[94].mxu0 }
 0x780   : > { %v5098_v46 = vmax.f32 %v5097_v30, %v4564_v15  ;;  %v6696_v35 = vpop.f32.mrb[95].mxu0 }
 0x79f   : > { %v4827_v52 = vpop.f32.mrb[96].mxu0 }
 0x7a0   : > { %v5099_v3 = vmax.f32 %v5098_v46, %v4827_v52  ;;  %v6763_v37 = vpop.f32.mrb[97].mxu0 }
 0x7bf   : > { %v5090_v23 = vpop.f32.mrb[98].mxu0 }
 0x7c0   : > { %v5100_v20 = vmax.f32 %v5099_v3, %v5090_v23  ;;  %v6830_v9 = vpop.f32.mrb[99].mxu0 }
 0x7c2   : > { %v5101_v31 = vsub.f32 %v3249_v5, %v5100_v20  ;;  %v5112_v13 = vsub.f32 %v3512_v16, %v5100_v20  ;;  %v5128_v63 = vsub.f32 %v3775_v19, %v5100_v20  ;;  %v5144_v42 = vsub.f32 %v4038_v7, %v5100_v20  ;;  %v12339_v5 = vld [vmem:[#allocation7_spill] sm:$0xff] }
 0x7c3   : > { %v5160_v8 = vsub.f32 %v4301_v39, %v5100_v20  ;;  %v5176_v53 = vsub.f32 %v4564_v15, %v5100_v20  ;;  %v5192_v17 = vsub.f32 %v4827_v52, %v5100_v20  ;;  %v5208_v25 = vsub.f32 %v5090_v23, %v5100_v20  ;;  %v12344_v39 = vld [vmem:[#allocation14_spill] sm:$0xff]  ;;  %v12347_v15 = vld [vmem:[#allocation9_spill] sm:$0xff]  ;;  %v12348_v23 = vld [vmem:[#allocation23_spill] sm:$0xff] }
 0x7c4   : > { %v5102_v55 = vmul.f32 1.442695, %v5101_v31  ;;  %v5113_v14 = vmul.f32 1.442695, %v5112_v13  ;;  %v5129_v60 = vmul.f32 1.442695, %v5128_v63 }
 0x7c5   : > { %v5145_v62 = vmul.f32 1.442695, %v5144_v42  ;;  %v5161_v1 = vmul.f32 1.442695, %v5160_v8  ;;  %v5177_v57 = vmul.f32 1.442695, %v5176_v53 }
 0x7c6   : > { %7322 = vpow2.f32 %v5102_v55  ;;  %v5193_v61 = vmul.f32 1.442695, %v5192_v17  ;;  %v5209_v2 = vmul.f32 1.442695, %v5208_v25  ;;  %v12349_v31 = vld [vmem:[#allocation8_spill] sm:$0xff]  ;;  %v12350_v63 = vld [vmem:[#allocation13_spill] sm:$0xff] }
 0x7c7   : > { %7324 = vpow2.f32 %v5113_v14  ;;  %v12351_v25 = vld [vmem:[#allocation22_spill] sm:$0xff]  ;;  %v12352_v14 = vld [vmem:[#allocation27_spill] sm:$0xff] }
 0x7c8   : > { %7326 = vpow2.f32 %v5129_v60 }
 0x7c9   : > { %7328 = vpow2.f32 %v5145_v62  ;;  %v12353_v62 = vld [vmem:[#allocation26_spill] sm:$0xff] }
 0x7ca   : > { %7330 = vpow2.f32 %v5161_v1 }
 0x7cb   : > { %7332 = vpow2.f32 %v5177_v57 }
 0x7cc   : > { %7334 = vpow2.f32 %v5193_v61  ;;  %v12355_v61 = vld [vmem:[#allocation12_spill] sm:$0xff] }
 0x7cd   : > { %7336 = vpow2.f32 %v5209_v2 }
 0x7d0   : > { %v7323_v34 = vpop.eup %7322 }
 0x7d1   : > { %v7325_v10 = vpop.eup %7324  ;;  %v5107_v51 = vrot.slane %v7323_v34, %v11093_v26 }
 0x7d2   : > { %v7327_v28 = vpop.eup %7326  ;;  %v5115_v22 = vadd.f32 %v7325_v10, %v7323_v34  ;;  %v5119_v32 = vrot.slane %v7325_v10, %v11093_v26 }
 0x7d3   : > { %v7329_v49 = vpop.eup %7328  ;;  %v5108_v11 = vmul.f32 %v5107_v51, %v12339_v5  ;;  %v5109_v45 = vmul.f32 %v5107_v51, %v12340_v33  ;;  %v5135_v48 = vrot.slane %v7327_v28, %v11093_v26  ;;  %v5110_v46 = vmul.f32 %v5107_v51, %v12347_v15  ;;  %v12357_v5 = vld [vmem:[#allocation17_spill] sm:$0xff]  ;;  %v12358_v33 = vld [vmem:[#allocation16_spill] sm:$0xff] }
 0x7d4   : > { %v7331_v29 = vpop.eup %7330  ;;  %v5131_v40 = vadd.f32 %v7327_v28, %v5115_v22  ;;  %v5120_v59 = vmul.f32 %v5119_v32, %v12341_v18  ;;  %v5121_v58 = vmul.f32 %v5119_v32, %v12342_v36  ;;  %v5151_v16 = vrot.slane %v7329_v49, %v11093_v26 }
 0x7d5   : > { %v7333_v44 = vpop.eup %7332  ;;  %v5136_v19 = vmul.f32 %v5135_v48, %v12343_v21  ;;  %v5167_v6 = vrot.slane %v7331_v29, %v11093_v26  ;;  %v5137_v30 = vmul.f32 %v5135_v48, %v12344_v39  ;;  %v5111_v13 = vmul.f32 %v5107_v51, %v12349_v31  ;;  %v12356_v51 = vld [vmem:[#allocation31_spill] sm:$0xff]  ;;  %v12360_v21 = vld [vmem:[#allocation21_spill] sm:$0xff] }
 0x7d6   : > { %v7335_v56 = vpop.eup %7334  ;;  %v5147_v7 = vadd.f32 %v7329_v49, %v5131_v40  ;;  %v5124_v4 = vadd.f32 %v5120_v59, %v5108_v11  ;;  %v5125_v24 = vadd.f32 %v5121_v58, %v5109_v45  ;;  %v5152_v47 = vmul.f32 %v5151_v16, %v12345_v0  ;;  %v12359_v59 = vld [vmem:[#allocation30_spill] sm:$0xff] }
 0x7d7   : > { %v7337_v41 = vpop.eup %7336  ;;  %v5153_v43 = vmul.f32 %v5151_v16, %v12346_v38  ;;  %v5183_v27 = vrot.slane %v7333_v44, %v11093_v26  ;;  %v5168_v20 = vmul.f32 %v5167_v6, %v12348_v23  ;;  %v5199_v9 = vrot.slane %v7335_v56, %v11093_v26  ;;  %v12366_v23 = vld [vmem:[#allocation28_spill] sm:$0xff] }
 0x7d8   : > { %v5163_v35 = vadd.f32 %v7331_v29, %v5147_v7  ;;  %v5215_v52 = vrot.slane %v7337_v41, %v11093_v26  ;;  %v5140_v3 = vadd.f32 %v5136_v19, %v5124_v4  ;;  %v5141_v37 = vadd.f32 %v5137_v30, %v5125_v24  ;;  %v12361_v19 = vld [vmem:[#allocation20_spill] sm:$0xff]  ;;  %v12362_v24 = vld [vmem:[#allocation34_spill] sm:$0xff] }
 0x7d9   : > { %v5122_v42 = vmul.f32 %v5119_v32, %v12350_v63  ;;  %v5169_v55 = vmul.f32 %v5167_v6, %v12351_v25  ;;  %v5184_v60 = vmul.f32 %v5183_v27, %v12352_v14  ;;  %v5185_v1 = vmul.f32 %v5183_v27, %v12353_v62  ;;  %v12369_v25 = vld [vmem:[#allocation37_spill] sm:$0xff]  ;;  %v12370_v14 = vld [vmem:[#allocation36_spill] sm:$0xff] }
 0x7da   : > { %v5179_v8 = vadd.f32 %v7333_v44, %v5163_v35  ;;  %v5156_v53 = vadd.f32 %v5152_v47, %v5140_v3  ;;  %v5157_v17 = vadd.f32 %v5153_v43, %v5141_v37  ;;  %v5216_v57 = vmul.f32 %v5215_v52, %v12354_v12  ;;  %v12363_v47 = vld [vmem:[#allocation25_spill] sm:$0xff] }
 0x7db   : > { %v5123_v2 = vmul.f32 %v5119_v32, %v12355_v61  ;;  %v5126_v28 = vadd.f32 %v5122_v42, %v5110_v46  ;;  %v5200_v22 = vmul.f32 %v5199_v9, %v12356_v51  ;;  %v5138_v11 = vmul.f32 %v5135_v48, %v12357_v5  ;;  %v12365_v3 = vld [vmem:[#allocation29_spill] sm:$0xff]  ;;  %v12368_v42 = vld [vmem:[#allocation32_spill] sm:$0xff]  ;;  %v5442_v51 = vpop.permute.xlu0 %5441 }
 0x7dc   : > { %v5195_v50 = vadd.f32 %v7335_v56, %v5179_v8  ;;  %v5172_v34 = vadd.f32 %v5168_v20, %v5156_v53  ;;  %v5173_v10 = vadd.f32 %v5169_v55, %v5157_v17  ;;  %v5139_v45 = vmul.f32 %v5135_v48, %v12358_v33 }
 0x7dd   : > { %v5127_v49 = vadd.f32 %v5123_v2, %v5111_v13  ;;  %v5201_v36 = vmul.f32 %v5199_v9, %v12359_v59  ;;  %v5142_v58 = vadd.f32 %v5138_v11, %v5126_v28  ;;  %v5154_v32 = vmul.f32 %v5151_v16, %v12360_v21  ;;  %v12367_v13 = vld [vmem:[#allocation33_spill] sm:$0xff]  ;;  %v5447_v28 = vpop.permute.xlu1 %5446 }
 0x7de   : > { %v5211_v29 = vadd.f32 %v7337_v41, %v5195_v50  ;;  %v5188_v40 = vadd.f32 %v5184_v60, %v5172_v34  ;;  %v5189_v18 = vadd.f32 %v5185_v1, %v5173_v10  ;;  %v5155_v56 = vmul.f32 %v5151_v16, %v12361_v19  ;;  %v12364_v41 = vld [vmem:[#allocation24_spill] sm:$0xff] }
 0x7df   : > { %v5143_v44 = vadd.f32 %v5139_v45, %v5127_v49  ;;  %v5217_v39 = vmul.f32 %v5215_v52, %v12362_v24  ;;  %v5158_v30 = vadd.f32 %v5154_v32, %v5142_v58  ;;  %v5170_v48 = vmul.f32 %v5167_v6, %v12363_v47  ;;  %v5236_v10 = vld [vmem:[%s11204_s3 + $0xb8] sm:$0xff] }
 0x7e0   : > { %7338 = vrcp.f32 %v5211_v29  ;;  %v5204_v7 = vadd.f32 %v5200_v22, %v5188_v40  ;;  %v5205_v4 = vadd.f32 %v5201_v36, %v5189_v18  ;;  %v5171_v38 = vmul.f32 %v5167_v6, %v12364_v41  ;;  %v5452_v18 = vpop.permute.xlu0 %5451 }
 0x7e1   : > { %v5159_v0 = vadd.f32 %v5155_v56, %v5143_v44  ;;  %v5174_v46 = vadd.f32 %v5170_v48, %v5158_v30  ;;  %v5186_v37 = vmul.f32 %v5183_v27, %v12365_v3  ;;  %v5187_v20 = vmul.f32 %v5183_v27, %v12366_v23  ;;  %v5457_v45 = vpop.permute.xlu1 %5456 }
 0x7e2   : > { %v5220_v43 = vadd.f32 %v5216_v57, %v5204_v7  ;;  %v5221_v15 = vadd.f32 %v5217_v39, %v5205_v4  ;;  %v5202_v63 = vmul.f32 %v5199_v9, %v12367_v13  ;;  %v5203_v8 = vmul.f32 %v5199_v9, %v12368_v42  ;;  %v5234_v9 = vld [vmem:[%s11204_s3 + $0xa8] sm:$0xff]  ;;  %v5471_v39 = vld [vmem:[%s11208_s7] sm:$0x1] }
 0x7e3   : > { %v5175_v35 = vadd.f32 %v5171_v38, %v5159_v0  ;;  %v5190_v16 = vadd.f32 %v5186_v37, %v5174_v46  ;;  %v5218_v55 = vmul.f32 %v5215_v52, %v12369_v25  ;;  %v5219_v6 = vmul.f32 %v5215_v52, %v12370_v14  ;;  %v5235_v52 = vld [vmem:[%s11204_s3 + $0xb0] sm:$0xff] }
 0x7e4   : > { %v5476_v30 = vpop.permute.xlu0 %5475 }
 0x7e5   : > { %v5191_v31 = vadd.f32 %v5187_v20, %v5175_v35  ;;  %v5206_v53 = vadd.f32 %v5202_v63, %v5190_v16  ;;  %v5481_v0 = vrot.slane %v5476_v30, %v11093_v26 }
 0x7e7   : > { %v5207_v17 = vadd.f32 %v5203_v8, %v5191_v31  ;;  %v5222_v60 = vadd.f32 %v5218_v55, %v5206_v53 }
 0x7e9   : > { %v5223_v62 = vadd.f32 %v5219_v6, %v5207_v17 }
 0x7ea   : > { %v7339_v1 = vpop.eup %7338 }
 0x7eb   : > { %v5228_v12 = vrot.slane %v7339_v1, %v11093_v26 }
 0x7ed   : > { %v5229_v57 = vmul.f32 %v5228_v12, %v5220_v43  ;;  %v5230_v61 = vmul.f32 %v5228_v12, %v5221_v15  ;;  %v5231_v27 = vmul.f32 %v5228_v12, %v5222_v60  ;;  %v5232_v2 = vmul.f32 %v5228_v12, %v5223_v62 }
 0x7ef   : > { %v7254_v50 = vpack.c.bf16 %v5230_v61, %v5229_v57  ;;  %v7258_v34 = vpack.c.bf16 %v5232_v2, %v5231_v27 }
 0x7f1   : > { %7255 = vmatprep.subr.bf16.mxu1 %v7254_v50 }
 0x7f2   : > { %7257 = vmatpush3.bf16.msra.mxu1 %v7254_v50 }
 0x7f3   : > { %7259 = vmatprep.subr.bf16.mxu1 %v7258_v34 }
 0x7f6   : > { %7261 = vmatpush3.bf16.msra.mxu1 %v7258_v34 }
 0x7f9   : > { %6854 = vmatmul.mubr.msk.f32.vlgmr.msra.gmra.mrb[196].mxu1 %vm874_vm2, %v5234_v9 }
 0x7fa   : > { %6856 = vmatprep.mubr.msk.f32.mxu1 %vm874_vm2, %v5235_v52 }
 0x7fd   : > { %6857 = vmatmul.mubr.msk.f32.gmra.mrb[198].mxu1 %vm874_vm2, %v5236_v10 }
 0x8cc   : > { %v6855_v22 = vpop.f32.mrb[196].mxu1 }
 0x8cd   : > { %v5460_v49 = vadd.f32 %v6855_v22, %v5447_v28  ;;  %v5416_v5 = vpop.f32.mrb[197].mxu1 }
 0x8ce   : > { %v5459_v11 = vadd.f32 %v5442_v51, %v5416_v5 }
 0x8cf   : > { %v5464_v33 = vmul.f32 0.05, %v5460_v49 }
 0x8d0   : > { %v5463_v29 = vmul.f32 0.05, %v5459_v11  ;;  %v6858_v40 = vpop.f32.mrb[198].mxu1 }
 0x8d1   : > { %v5468_v59 = vmax.f32 %v5460_v49, %v5464_v33  ;;  %v5462_v36 = vadd.f32 %v6858_v40, %v5457_v45  ;;  %v5426_v58 = vpop.f32.mrb[199].mxu1 }
 0x8d2   : > { %v5467_v44 = vmax.f32 %v5459_v11, %v5463_v29  ;;  %v5461_v21 = vadd.f32 %v5452_v18, %v5426_v58 }
 0x8d3   : > { %v5466_v32 = vmul.f32 0.05, %v5462_v36 }
 0x8d4   : > { %v7263_v19 = vpack.c.bf16 %v5468_v59, %v5467_v44  ;;  %v5465_v56 = vmul.f32 0.05, %v5461_v21 }
 0x8d5   : > { %v5470_v7 = vmax.f32 %v5462_v36, %v5466_v32 }
 0x8d6   : > { %v5469_v4 = vmax.f32 %v5461_v21, %v5465_v56  ;;  %7264 = vmatpush3.bf16.msra.mxu0 %v7263_v19 }
 0x8d7   : > { %7265 = vmatprep.subr.bf16.mxu0 %v11863_v54 }
 0x8d8   : > { %v7266_v24 = vpack.c.bf16 %v5470_v7, %v5469_v4 }
 0x8da   : > { %7267 = vmatpush3.bf16.msra.mxu0 %v7266_v24 }
 0x8dd   : > { %6868 = vmatmul.mubr.msk.f32.vlgmr.msra.gmra.mrb[100].mxu0 %vm874_vm2, %v5471_v39 }
 0x9b0   : > { %v5551_v47 = vpop.f32.mrb[100].mxu0 }
 0x9b1   : > { %v5552_v48 = vadd.f32 %v5551_v47, %v5481_v0  ;;  %v6869_v41 = vpop.f32.mrb[101].mxu0 }
 0x9b3   : > { %5555 = vst [vmem:[%s341_s22] sm:$0x1] %v5552_v48 }
 0x9b4   : > { %7353 = shalt.err (!%p7350_p3)
}
 0x9b5   : > { %s7354_s30 = scalar_lea.hbm %s11159_s24, 16  ;;  %s7358_s18 = scalar_lea.hbm %s11210_s9, 64 }
 0x9b6   : > { %p7355_p4 = scmp.ne.s32.totalorder %s11159_s24, %s7354_s30  ;;  %p7359_p9 = scmp.lt.u32.totalorder %s11159_s24, %s11210_s9 }
 0x9b7   : > { %p7360_p10 = scmp.lt.u32.totalorder %s7358_s18, %s7354_s30  ;;  %p7362_p12 = scmp.lt.u32.totalorder %s7354_s30, %s11159_s24 }
 0x9b8   : > { %p7356_p7 = pnand %p7355_p4, %p7501_p5 }
 0x9b9   : > { %p7361_p11 = por %p7360_p10, %p7359_p9 }
 0x9ba   : > { %p7357_p8 = pneg %p7356_p7 }
 0x9bb   : > { %p7363_p13 = por %p7362_p12, %p7361_p11 }
 0x9bd   : > { %p7364_p0 = pnand %p7363_p13, %p7357_p8 }
 0x9bf   : > { %7367 = shalt.err (!%p7364_p0)
}
 0x9c0   : > { %7272 = dma.vmem_to_hbm [thread:$0]  (%p7501_p5), %s11161_s23, 16, %s11159_s24, %s5557_s25  }
 0x9c1 PF: > { %p7278_p1 = scmp.ge.s32.totalorder %s7402_s14, 2  ;;  %s5581_s10 = sand.u32 1, %s7390_s11  }
 0x9c2   : > { %s5582_s8 = scalar_lea.sflag [#allocation4], %s5581_s10 }
 0x9c3   : > { %p7275_p2 = pnand %p7278_p1, %p7505_p6 }
 0x9c5   : > { %7385 = dma.done.wait (!%p7275_p2), %s5582_s8, 16  }
 0x9c6   : > { %7387 = vsyncadd (!%p7275_p2), %s5582_s8, 4294967280  ;;  %p21_p3 = scmp.ge.s32.totalorder %s7488_s16, 6   ;;  %s12371_s11 = smov %s7394_s12 }
 0x9c7   : > { %s12372_s12 = smov %s7398_s13  ;;  %s12373_s13 = smov %s7499_s19 }
 0x9c8   : > { %s12374_s14 = smov %s7488_s16  ;;  %23 = sbr.rel (!%p21_p3) target bundleno = 6 (0x6), region = 94 }
 0x9cf   :  { %5586 = vsyncpa [#allocation4], 1 }
 0x9d0   :  { %5588 = vsyncpa [#allocation4 + $0x1], 1 }

</bundles_post_ra>
